<compile_context>
chip_gen: v7x
topology: tpu7x:2x2x1
jax: 0.10.0
libtpu: 0.0.40
codegen_flags: <defaults>
</compile_context>

<pallas_src>
import jax
import jax.numpy as jnp
from jax.experimental import pallas as pl
from jax.experimental.pallas import tpu as pltpu  # noqa: F401  (TPU backend)


NC_PAD = 128  # lane-dense padded class dimension for the kernel output


# ----------------------------------------------------------------------------
# Fused kernel: backbone projection + all per-class heads in one pass.
# ----------------------------------------------------------------------------
def _fused_forward_kernel(pooled_ref, wbb_ref, bbb_ref,
                          w1_ref, b1_ref, w2bd_ref, b2_ref, o_ref):
    # pooled: (B, C)        f32   | wbb:  (C, F)          bf16 | bbb: (1, F)      f32
    # w1:     (F, NC*H)     bf16  | b1:   (1, NC*H)       f32
    # w2bd:   (NC*H, NC_PAD) bf16 | b2:   (1, NC_PAD)     f32
    # o:      (B, NC_PAD)   f32
    feats = (
        jnp.dot(pooled_ref[...].astype(jnp.bfloat16), wbb_ref[...],
                preferred_element_type=jnp.float32)
        + bbb_ref[...]
    )                                                            # (B, F) f32

    h = (
        jnp.dot(feats.astype(jnp.bfloat16), w1_ref[...],
                preferred_element_type=jnp.float32)
        + b1_ref[...]
    )                                                            # (B, NC*H) f32
    h = jnp.maximum(h, 0.0)                                      # ReLU (f32)

    logits = (
        jnp.dot(h.astype(jnp.bfloat16), w2bd_ref[...],
                preferred_element_type=jnp.float32)
        + b2_ref[...]
    )                                                            # (B, NC_PAD) f32
    o_ref[...] = jax.nn.sigmoid(logits)


# ----------------------------------------------------------------------------
# Parameter construction / preparation.
# ----------------------------------------------------------------------------
def init_params(key, in_channels, in_features, hidden, n_classes):
    """Per-class weights, mirroring the PyTorch module's layout."""
    ks = jax.random.split(key, 6)
    scale = 0.02
    return {
        "w_bb": scale * jax.random.normal(ks[0], (in_channels, in_features), jnp.float32),
        "b_bb": scale * jax.random.normal(ks[1], (1, in_features), jnp.float32),
        "w1":   scale * jax.random.normal(ks[2], (n_classes, in_features, hidden), jnp.float32),
        "b1":   scale * jax.random.normal(ks[3], (n_classes, hidden), jnp.float32),
        "w2":   scale * jax.random.normal(ks[4], (n_classes, hidden), jnp.float32),
        "b2":   scale * jax.random.normal(ks[5], (n_classes,), jnp.float32),
    }


def prepare_params(raw, n_classes, nc_pad=NC_PAD):
    """One-time layout fusion + bf16 cast of matmul operands (done in XLA)."""
    in_features = raw["w_bb"].shape[1]
    hidden = raw["w1"].shape[2]

    # Fuse all first-layer weights along N: W1_flat[f, c*H + j] = w1[c, f, j]
    w1_flat = jnp.transpose(raw["w1"], (1, 0, 2)).reshape(in_features, n_classes * hidden)
    b1_flat = raw["b1"].reshape(1, n_classes * hidden)

    # Block-diagonal second layer: W2_bd[c*H + j, c] = w2[c, j]; zero elsewhere.
    eye = jnp.eye(n_classes, nc_pad, dtype=jnp.float32)                  # (NC, NC_PAD)
    w2_bd = (raw["w2"][:, :, None] * eye[:, None, :]).reshape(n_classes * hidden, nc_pad)
    b2_pad = jnp.zeros((1, nc_pad), jnp.float32).at[0, :n_classes].set(raw["b2"])

    return {
        "w_bb":    raw["w_bb"].astype(jnp.bfloat16),
        "b_bb":    raw["b_bb"],
        "w1_flat": w1_flat.astype(jnp.bfloat16),
        "b1_flat": b1_flat,
        "w2_bd":   w2_bd.astype(jnp.bfloat16),
        "b2_pad":  b2_pad,
    }


# ----------------------------------------------------------------------------
# Forward pass.
# ----------------------------------------------------------------------------
def multilabel_forward(x_nchw, prepared, n_classes, nc_pad=NC_PAD):
    B = x_nchw.shape[0]
    # Global average pool over spatial dims in plain XLA (tiny reduce; keeps
    # the Pallas kernel lane-dense instead of a C=4-wide sublane reduction).
    pooled = jnp.mean(x_nchw, axis=(2, 3))                               # (B, C) f32

    probs_pad = pl.pallas_call(
        _fused_forward_kernel,
        out_shape=jax.ShapeDtypeStruct((B, nc_pad), jnp.float32),
    )(
        pooled,
        prepared["w_bb"], prepared["b_bb"],
        prepared["w1_flat"], prepared["b1_flat"],
        prepared["w2_bd"], prepared["b2_pad"],
    )
    return probs_pad[:, :n_classes]                                      # (B, n_classes)


def outputs_as_dict(probs, classes):
    """Match the PyTorch module's dict-of-(B,1) API (host-side split only)."""
    return {cls: probs[:, i:i + 1] for i, cls in enumerate(classes)}


# ----------------------------------------------------------------------------
# Pure-JAX reference (f32) for correctness checking.
# ----------------------------------------------------------------------------
def reference_forward(x_nchw, raw, n_classes):
    pooled = jnp.mean(x_nchw, axis=(2, 3))
    feats = pooled @ raw["w_bb"] + raw["b_bb"]
    cols = []
    for c in range(n_classes):
        h = jnp.maximum(feats @ raw["w1"][c] + raw["b1"][c], 0.0)
        logit = h @ raw["w2"][c][:, None] + raw["b2"][c]
        cols.append(jax.nn.sigmoid(logit))
    return jnp.concatenate(cols, axis=1)                                 # (B, n_classes)


if __name__ == "__main__":
    classes = ["cat", "dog", "car"]
    B, C, Hs, Ws = 2, 4, 16, 16           # small NCHW input
    in_features = 2048                    # resnet50 feature width
    hidden = 256
    n_classes = len(classes)

    key = jax.random.PRNGKey(0)
    k_x, k_p = jax.random.split(key)
    x = jax.random.normal(k_x, (B, C, Hs, Ws), jnp.float32)
    raw_params = init_params(k_p, C, in_features, hidden, n_classes)
    prepared = prepare_params(raw_params, n_classes)

    fwd = jax.jit(lambda xx, pp: multilabel_forward(xx, pp, n_classes=n_classes))
    probs = fwd(x, prepared)                                             # (B, n_classes)
    jax.block_until_ready(probs)

    # Correctness vs pure-JAX f32 reference (bf16 matmuls => loose tolerance).
    ref = reference_forward(x, raw_params, n_classes)
    assert probs.shape == (B, n_classes)
    assert bool(jnp.all((probs >= 0.0) & (probs <= 1.0)))
    assert bool(jnp.allclose(probs, ref, atol=2e-2, rtol=0.0)), (probs, ref)

    # Module-style dict API (one (B, 1) sigmoid output per class).
    out = outputs_as_dict(probs, classes)
    assert set(out.keys()) == set(classes)
    for v in out.values():
        assert v.shape == (B, 1)

    print("KERNEL_OK")
</pallas_src>

<mosaic_0001>
module attributes {stable_mosaic.version = 11 : i64} {
  func.func @_fused_forward_kernel(%arg0: memref<2x4xf32, #tpu.memory_space<vmem>>, %arg1: memref<4x2048xbf16, #tpu.memory_space<vmem>>, %arg2: memref<1x2048xf32, #tpu.memory_space<vmem>>, %arg3: memref<2048x768xbf16, #tpu.memory_space<vmem>>, %arg4: memref<1x768xf32, #tpu.memory_space<vmem>>, %arg5: memref<768x128xbf16, #tpu.memory_space<vmem>>, %arg6: memref<1x128xf32, #tpu.memory_space<vmem>>, %arg7: memref<2x128xf32, #tpu.memory_space<vmem>>) attributes {dimension_semantics = [], scalar_prefetch = 0 : i64, scratch_operands = 0 : i64, tpu.core_type = #tpu.core_type<tc>} {
    %c0 = arith.constant 0 : index
    %c0_0 = arith.constant 0 : index
    %0 = vector.load %arg0[%c0, %c0_0] : memref<2x4xf32, #tpu.memory_space<vmem>>, vector<2x4xf32>
    %1 = arith.truncf %0 : vector<2x4xf32> to vector<2x4xbf16>
    %c0_1 = arith.constant 0 : index
    %c0_2 = arith.constant 0 : index
    %2 = vector.load %arg1[%c0_1, %c0_2] : memref<4x2048xbf16, #tpu.memory_space<vmem>>, vector<4x2048xbf16>
    %cst = arith.constant dense<0.000000e+00> : vector<2x2048xf32>
    %3 = tpu.matmul %1, %2, %cst {dimension_numbers = #tpu.dot_dimension_numbers<[1], [0], [0], [1], [0, 0, 1, 1], [], []>} : vector<2x4xbf16>, vector<4x2048xbf16>, vector<2x2048xf32> -> vector<2x2048xf32>
    %c0_3 = arith.constant 0 : index
    %c0_4 = arith.constant 0 : index
    %4 = vector.load %arg2[%c0_3, %c0_4] : memref<1x2048xf32, #tpu.memory_space<vmem>>, vector<1x2048xf32>
    %5 = vector.broadcast %4 : vector<1x2048xf32> to vector<2x2048xf32>
    %6 = arith.addf %3, %5 : vector<2x2048xf32>
    %7 = arith.truncf %6 : vector<2x2048xf32> to vector<2x2048xbf16>
    %c0_5 = arith.constant 0 : index
    %c0_6 = arith.constant 0 : index
    %8 = vector.load %arg3[%c0_5, %c0_6] : memref<2048x768xbf16, #tpu.memory_space<vmem>>, vector<2048x768xbf16>
    %cst_7 = arith.constant dense<0.000000e+00> : vector<2x768xf32>
    %9 = tpu.matmul %7, %8, %cst_7 {dimension_numbers = #tpu.dot_dimension_numbers<[1], [0], [0], [1], [0, 0, 1, 1], [], []>} : vector<2x2048xbf16>, vector<2048x768xbf16>, vector<2x768xf32> -> vector<2x768xf32>
    %c0_8 = arith.constant 0 : index
    %c0_9 = arith.constant 0 : index
    %10 = vector.load %arg4[%c0_8, %c0_9] : memref<1x768xf32, #tpu.memory_space<vmem>>, vector<1x768xf32>
    %11 = vector.broadcast %10 : vector<1x768xf32> to vector<2x768xf32>
    %12 = arith.addf %9, %11 : vector<2x768xf32>
    %cst_10 = arith.constant 0.000000e+00 : f32
    %13 = vector.broadcast %cst_10 : f32 to vector<2x768xf32>
    %14 = arith.maximumf %12, %13 : vector<2x768xf32>
    %15 = arith.truncf %14 : vector<2x768xf32> to vector<2x768xbf16>
    %c0_11 = arith.constant 0 : index
    %c0_12 = arith.constant 0 : index
    %16 = vector.load %arg5[%c0_11, %c0_12] : memref<768x128xbf16, #tpu.memory_space<vmem>>, vector<768x128xbf16>
    %cst_13 = arith.constant dense<0.000000e+00> : vector<2x128xf32>
    %17 = tpu.matmul %15, %16, %cst_13 {dimension_numbers = #tpu.dot_dimension_numbers<[1], [0], [0], [1], [0, 0, 1, 1], [], []>} : vector<2x768xbf16>, vector<768x128xbf16>, vector<2x128xf32> -> vector<2x128xf32>
    %c0_14 = arith.constant 0 : index
    %c0_15 = arith.constant 0 : index
    %18 = vector.load %arg6[%c0_14, %c0_15] : memref<1x128xf32, #tpu.memory_space<vmem>>, vector<1x128xf32>
    %19 = vector.broadcast %18 : vector<1x128xf32> to vector<2x128xf32>
    %20 = arith.addf %17, %19 : vector<2x128xf32>
    %21 = arith.negf %20 : vector<2x128xf32>
    %22 = math.exp %21 : vector<2x128xf32>
    %cst_16 = arith.constant 1.000000e+00 : f32
    %23 = vector.broadcast %cst_16 : f32 to vector<2x128xf32>
    %24 = arith.addf %23, %22 : vector<2x128xf32>
    %25 = arith.divf %23, %24 : vector<2x128xf32>
    %c0_17 = arith.constant 0 : index
    %c0_18 = arith.constant 0 : index
    %26 = vector.load %arg7[%c0_17, %c0_18] : memref<2x128xf32, #tpu.memory_space<vmem>>, vector<2x128xf32>
    tpu.vector_store %arg7[%c0_17, %c0_18], %25 {strides = array<i32>} : memref<2x128xf32, #tpu.memory_space<vmem>>, vector<2x128xf32>,
    return
  }
}

</mosaic_0001>

<bundles_post_ra>
// kernel: _lambda_.1
= control target key start
LH: loop header
LB: loop body
LE: loop exit
PB: predicated region body
PF: predicated region fallthrough
CT: control target
= control target key end

     0   :  { %12 = vsyncpa [#allocation3], 0  ;;  %s9600_s0 = inlined_call_operand.vmem [shape: f32[2,4], index: 0, kind: input, shape index: {}]   ;;  %s9601_s1 = inlined_call_operand.hbm [shape: bf16[4,2048], index: 1, kind: input, shape index: {}]   ;;  %s9602_s2 = inlined_call_operand.hbm [shape: f32[1,2048], index: 2, kind: input, shape index: {}]   ;;  %s9603_s3 = inlined_call_operand.hbm [shape: bf16[2048,768], index: 3, kind: input, shape index: {}]   ;;  %s9604_s4 = inlined_call_operand.hbm [shape: f32[1,768], index: 4, kind: input, shape index: {}]   ;;  %s9605_s5 = inlined_call_operand.hbm [shape: bf16[768,128], index: 5, kind: input, shape index: {}]   ;;  %s9606_s6 = inlined_call_operand.hbm [shape: f32[1,128], index: 6, kind: input, shape index: {}]   ;;  %s9607_s7 = inlined_call_operand.hbm [shape: f32[2,128], index: 7, kind: output, shape index: {}]  }
   0x1   :  { %13 = vsyncpa [#allocation6], 0 }
   0x2   :  { %14 = vsyncpa [#allocation9], 0 }
   0x3   :  { %15 = vsyncpa [#allocation12], 0 }
   0x4   :  { %16 = vsyncpa [#allocation4], 0  ;;  %s9209_s24 = smov [#allocation5]   ;;  %s9210_s26 = smov [#allocation8]  }
   0x5   :  { %s35_s25 = sshll.u32 %s9209_s24, 4  ;;  %s57_s27 = sshll.u32 %s9210_s26, 4  ;;  %s36_s25 = int_to_ptr.vmem [resolvable:$true] %s35_s25  ;;  %s58_s27 = int_to_ptr.vmem [resolvable:$true] %s57_s27 }
   0x6   :  { %s9045_s30 = scalar_lea.hbm %s9602_s2, 256 }
   0x7   :  { %p9046_p0 = scmp.ne.s32.totalorder %s9602_s2, %s9045_s30  ;;  %p9049_p1 = scmp.lt.u32.totalorder %s9045_s30, %s9602_s2 }
   0x9   :  { %p9051_p2 = pnand %p9049_p1, %p9046_p0 }
   0xb   :  { %9054 = shalt.err (!%p9051_p2)
}
   0xc   :  { %s9055_s12 = scalar_lea.vmem %s36_s25, 256  ;;  %p9060_p4 = scmp.lt.s32.totalorder %s36_s25, %s36_s25 }
   0xd   :  { %p9056_p3 = scmp.ne.s32.totalorder %s36_s25, %s9055_s12  ;;  %p9061_p5 = scmp.lt.s32.totalorder %s9055_s12, %s9055_s12 }
   0xf   :  { %p9062_p6 = por %p9061_p5, %p9060_p4 }
  0x11   :  { %p9063_p7 = pnand %p9062_p6, %p9056_p3 }
  0x13   :  { %9066 = shalt.err (!%p9063_p7)
}
  0x14   :  { %38 = dma.hbm_to_vmem [thread:$0]  %s9602_s2, 256, %s36_s25, [#allocation6]  }
  0x15   :  { %s9067_s17 = scalar_lea.hbm %s9604_s4, 96 }
  0x16   :  { %p9068_p8 = scmp.ne.s32.totalorder %s9604_s4, %s9067_s17  ;;  %p9071_p9 = scmp.lt.u32.totalorder %s9067_s17, %s9604_s4 }
  0x18   :  { %p9073_p10 = pnand %p9071_p9, %p9068_p8 }
  0x1a   :  { %9076 = shalt.err (!%p9073_p10)
}
  0x1b   :  { %s9077_s22 = scalar_lea.vmem %s58_s27, 96  ;;  %p9082_p12 = scmp.lt.s32.totalorder %s58_s27, %s58_s27 }
  0x1c   :  { %p9078_p11 = scmp.ne.s32.totalorder %s58_s27, %s9077_s22  ;;  %p9083_p13 = scmp.lt.s32.totalorder %s9077_s22, %s9077_s22 }
  0x1e   :  { %p9084_p0 = por %p9083_p13, %p9082_p12 }
  0x20   :  { %p9085_p1 = pnand %p9084_p0, %p9078_p11 }
  0x22   :  { %9088 = shalt.err (!%p9085_p1)
}
  0x23   :  { %60 = dma.hbm_to_vmem [thread:$0]  %s9604_s4, 96, %s58_s27, [#allocation9]  }
  0x24   :  { %s9211_s24 = smov [#allocation2]   ;;  %s9212_s26 = smov [#allocation7]  }
  0x25   :  { %s25_s25 = sshll.u32 %s9211_s24, 4  ;;  %s44_s28 = sshll.u32 %s9212_s26, 4  ;;  %s26_s25 = int_to_ptr.vmem [resolvable:$true] %s25_s25  ;;  %s9286_s28 = int_to_ptr.vmem [resolvable:$true] %s44_s28 }
  0x26   :  { %s9089_s8 = scalar_lea.hbm %s9601_s1, 512 }
  0x27   :  { %p9090_p2 = scmp.ne.s32.totalorder %s9601_s1, %s9089_s8  ;;  %p9093_p3 = scmp.lt.u32.totalorder %s9089_s8, %s9601_s1 }
  0x29   :  { %p9095_p4 = pnand %p9093_p3, %p9090_p2 }
  0x2b   :  { %9098 = shalt.err (!%p9095_p4)
}
  0x2c   :  { %s9099_s4 = scalar_lea.vmem %s26_s25, 512  ;;  %p9104_p6 = scmp.lt.s32.totalorder %s26_s25, %s26_s25 }
  0x2d   :  { %p9100_p5 = scmp.ne.s32.totalorder %s26_s25, %s9099_s4  ;;  %p9105_p7 = scmp.lt.s32.totalorder %s9099_s4, %s9099_s4 }
  0x2f   :  { %p9106_p8 = por %p9105_p7, %p9104_p6 }
  0x31   :  { %p9107_p9 = pnand %p9106_p8, %p9100_p5 }
  0x33   :  { %9110 = shalt.err (!%p9107_p9)
}
  0x34   :  { %28 = dma.hbm_to_vmem [thread:$0]  %s9601_s1, 512, %s26_s25, [#allocation3]  }
  0x35   :  { %s9111_s16 = scalar_lea.hbm %s9603_s3, 98304 }
  0x36   :  { %p9112_p10 = scmp.ne.s32.totalorder %s9603_s3, %s9111_s16  ;;  %p9115_p11 = scmp.lt.u32.totalorder %s9111_s16, %s9603_s3 }
  0x38   :  { %p9117_p12 = pnand %p9115_p11, %p9112_p10 }
  0x3a   :  { %9120 = shalt.err (!%p9117_p12)
}
  0x3b   :  { %s9121_s21 = scalar_lea.vmem %s9286_s28, 98304  ;;  %p9126_p0 = scmp.lt.s32.totalorder %s9286_s28, %s9286_s28 }
  0x3c   :  { %p9122_p13 = scmp.ne.s32.totalorder %s9286_s28, %s9121_s21  ;;  %p9127_p1 = scmp.lt.s32.totalorder %s9121_s21, %s9121_s21 }
  0x3e   :  { %p9128_p2 = por %p9127_p1, %p9126_p0 }
  0x40   :  { %p9129_p3 = pnand %p9128_p2, %p9122_p13 }
  0x42   :  { %9132 = shalt.err (!%p9129_p3)
}
  0x43   :  { %s9213_s1 = smov 384   ;;  %s9214_s22 = smov 24  }
  0x44   :  { %50 = dma.hbm_to_vmem [thread:$0]  %s9603_s3, 98304, %s9286_s28, [#allocation6], %s9213_s1, %s9213_s1, %s9214_s22  }
  0x45   :  { %s9215_s24 = smov [#allocation10]   ;;  %s9133_s30 = scalar_lea.hbm %s9605_s5, 6144 }
  0x46   :  { %s66_s25 = sshll.u32 %s9215_s24, 4  ;;  %p9134_p4 = scmp.ne.s32.totalorder %s9605_s5, %s9133_s30  ;;  %s67_s25 = int_to_ptr.vmem [resolvable:$true] %s66_s25 }
  0x47   :  { %p9137_p5 = scmp.lt.u32.totalorder %s9133_s30, %s9605_s5 }
  0x49   :  { %p9139_p6 = pnand %p9137_p5, %p9134_p4 }
  0x4b   :  { %9142 = shalt.err (!%p9139_p6)
}
  0x4c   :  { %s9143_s12 = scalar_lea.vmem %s67_s25, 6144  ;;  %p9148_p8 = scmp.lt.s32.totalorder %s67_s25, %s67_s25 }
  0x4d   :  { %p9144_p7 = scmp.ne.s32.totalorder %s67_s25, %s9143_s12  ;;  %p9149_p9 = scmp.lt.s32.totalorder %s9143_s12, %s9143_s12 }
  0x4f   :  { %p9150_p10 = por %p9149_p9, %p9148_p8 }
  0x51   :  { %p9151_p11 = pnand %p9150_p10, %p9144_p7 }
  0x53   :  { %9154 = shalt.err (!%p9151_p11)
}
  0x54   :  { %s9216_s3 = smov 64   ;;  %s9217_s28 = smov 4  }
  0x55   :  { %72 = dma.hbm_to_vmem [thread:$0]  %s9605_s5, 6144, %s67_s25, [#allocation9], %s9216_s3, %s9216_s3, %s9217_s28  }
  0x56   :  { %s9218_s13 = smov [#allocation11]   ;;  %s9155_s17 = scalar_lea.hbm %s9606_s6, 16 }
  0x57   :  { %s79_s14 = sshll.u32 %s9218_s13, 4  ;;  %p9156_p12 = scmp.ne.s32.totalorder %s9606_s6, %s9155_s17  ;;  %s80_s14 = int_to_ptr.vmem [resolvable:$true] %s79_s14 }
  0x58   :  { %p9159_p13 = scmp.lt.u32.totalorder %s9155_s17, %s9606_s6 }
  0x5a   :  { %p9161_p0 = pnand %p9159_p13, %p9156_p12 }
  0x5c   :  { %9164 = shalt.err (!%p9161_p0)
}
  0x5d   :  { %s9165_s1 = scalar_lea.vmem %s80_s14, 16  ;;  %s9169_s5 = scalar_lea.vmem %s80_s14, 32 }
  0x5e   :  { %p9166_p1 = scmp.ne.s32.totalorder %s80_s14, %s9165_s1  ;;  %p9170_p2 = scmp.lt.s32.totalorder %s80_s14, %s80_s14 }
  0x5f   :  { %p9171_p3 = scmp.lt.s32.totalorder %s9169_s5, %s9165_s1 }
  0x61   :  { %p9172_p4 = por %p9171_p3, %p9170_p2 }
  0x63   :  { %p9173_p5 = pnand %p9172_p4, %p9166_p1 }
  0x65   :  { %9176 = shalt.err (!%p9173_p5)
}
  0x66   :  { %82 = dma.hbm_to_vmem [thread:$0]  %s9606_s6, 16, %s80_s14, [#allocation12]  }
  0x67   :  { %9199 = dma.done.wait [#allocation3], 512  }
  0x68   :  { %9200 = vsyncadd [#allocation3], 4294966784 }
  0x69   :  { %9201 = dma.done.wait [#allocation6], 98560  }
  0x6a   :  { %9202 = vsyncadd [#allocation6], 4294868736 }
  0x6b   :  { %9203 = dma.done.wait [#allocation9], 6240  }
  0x6c   :  { %9204 = vsyncadd [#allocation9], 4294961056 }
  0x6d   :  { %9205 = dma.done.wait [#allocation12], 16  }
  0x6e   :  { %9206 = vsyncadd [#allocation12], 4294967280  ;;  %v112_v0 = vlaneseq  ;;  %v9219_v1 = vmov 1983009808   ;;  %v9220_v3 = vmov 0   ;;  %v104_v7 = vld [vmem:[#allocation2] sm:$0xff] }
  0x6f   :  { %v198_v2 = vunpack.c.l.s4 %v9219_v1  ;;  %349 = vmatprep.mubr.bf16.mxu1 %v9220_v3  ;;  %513 = vmatprep.mubr.bf16.mxu0 %v9220_v3  ;;  %vm268_vm0 = vcmask 1041408   ;;  %v105_v8 = vld [vmem:[#allocation2 + $0x8] sm:$0xff]  ;;  %v196_v9 = vcombine.high %v104_v7, %v104_v7  ;;  %v106_v11 = vld [vmem:[#allocation2 + $0x10] sm:$0xff]  ;;  %v102_v12 = vld [vmem:[%s9600_s0] sm:$0x3]  ;;  %vm264_vm1 = vcmask 31744  }
  0x70   :  { %v9343_v4 = vshrl.u32 %v112_v0, 7  ;;  %v9357_v19 = vpack.c.bf16 %v102_v12, %v102_v12  ;;  %v107_v22 = vld [vmem:[#allocation2 + $0x18] sm:$0xff]  ;;  %v213_v25 = vcombine.high %v105_v8, %v105_v8  ;;  %v7861_v30 = vld [vmem:[#allocation7 + $0x904] ss:$24 sps:$4 sm:$0xff]   ;;  %v230_v33 = vcombine.high %v106_v11, %v106_v11  ;;  %v7859_v34 = vld [vmem:[#allocation7 + $0x900] ss:$24 sps:$4 sm:$0xff]  }
  0x71   :  { %v199_v5 = vunpack.c.0.s8 %v198_v2  ;;  %v7867_v35 = vld [vmem:[#allocation7 + $0x934] ss:$24 sps:$4 sm:$0xff]   ;;  %v7865_v37 = vld [vmem:[#allocation7 + $0x930] ss:$24 sps:$4 sm:$0xff]   ;;  %v7873_v38 = vld [vmem:[#allocation7 + $0x964] ss:$24 sps:$4 sm:$0xff]   ;;  %v247_v41 = vcombine.high %v107_v22, %v107_v22 }
  0x72   :  { %v7871_v42 = vld [vmem:[#allocation7 + $0x960] ss:$24 sps:$4 sm:$0xff]   ;;  %v7879_v43 = vld [vmem:[#allocation7 + $0x994] ss:$24 sps:$4 sm:$0xff]   ;;  %v7877_v45 = vld [vmem:[#allocation7 + $0x990] ss:$24 sps:$4 sm:$0xff]  }
  0x73   :  { %v9346_v6 = vsub.s32 %v199_v5, %v9343_v4  ;;  %v7885_v46 = vld [vmem:[#allocation7 + $0x9c4] ss:$24 sps:$4 sm:$0xff]   ;;  %v7883_v49 = vld [vmem:[#allocation7 + $0x9c0] ss:$24 sps:$4 sm:$0xff]   ;;  %v7891_v50 = vld [vmem:[#allocation7 + $0x9f4] ss:$24 sps:$4 sm:$0xff]  }
  0x74   :  { %v7889_v51 = vld [vmem:[#allocation7 + $0x9f0] ss:$24 sps:$4 sm:$0xff]   ;;  %v7897_v52 = vld [vmem:[#allocation7 + $0xa24] ss:$24 sps:$4 sm:$0xff]   ;;  %v7895_v54 = vld [vmem:[#allocation7 + $0xa20] ss:$24 sps:$4 sm:$0xff]  }
  0x75   :  { %v203_v10 = vrot.slane %v104_v7, %v9346_v6  ;;  %v237_v13 = vrot.slane %v106_v11, %v9346_v6  ;;  %v210_v14 = vrot.slane %v196_v9, %v9346_v6  ;;  %v220_v17 = vrot.slane %v105_v8, %v9346_v6  ;;  %v7840_v53 = vld [vmem:[#allocation7 + $0x4] ss:$24 sps:$4 sm:$0xff]   ;;  %v7903_v56 = vld [vmem:[#allocation7 + $0xa54] ss:$24 sps:$4 sm:$0xff]   ;;  %v7901_v57 = vld [vmem:[#allocation7 + $0xa50] ss:$24 sps:$4 sm:$0xff]  }
  0x76   :  { %v254_v26 = vrot.slane %v107_v22, %v9346_v6  ;;  %v227_v29 = vrot.slane %v213_v25, %v9346_v6  ;;  %v244_v36 = vrot.slane %v230_v33, %v9346_v6  ;;  %v261_v44 = vrot.slane %v247_v41, %v9346_v6  ;;  %v7909_v58 = vld [vmem:[#allocation7 + $0xa84] ss:$24 sps:$4 sm:$0xff]   ;;  %v7838_v59 = vld [vmem:[#allocation7] ss:$24 sps:$4 sm:$0xff]   ;;  %v7843_v60 = vld [vmem:[#allocation7 + $0x34] ss:$24 sps:$4 sm:$0xff]  }
  0x77   :  { %v211_v15 = vcombine.high %v203_v10, %v203_v10  ;;  %v270_v16 = vsel %vm268_vm0, %v203_v10, 0  ;;  %v245_v18 = vcombine.high %v237_v13, %v237_v13  ;;  %v212_v20 = vcombine.high %v210_v14, %v210_v14  ;;  %v7907_v61 = vld [vmem:[#allocation7 + $0xa80] ss:$24 sps:$4 sm:$0xff]   ;;  %v7841_v62 = vld [vmem:[#allocation7 + $0x30] ss:$24 sps:$4 sm:$0xff]   ;;  %s9221_s0 = smov [#allocation13]  }
  0x78   :  { %v294_v21 = vsel %vm268_vm0, %v237_v13, 0  ;;  %v276_v23 = vsel %vm268_vm0, %v210_v14, 0  ;;  %v228_v24 = vcombine.high %v220_v17, %v220_v17  ;;  %v262_v27 = vcombine.high %v254_v26, %v254_v26  ;;  %v7846_v63 = vld [vmem:[#allocation7 + $0x64] ss:$24 sps:$4 sm:$0xff]   ;;  %v7844_v0 = vld [vmem:[#allocation7 + $0x60] ss:$24 sps:$4 sm:$0xff]  }
  0x79   :  { %6833 = vmatprep.subr.msk.bf16.mxu1 %vm268_vm0, %v211_v15  ;;  %6841 = vmatprep.subr.msk.bf16.mxu0 %vm268_vm0, %v245_v18  ;;  %v306_v28 = vsel %vm268_vm0, %v254_v26, 0  ;;  %v282_v31 = vsel %vm268_vm0, %v220_v17, 0  ;;  %v229_v32 = vcombine.high %v227_v29, %v227_v29  ;;  %v288_v39 = vsel %vm268_vm0, %v227_v29, 0  ;;  %v7849_v1 = vld [vmem:[#allocation7 + $0x94] ss:$24 sps:$4 sm:$0xff]   ;;  %s6821_s24 = sshll.u32 %s9221_s0, 4  ;;  %s6822_s24 = int_to_ptr.vmem [resolvable:$true] %s6821_s24 }
  0x7a   :  { %318 = vmatpush1.bf16.msra.mxu1 %v270_v16  ;;  %482 = vmatpush1.bf16.msra.mxu0 %v294_v21  ;;  %v246_v40 = vcombine.high %v244_v36, %v244_v36  ;;  %v300_v47 = vsel %vm268_vm0, %v244_v36, 0  ;;  %v263_v48 = vcombine.high %v261_v44, %v261_v44  ;;  %v312_v55 = vsel %vm268_vm0, %v261_v44, 0  ;;  %v7847_v2 = vld [vmem:[#allocation7 + $0x90] ss:$24 sps:$4 sm:$0xff]   ;;  %v7850_v5 = vld [vmem:[#allocation7 + $0xc0] ss:$24 sps:$4 sm:$0xff]   ;;  %p9182_p7 = scmp.lt.s32.totalorder %s6822_s24, %s6822_s24 }
  0x7b   :  { %6835 = vmatprep.subr.msk.bf16.mxu1 %vm268_vm0, %v212_v20  ;;  %6845 = vmatprep.subr.msk.bf16.mxu0 %vm268_vm0, %v262_v27  ;;  %v7855_v6 = vld [vmem:[#allocation7 + $0xf4] ss:$24 sps:$4 sm:$0xff]   ;;  %v7853_v7 = vld [vmem:[#allocation7 + $0xf0] ss:$24 sps:$4 sm:$0xff]   ;;  %v7858_v8 = vld [vmem:[#allocation7 + $0x124] ss:$24 sps:$4 sm:$0xff]  }
  0x7c   :  { %v7856_v9 = vld [vmem:[#allocation7 + $0x120] ss:$24 sps:$4 sm:$0xff]   ;;  %v7864_v10 = vld [vmem:[#allocation7 + $0x154] ss:$24 sps:$4 sm:$0xff]   ;;  %v7862_v11 = vld [vmem:[#allocation7 + $0x150] ss:$24 sps:$4 sm:$0xff]  }
  0x7d   :  { %6834 = vmatmul.mubr.msk.bf16.vlgmr.msra.gmra.mrb[0].mxu1 %vm264_vm1, %v9357_v19  ;;  %6842 = vmatmul.mubr.msk.bf16.vlgmr.msra.gmra.mrb[0].mxu0 %vm264_vm1, %v9357_v19  ;;  %v7870_v12 = vld [vmem:[#allocation7 + $0x184] ss:$24 sps:$4 sm:$0xff]   ;;  %v7868_v13 = vld [vmem:[#allocation7 + $0x180] ss:$24 sps:$4 sm:$0xff]   ;;  %v7876_v14 = vld [vmem:[#allocation7 + $0x1b4] ss:$24 sps:$4 sm:$0xff]  }
  0x7e   :  { %359 = vmatpush1.bf16.msra.mxu1 %v276_v23  ;;  %390 = vmatprep.mubr.bf16.mxu1 %v9220_v3  ;;  %v7874_v15 = vld [vmem:[#allocation7 + $0x1b0] ss:$24 sps:$4 sm:$0xff]   ;;  %v7882_v16 = vld [vmem:[#allocation7 + $0x1e4] ss:$24 sps:$4 sm:$0xff]   ;;  %v7880_v17 = vld [vmem:[#allocation7 + $0x1e0] ss:$24 sps:$4 sm:$0xff]  }
  0x7f   :  { %6837 = vmatprep.subr.msk.bf16.mxu1 %vm268_vm0, %v228_v24  ;;  %595 = vmatprep.mubr.bf16.mxu0 %v9220_v3  ;;  %v7888_v18 = vld [vmem:[#allocation7 + $0x214] ss:$24 sps:$4 sm:$0xff]   ;;  %v7894_v20 = vld [vmem:[#allocation7 + $0x244] ss:$24 sps:$4 sm:$0xff]   ;;  %v7892_v21 = vld [vmem:[#allocation7 + $0x240] ss:$24 sps:$4 sm:$0xff]  }
  0x80   :  { %564 = vmatpush1.bf16.msra.mxu0 %v306_v28  ;;  %v7915_v22 = vld [vmem:[#allocation7 + $0xab4] ss:$24 sps:$4 sm:$0xff]   ;;  %v7913_v24 = vld [vmem:[#allocation7 + $0xab0] ss:$24 sps:$4 sm:$0xff]   ;;  %v7921_v26 = vld [vmem:[#allocation7 + $0xae4] ss:$24 sps:$4 sm:$0xff]  }
  0x81   :  { %5424 = vmatprep.subr.bf16.mxu0 %v7861_v30  ;;  %v7900_v23 = vld [vmem:[#allocation7 + $0x274] ss:$24 sps:$4 sm:$0xff]   ;;  %v7898_v25 = vld [vmem:[#allocation7 + $0x270] ss:$24 sps:$4 sm:$0xff]   ;;  %v7906_v27 = vld [vmem:[#allocation7 + $0x2a4] ss:$24 sps:$4 sm:$0xff]  }
  0x82   :  { %v7919_v28 = vld [vmem:[#allocation7 + $0xae0] ss:$24 sps:$4 sm:$0xff]   ;;  %v7927_v30 = vld [vmem:[#allocation7 + $0xb14] ss:$24 sps:$4 sm:$0xff]   ;;  %v7910_v33 = vld [vmem:[#allocation7 + $0x2d0] ss:$24 sps:$4 sm:$0xff]  }
  0x83   :  { %v7904_v29 = vld [vmem:[#allocation7 + $0x2a0] ss:$24 sps:$4 sm:$0xff]   ;;  %v7951_v41 = vld [vmem:[#allocation7 + $0xbd4] ss:$24 sps:$4 sm:$0xff]   ;;  %v9400_v44 = vsub.s32 0, %v9343_v4  ;;  %s9177_s25 = scalar_lea.vmem %s6822_s24, 32 }
  0x84   :  { %v7931_v36 = vld [vmem:[#allocation7 + $0xb40] ss:$24 sps:$4 sm:$0xff]   ;;  %p9178_p6 = scmp.ne.s32.totalorder %s6822_s24, %s9177_s25  ;;  %p9183_p8 = scmp.lt.s32.totalorder %s9177_s25, %s9177_s25 }
  0x85   :  { %6836 = vmatmul.mubr.msk.bf16.vlgmr.msra.gmra.mrb[4].mxu1 %vm264_vm1, %v9357_v19  ;;  %6846 = vmatmul.mubr.msk.bf16.vlgmr.msra.gmra.mrb[4].mxu0 %vm264_vm1, %v9357_v19 }
  0x86   :  { %400 = vmatpush1.bf16.msra.mxu1 %v282_v31  ;;  %431 = vmatprep.mubr.bf16.mxu1 %v9220_v3  ;;  %v7912_v31 = vld [vmem:[#allocation7 + $0x2d4] ss:$24 sps:$4 sm:$0xff]   ;;  %p9184_p9 = por %p9183_p8, %p9182_p7 }
  0x87   :  { %6839 = vmatprep.subr.msk.bf16.mxu1 %vm268_vm0, %v229_v32  ;;  %5425 = vmatpush1.bf16.msra.mxu0 %v7859_v34  ;;  %v7925_v32 = vld [vmem:[#allocation7 + $0xb10] ss:$24 sps:$4 sm:$0xff]   ;;  %v7918_v34 = vld [vmem:[#allocation7 + $0x304] ss:$24 sps:$4 sm:$0xff]  }
  0x88   :  { %5426 = vmatprep.subr.bf16.mxu0 %v7867_v35  ;;  %v7933_v35 = vld [vmem:[#allocation7 + $0xb44] ss:$24 sps:$4 sm:$0xff]   ;;  %p9185_p10 = pnand %p9184_p9, %p9178_p6 }
  0x8b   :  { %5427 = vmatpush1.bf16.msra.mxu0 %v7865_v37  ;;  %v7939_v37 = vld [vmem:[#allocation7 + $0xb74] ss:$24 sps:$4 sm:$0xff]  }
  0x8c   :  { %5428 = vmatprep.subr.bf16.mxu0 %v7873_v38  ;;  %v7937_v38 = vld [vmem:[#allocation7 + $0xb70] ss:$24 sps:$4 sm:$0xff]  }
  0x8d   :  { %6838 = vmatmul.mubr.msk.bf16.vlgmr.msra.gmra.mrb[8].mxu1 %vm264_vm1, %v9357_v19 }
  0x8e   :  { %441 = vmatpush1.bf16.msra.mxu1 %v288_v39  ;;  %472 = vmatprep.mubr.bf16.mxu1 %v9220_v3  ;;  %v7943_v39 = vld [vmem:[#allocation7 + $0xba0] ss:$24 sps:$4 sm:$0xff]  }
  0x8f   :  { %6843 = vmatprep.subr.msk.bf16.mxu1 %vm268_vm0, %v246_v40  ;;  %5429 = vmatpush1.bf16.msra.mxu0 %v7871_v42  ;;  %v7945_v40 = vld [vmem:[#allocation7 + $0xba4] ss:$24 sps:$4 sm:$0xff]   ;;  %v7949_v42 = vld [vmem:[#allocation7 + $0xbd0] ss:$24 sps:$4 sm:$0xff]  }
  0x90   :  { %5430 = vmatprep.subr.bf16.mxu0 %v7879_v43  ;;  %v7957_v43 = vld [vmem:[#allocation7 + $0xc04] ss:$24 sps:$4 sm:$0xff]  }
  0x93   :  { %5431 = vmatpush1.bf16.msra.mxu0 %v7877_v45  ;;  %v9402_v45 = vld [vmem:[#allocation5] sm:$0xff] }
  0x94   :  { %5432 = vmatprep.subr.bf16.mxu0 %v7885_v46  ;;  %v9405_v46 = vsub.s32 1, %v9343_v4 }
  0x95   :  { %6840 = vmatmul.mubr.msk.bf16.vlgmr.msra.gmra.mrb[12].mxu1 %vm264_vm1, %v9357_v19 }
  0x96   :  { %523 = vmatpush1.bf16.msra.mxu1 %v300_v47  ;;  %554 = vmatprep.mubr.bf16.mxu1 %v9220_v3  ;;  %v115_v47 = vrot.slane %v9402_v45, %v9400_v44 }
  0x97   :  { %6847 = vmatprep.subr.msk.bf16.mxu1 %vm268_vm0, %v263_v48  ;;  %5433 = vmatpush1.bf16.msra.mxu0 %v7883_v49  ;;  %v119_v48 = vrot.slane %v9402_v45, %v9405_v46 }
  0x98   :  { %5434 = vmatprep.subr.bf16.mxu0 %v7891_v50 }
  0x9b   :  { %5435 = vmatpush1.bf16.msra.mxu0 %v7889_v51 }
  0x9c   :  { %5436 = vmatprep.subr.bf16.mxu0 %v7897_v52 }
  0x9d   :  { %6844 = vmatmul.mubr.msk.bf16.vlgmr.msra.gmra.mrb[16].mxu1 %vm264_vm1, %v9357_v19 }
  0x9e   :  { %605 = vmatpush1.bf16.msra.mxu1 %v312_v55  ;;  %636 = vmatprep.mubr.bf16.mxu1 %v9220_v3  ;;  %v7852_v3 = vld [vmem:[#allocation7 + $0xc4] ss:$24 sps:$4 sm:$0xff]   ;;  %v9412_v55 = vsub.s32 3, %v9343_v4 }
  0x9f   :  { %5301 = vmatprep.subr.bf16.mxu1 %v7840_v53  ;;  %5437 = vmatpush1.bf16.msra.mxu0 %v7895_v54  ;;  %v7916_v54 = vld [vmem:[#allocation7 + $0x300] ss:$24 sps:$4 sm:$0xff]  }
  0xa0   :  { %5438 = vmatprep.subr.bf16.mxu0 %v7903_v56 }
  0xa3   :  { %5439 = vmatpush1.bf16.msra.mxu0 %v7901_v57 }
  0xa4   :  { %5440 = vmatprep.subr.bf16.mxu0 %v7909_v58  ;;  %v7924_v58 = vld [vmem:[#allocation7 + $0x334] ss:$24 sps:$4 sm:$0xff]  }
  0xa5   :  { %6848 = vmatmul.mubr.msk.bf16.vlgmr.msra.gmra.mrb[20].mxu1 %vm264_vm1, %v9357_v19  ;;  %v7886_v19 = vld [vmem:[#allocation7 + $0x210] ss:$24 sps:$4 sm:$0xff]  }
  0xa6   :  { %5302 = vmatpush1.bf16.msra.mxu1 %v7838_v59 }
  0xa7   :  { %5303 = vmatprep.subr.bf16.mxu1 %v7843_v60  ;;  %5441 = vmatpush1.bf16.msra.mxu0 %v7907_v61 }
  0xa8   :  { %5442 = vmatprep.subr.bf16.mxu0 %v7915_v22 }
  0xaa   :  { %5304 = vmatpush1.bf16.msra.mxu1 %v7841_v62 }
  0xab   :  { %5305 = vmatprep.subr.bf16.mxu1 %v7846_v63  ;;  %5443 = vmatpush1.bf16.msra.mxu0 %v7913_v24 }
  0xac   :  { %5444 = vmatprep.subr.bf16.mxu0 %v7921_v26 }
  0xae   :  { %5306 = vmatpush1.bf16.msra.mxu1 %v7844_v0  ;;  %v127_v0 = vrot.slane %v9402_v45, %v9412_v55 }
  0xaf   :  { %5307 = vmatprep.subr.bf16.mxu1 %v7849_v1  ;;  %5445 = vmatpush1.bf16.msra.mxu0 %v7919_v28  ;;  %v7922_v1 = vld [vmem:[#allocation7 + $0x330] ss:$24 sps:$4 sm:$0xff]  }
  0xb0   :  { %5446 = vmatprep.subr.bf16.mxu0 %v7927_v30  ;;  %v7954_v30 = vld [vmem:[#allocation7 + $0x424] ss:$24 sps:$4 sm:$0xff]  }
  0xb2   :  { %5308 = vmatpush1.bf16.msra.mxu1 %v7847_v2 }
  0xb3   :  { %5309 = vmatprep.subr.bf16.mxu1 %v7852_v3  ;;  %5447 = vmatpush1.bf16.msra.mxu0 %v7925_v32 }
  0xb4   :  { %5448 = vmatprep.subr.bf16.mxu0 %v7933_v35 }
  0xb6   :  { %5310 = vmatpush1.bf16.msra.mxu1 %v7850_v5  ;;  %v7930_v5 = vld [vmem:[#allocation7 + $0x364] ss:$24 sps:$4 sm:$0xff]  }
  0xb7   :  { %5311 = vmatprep.subr.bf16.mxu1 %v7855_v6  ;;  %5449 = vmatpush1.bf16.msra.mxu0 %v7931_v36 }
  0xb8   :  { %5450 = vmatprep.subr.bf16.mxu0 %v7939_v37  ;;  %v7960_v37 = vld [vmem:[#allocation7 + $0x454] ss:$24 sps:$4 sm:$0xff]  }
  0xba   :  { %5312 = vmatpush1.bf16.msra.mxu1 %v7853_v7 }
  0xbb   :  { %5313 = vmatprep.subr.bf16.mxu1 %v7858_v8  ;;  %5451 = vmatpush1.bf16.msra.mxu0 %v7937_v38  ;;  %v7928_v8 = vld [vmem:[#allocation7 + $0x360] ss:$24 sps:$4 sm:$0xff]   ;;  %v7963_v38 = vld [vmem:[#allocation7 + $0xc34] ss:$24 sps:$4 sm:$0xff]  }
  0xbc   :  { %5452 = vmatprep.subr.bf16.mxu0 %v7945_v40 }
  0xbe   :  { %5314 = vmatpush1.bf16.msra.mxu1 %v7856_v9 }
  0xbf   :  { %5315 = vmatprep.subr.bf16.mxu1 %v7864_v10  ;;  %5453 = vmatpush1.bf16.msra.mxu0 %v7943_v39 }
  0xc0   :  { %5454 = vmatprep.subr.bf16.mxu0 %v7951_v41 }
  0xc2   :  { %5316 = vmatpush1.bf16.msra.mxu1 %v7862_v11  ;;  %v7936_v11 = vld [vmem:[#allocation7 + $0x394] ss:$24 sps:$4 sm:$0xff]  }
  0xc3   :  { %5317 = vmatprep.subr.bf16.mxu1 %v7870_v12  ;;  %5455 = vmatpush1.bf16.msra.mxu0 %v7949_v42  ;;  %v7934_v12 = vld [vmem:[#allocation7 + $0x390] ss:$24 sps:$4 sm:$0xff]  }
  0xc4   :  { %5465 = vmatprep.subr.bf16.mxu0 %v7957_v43  ;;  %v7958_v42 = vld [vmem:[#allocation7 + $0x450] ss:$24 sps:$4 sm:$0xff]  }
  0xc5   :  { %v7961_v43 = vld [vmem:[#allocation7 + $0xc30] ss:$24 sps:$4 sm:$0xff]  }
  0xc6   :  { %5318 = vmatpush1.bf16.msra.mxu1 %v7868_v13 }
  0xc7   :  { %5319 = vmatprep.subr.bf16.mxu1 %v7876_v14 }
  0xca   :  { %5320 = vmatpush1.bf16.msra.mxu1 %v7874_v15  ;;  %v7942_v15 = vld [vmem:[#allocation7 + $0x3c4] ss:$24 sps:$4 sm:$0xff]  }
  0xcb   :  { %5321 = vmatprep.subr.bf16.mxu1 %v7882_v16  ;;  %v138_v16 = vsub.s32 6, %v9343_v4 }
  0xcd   :  { %v139_v22 = vrot.slane %v9402_v45, %v138_v16 }
  0xce   :  { %5322 = vmatpush1.bf16.msra.mxu1 %v7880_v17 }
  0xcf   :  { %5323 = vmatprep.subr.bf16.mxu1 %v7888_v18  ;;  %v7940_v18 = vld [vmem:[#allocation7 + $0x3c0] ss:$24 sps:$4 sm:$0xff]  }
  0xd2   :  { %5324 = vmatpush1.bf16.msra.mxu1 %v7886_v19  ;;  %v142_v19 = vsub.s32 7, %v9343_v4 }
  0xd3   :  { %5325 = vmatprep.subr.bf16.mxu1 %v7894_v20  ;;  %v9435_v20 = vld [vmem:[#allocation5 + $0x8] sm:$0xff] }
  0xd4   :  { %v143_v24 = vrot.slane %v9402_v45, %v142_v19  ;;  %v151_v26 = vrot.slane %v9435_v20, %v9405_v46 }
  0xd6   :  { %5326 = vmatpush1.bf16.msra.mxu1 %v7892_v21 }
  0xd7   :  { %5327 = vmatprep.subr.bf16.mxu1 %v7900_v23  ;;  %v7948_v23 = vld [vmem:[#allocation7 + $0x3f4] ss:$24 sps:$4 sm:$0xff]  }
  0xda   :  { %5328 = vmatpush1.bf16.msra.mxu1 %v7898_v25  ;;  %v7946_v25 = vld [vmem:[#allocation7 + $0x3f0] ss:$24 sps:$4 sm:$0xff]  }
  0xdb   :  { %5329 = vmatprep.subr.bf16.mxu1 %v7906_v27 }
  0xde   :  { %5330 = vmatpush1.bf16.msra.mxu1 %v7904_v29 }
  0xdf   :  { %5331 = vmatprep.subr.bf16.mxu1 %v7912_v31 }
  0xe2   :  { %5332 = vmatpush1.bf16.msra.mxu1 %v7910_v33  ;;  %v7952_v33 = vld [vmem:[#allocation7 + $0x420] ss:$24 sps:$4 sm:$0xff]  }
  0xe3   :  { %5342 = vmatprep.subr.bf16.mxu1 %v7918_v34  ;;  %v7955_v34 = vld [vmem:[#allocation7 + $0xc00] ss:$24 sps:$4 sm:$0xff]  }
 0x150   :  { %v351_v49 = vpop.f32.mrb[0].mxu1  ;;  %v9414_v56 = vpop.f32.mrb[0].mxu0 }
 0x151   :  { %v352_v50 = vadd.f32 %v351_v49, %v115_v47  ;;  %v353_v51 = vpop.f32.mrb[1].mxu1  ;;  %v517_v59 = vpop.f32.mrb[1].mxu0  ;;  %v7969_v49 = vld [vmem:[#allocation7 + $0xc64] ss:$24 sps:$4 sm:$0xff]  }
 0x152   :  { %v354_v52 = vadd.f32 %v353_v51, %v119_v48  ;;  %v355_v53 = vpop.f32.mrb[2].mxu1  ;;  %v519_v61 = vpop.f32.mrb[2].mxu0  ;;  %v518_v35 = vadd.f32 %v517_v59, %v151_v26  ;;  %v7966_v48 = vld [vmem:[#allocation7 + $0x484] ss:$24 sps:$4 sm:$0xff]   ;;  %v7964_v51 = vld [vmem:[#allocation7 + $0x480] ss:$24 sps:$4 sm:$0xff]  }
 0x153   :  { %v356_v57 = vpop.f32.mrb[3].mxu1  ;;  %v9418_v62 = vpack.c.bf16 %v352_v50, %v352_v50  ;;  %v520_v63 = vpop.f32.mrb[3].mxu0  ;;  %v7970_v59 = vld [vmem:[#allocation7 + $0x4b0] ss:$24 sps:$4 sm:$0xff]  }
 0x154   :  { %v9416_v60 = vpack.c.bf16 %v354_v52, %v354_v52  ;;  %v9450_v41 = vpack.c.bf16 %v518_v35, %v518_v35  ;;  %v7967_v52 = vld [vmem:[#allocation7 + $0xc60] ss:$24 sps:$4 sm:$0xff]   ;;  %v7972_v57 = vld [vmem:[#allocation7 + $0x4b4] ss:$24 sps:$4 sm:$0xff]   ;;  %v7973_v61 = vld [vmem:[#allocation7 + $0xc90] ss:$24 sps:$4 sm:$0xff]  }
 0x155   :  { %v7978_v63 = vld [vmem:[#allocation7 + $0x4e4] ss:$24 sps:$4 sm:$0xff]   ;;  %v7997_v26 = vld [vmem:[#allocation7 + $0xd50] ss:$24 sps:$4 sm:$0xff]   ;;  %v8011_v35 = vld [vmem:[#allocation7 + $0xdb4] ss:$24 sps:$4 sm:$0xff]  }
 0x156   :  { %5333 = vmatprep.mubr.bf16.mxu1 %v9416_v60 }
 0x157   :  { %5334 = vmatmul.mubr.bf16.vlgmr.msra.gmra.mrb[24].mxu1 %v9418_v62 }
 0x158   :  { %5343 = vmatpush1.bf16.msra.mxu1 %v7916_v54  ;;  %v9424_v2 = vpop.f32.mrb[4].mxu1 }
 0x159   :  { %v394_v3 = vpop.f32.mrb[5].mxu1  ;;  %5344 = vmatprep.subr.bf16.mxu1 %v7924_v58  ;;  %v7975_v58 = vld [vmem:[#allocation7 + $0xc94] ss:$24 sps:$4 sm:$0xff]  }
 0x15a   :  { %v395_v6 = vadd.f32 %v394_v3, %v127_v0  ;;  %v396_v7 = vpop.f32.mrb[6].mxu1  ;;  %v7981_v0 = vld [vmem:[#allocation7 + $0xcc4] ss:$24 sps:$4 sm:$0xff]   ;;  %v7979_v3 = vld [vmem:[#allocation7 + $0xcc0] ss:$24 sps:$4 sm:$0xff]  }
 0x15b   :  { %v397_v9 = vpop.f32.mrb[7].mxu1  ;;  %v7982_v7 = vld [vmem:[#allocation7 + $0x510] ss:$24 sps:$4 sm:$0xff]  }
 0x15c   :  { %v9426_v10 = vpack.c.bf16 %v395_v6, %v395_v6  ;;  %5345 = vmatpush1.bf16.msra.mxu1 %v7922_v1  ;;  %v7976_v1 = vld [vmem:[#allocation7 + $0x4e0] ss:$24 sps:$4 sm:$0xff]   ;;  %v7987_v6 = vld [vmem:[#allocation7 + $0xcf4] ss:$24 sps:$4 sm:$0xff]   ;;  %v7990_v9 = vld [vmem:[#allocation7 + $0x544] ss:$24 sps:$4 sm:$0xff]  }
 0x15d   :  { %5346 = vmatprep.subr.bf16.mxu1 %v7930_v5  ;;  %v7984_v5 = vld [vmem:[#allocation7 + $0x514] ss:$24 sps:$4 sm:$0xff]  }
 0x15e   :  { %5374 = vmatprep.mubr.bf16.mxu1 %v9426_v10 }
 0x160   :  { %5347 = vmatpush1.bf16.msra.mxu1 %v7928_v8  ;;  %v9429_v13 = vpop.f32.mrb[8].mxu1  ;;  %v7985_v8 = vld [vmem:[#allocation7 + $0xcf0] ss:$24 sps:$4 sm:$0xff]  }
 0x161   :  { %v9431_v14 = vpop.f32.mrb[9].mxu1  ;;  %5348 = vmatprep.subr.bf16.mxu1 %v7936_v11  ;;  %v7993_v11 = vld [vmem:[#allocation7 + $0xd24] ss:$24 sps:$4 sm:$0xff]  }
 0x162   :  { %v437_v17 = vpop.f32.mrb[10].mxu1 }
 0x163   :  { %v438_v21 = vpop.f32.mrb[11].mxu1  ;;  %v7991_v17 = vld [vmem:[#allocation7 + $0xd20] ss:$24 sps:$4 sm:$0xff]  }
 0x164   :  { %5349 = vmatpush1.bf16.msra.mxu1 %v7934_v12  ;;  %v9458_v12 = vpop.f32.mrb[4].mxu0 }
 0x165   :  { %5350 = vmatprep.subr.bf16.mxu1 %v7942_v15  ;;  %v7988_v15 = vld [vmem:[#allocation7 + $0x540] ss:$24 sps:$4 sm:$0xff]  }
 0x168   :  { %5351 = vmatpush1.bf16.msra.mxu1 %v7940_v18  ;;  %v474_v27 = vpop.f32.mrb[12].mxu1  ;;  %v9460_v18 = vpop.f32.mrb[5].mxu0 }
 0x169   :  { %v475_v28 = vadd.f32 %v474_v27, %v139_v22  ;;  %v476_v29 = vpop.f32.mrb[13].mxu1  ;;  %5352 = vmatprep.subr.bf16.mxu1 %v7948_v23  ;;  %v601_v21 = vpop.f32.mrb[6].mxu0  ;;  %v7996_v23 = vld [vmem:[#allocation7 + $0x574] ss:$24 sps:$4 sm:$0xff]   ;;  %v9463_v27 = vsub.s32 2, %v9343_v4 }
 0x16a   :  { %v477_v31 = vadd.f32 %v476_v29, %v143_v24  ;;  %v478_v32 = vpop.f32.mrb[14].mxu1  ;;  %v602_v22 = vpop.f32.mrb[7].mxu0  ;;  %v7999_v24 = vld [vmem:[#allocation7 + $0xd54] ss:$24 sps:$4 sm:$0xff]   ;;  %v8005_v29 = vld [vmem:[#allocation7 + $0xd84] ss:$24 sps:$4 sm:$0xff]  }
 0x16b   :  { %v479_v36 = vpop.f32.mrb[15].mxu1  ;;  %v9447_v40 = vpack.c.bf16 %v475_v28, %v475_v28  ;;  %v8002_v28 = vld [vmem:[#allocation7 + $0x5a4] ss:$24 sps:$4 sm:$0xff]   ;;  %v8003_v32 = vld [vmem:[#allocation7 + $0xd80] ss:$24 sps:$4 sm:$0xff]   ;;  %v159_v22 = vrot.slane %v9435_v20, %v9412_v55 }
 0x16c   :  { %v9445_v39 = vpack.c.bf16 %v477_v31, %v477_v31  ;;  %5353 = vmatpush1.bf16.msra.mxu1 %v7946_v25  ;;  %v7994_v25 = vld [vmem:[#allocation7 + $0x570] ss:$24 sps:$4 sm:$0xff]   ;;  %v8000_v31 = vld [vmem:[#allocation7 + $0x5a0] ss:$24 sps:$4 sm:$0xff]   ;;  %v8047_v21 = vld [vmem:[#allocation7 + $0xed4] ss:$24 sps:$4 sm:$0xff]  }
 0x16d   :  { %5354 = vmatprep.subr.bf16.mxu1 %v7954_v30  ;;  %v9466_v30 = vsub.s32 5, %v9343_v4 }
 0x16e   :  { %5456 = vmatprep.mubr.bf16.mxu0 %v9445_v39 }
 0x16f   :  { %5457 = vmatmul.mubr.bf16.vlgmr.msra.gmra.mrb[8].mxu0 %v9447_v40  ;;  %v135_v36 = vrot.slane %v9402_v45, %v9466_v30 }
 0x170   :  { %5355 = vmatpush1.bf16.msra.mxu1 %v7952_v33  ;;  %5466 = vmatpush1.bf16.msra.mxu0 %v7955_v34  ;;  %v9453_v47 = vpop.f32.mrb[16].mxu1  ;;  %v123_v33 = vrot.slane %v9402_v45, %v9463_v27  ;;  %v8008_v34 = vld [vmem:[#allocation7 + $0x5d4] ss:$24 sps:$4 sm:$0xff]  }
 0x171   :  { %5356 = vmatprep.subr.bf16.mxu1 %v7960_v37  ;;  %5467 = vmatprep.subr.bf16.mxu0 %v7963_v38  ;;  %v9455_v50 = vpop.f32.mrb[17].mxu1  ;;  %v8006_v37 = vld [vmem:[#allocation7 + $0x5d0] ss:$24 sps:$4 sm:$0xff]   ;;  %v8020_v45 = vld [vmem:[#allocation7 + $0x634] ss:$24 sps:$4 sm:$0xff]  }
 0x172   :  { %5497 = vmatprep.mubr.bf16.mxu0 %v9450_v41  ;;  %v560_v53 = vpop.f32.mrb[18].mxu1  ;;  %v8009_v38 = vld [vmem:[#allocation7 + $0xdb0] ss:$24 sps:$4 sm:$0xff]  }
 0x173   :  { %v561_v54 = vpop.f32.mrb[19].mxu1  ;;  %v8015_v53 = vld [vmem:[#allocation7 + $0xde0] ss:$24 sps:$4 sm:$0xff]  }
 0x174   :  { %5357 = vmatpush1.bf16.msra.mxu1 %v7958_v42  ;;  %5468 = vmatpush1.bf16.msra.mxu0 %v7961_v43  ;;  %v393_v42 = vadd.f32 %v9424_v2, %v123_v33  ;;  %v8014_v43 = vld [vmem:[#allocation7 + $0x604] ss:$24 sps:$4 sm:$0xff]   ;;  %v8018_v2 = vld [vmem:[#allocation7 + $0x630] ss:$24 sps:$4 sm:$0xff]  }
 0x175   :  { %5358 = vmatprep.subr.bf16.mxu1 %v7966_v48  ;;  %5469 = vmatprep.subr.bf16.mxu0 %v7969_v49  ;;  %v8017_v48 = vld [vmem:[#allocation7 + $0xde4] ss:$24 sps:$4 sm:$0xff]   ;;  %v436_v49 = vadd.f32 %v9431_v14, %v135_v36  ;;  %v8021_v14 = vld [vmem:[#allocation7 + $0xe10] ss:$24 sps:$4 sm:$0xff]  }
 0x176   :  { %v8062_v36 = vld [vmem:[#allocation7 + $0x784] ss:$24 sps:$4 sm:$0xff]  }
 0x177   :  { %v9476_v54 = vpack.c.bf16 %v436_v49, %v436_v49  ;;  %v8069_v49 = vld [vmem:[#allocation7 + $0xf90] ss:$24 sps:$4 sm:$0xff]  }
 0x178   :  { %5359 = vmatpush1.bf16.msra.mxu1 %v7964_v51  ;;  %5470 = vmatpush1.bf16.msra.mxu0 %v7967_v52  ;;  %v8012_v51 = vld [vmem:[#allocation7 + $0x600] ss:$24 sps:$4 sm:$0xff]   ;;  %v9474_v52 = vpack.c.bf16 %v393_v42, %v393_v42  ;;  %v8068_v42 = vld [vmem:[#allocation7 + $0x7b4] ss:$24 sps:$4 sm:$0xff]  }
 0x179   :  { %5360 = vmatprep.subr.bf16.mxu1 %v7972_v57  ;;  %5471 = vmatprep.subr.bf16.mxu0 %v7975_v58  ;;  %v8023_v57 = vld [vmem:[#allocation7 + $0xe14] ss:$24 sps:$4 sm:$0xff]   ;;  %v8026_v58 = vld [vmem:[#allocation7 + $0x664] ss:$24 sps:$4 sm:$0xff]  }
 0x17c   :  { %5361 = vmatpush1.bf16.msra.mxu1 %v7970_v59  ;;  %5472 = vmatpush1.bf16.msra.mxu0 %v7973_v61  ;;  %v8024_v59 = vld [vmem:[#allocation7 + $0x660] ss:$24 sps:$4 sm:$0xff]   ;;  %v8029_v61 = vld [vmem:[#allocation7 + $0xe44] ss:$24 sps:$4 sm:$0xff]  }
 0x17d   :  { %5362 = vmatprep.subr.bf16.mxu1 %v7978_v63  ;;  %5473 = vmatprep.subr.bf16.mxu0 %v7981_v0  ;;  %v8027_v63 = vld [vmem:[#allocation7 + $0xe40] ss:$24 sps:$4 sm:$0xff]   ;;  %v8032_v0 = vld [vmem:[#allocation7 + $0x694] ss:$24 sps:$4 sm:$0xff]  }
 0x180   :  { %5363 = vmatpush1.bf16.msra.mxu1 %v7976_v1  ;;  %5474 = vmatpush1.bf16.msra.mxu0 %v7979_v3  ;;  %v8030_v1 = vld [vmem:[#allocation7 + $0x690] ss:$24 sps:$4 sm:$0xff]   ;;  %v8035_v3 = vld [vmem:[#allocation7 + $0xe74] ss:$24 sps:$4 sm:$0xff]  }
 0x181   :  { %5364 = vmatprep.subr.bf16.mxu1 %v7984_v5  ;;  %5475 = vmatprep.subr.bf16.mxu0 %v7987_v6  ;;  %v8033_v5 = vld [vmem:[#allocation7 + $0xe70] ss:$24 sps:$4 sm:$0xff]   ;;  %v8038_v6 = vld [vmem:[#allocation7 + $0x6c4] ss:$24 sps:$4 sm:$0xff]  }
 0x184   :  { %5365 = vmatpush1.bf16.msra.mxu1 %v7982_v7  ;;  %5476 = vmatpush1.bf16.msra.mxu0 %v7985_v8  ;;  %v8036_v7 = vld [vmem:[#allocation7 + $0x6c0] ss:$24 sps:$4 sm:$0xff]   ;;  %v8041_v8 = vld [vmem:[#allocation7 + $0xea4] ss:$24 sps:$4 sm:$0xff]  }
 0x185   :  { %5366 = vmatprep.subr.bf16.mxu1 %v7990_v9  ;;  %5477 = vmatprep.subr.bf16.mxu0 %v7993_v11  ;;  %v147_v9 = vrot.slane %v9435_v20, %v9400_v44  ;;  %v8039_v11 = vld [vmem:[#allocation7 + $0xea0] ss:$24 sps:$4 sm:$0xff]   ;;  %v8059_v20 = vld [vmem:[#allocation7 + $0xf34] ss:$24 sps:$4 sm:$0xff]  }
 0x188   :  { %5367 = vmatpush1.bf16.msra.mxu1 %v7988_v15  ;;  %5478 = vmatpush1.bf16.msra.mxu0 %v7991_v17  ;;  %v8044_v15 = vld [vmem:[#allocation7 + $0x6f4] ss:$24 sps:$4 sm:$0xff]   ;;  %v8042_v17 = vld [vmem:[#allocation7 + $0x6f0] ss:$24 sps:$4 sm:$0xff]  }
 0x189   :  { %5368 = vmatprep.subr.bf16.mxu1 %v7996_v23  ;;  %5479 = vmatprep.subr.bf16.mxu0 %v7999_v24  ;;  %v516_v23 = vadd.f32 %v9414_v56, %v147_v9  ;;  %v8045_v24 = vld [vmem:[#allocation7 + $0xed0] ss:$24 sps:$4 sm:$0xff]   ;;  %v8098_v9 = vld [vmem:[#allocation7 + $0x8a4] ss:$24 sps:$4 sm:$0xff]  }
 0x18b   :  { %v9486_v33 = vpack.c.bf16 %v516_v23, %v516_v23  ;;  %v8104_v23 = vld [vmem:[#allocation7 + $0x8d4] ss:$24 sps:$4 sm:$0xff]  }
 0x18c   :  { %5369 = vmatpush1.bf16.msra.mxu1 %v7994_v25  ;;  %5480 = vmatpush1.bf16.msra.mxu0 %v7997_v26  ;;  %v8050_v25 = vld [vmem:[#allocation7 + $0x724] ss:$24 sps:$4 sm:$0xff]   ;;  %v8048_v26 = vld [vmem:[#allocation7 + $0x720] ss:$24 sps:$4 sm:$0xff]  }
 0x18d   :  { %5370 = vmatprep.subr.bf16.mxu1 %v8002_v28  ;;  %5481 = vmatprep.subr.bf16.mxu0 %v8005_v29  ;;  %v8053_v28 = vld [vmem:[#allocation7 + $0xf04] ss:$24 sps:$4 sm:$0xff]   ;;  %v559_v29 = vadd.f32 %v9455_v50, %v159_v22  ;;  %v8060_v50 = vld [vmem:[#allocation7 + $0x780] ss:$24 sps:$4 sm:$0xff]  }
 0x18e   :  { %v8099_v22 = vld [vmem:[#allocation7 + $0x1080] ss:$24 sps:$4 sm:$0xff]  }
 0x18f   :  { %v9488_v56 = vpack.c.bf16 %v559_v29, %v559_v29  ;;  %v8113_v29 = vld [vmem:[#allocation7 + $0xc] ss:$24 sps:$4 sm:$0xff]  }
 0x190   :  { %5371 = vmatpush1.bf16.msra.mxu1 %v8000_v31  ;;  %5482 = vmatpush1.bf16.msra.mxu0 %v8003_v32  ;;  %v8051_v31 = vld [vmem:[#allocation7 + $0xf00] ss:$24 sps:$4 sm:$0xff]   ;;  %v8056_v32 = vld [vmem:[#allocation7 + $0x754] ss:$24 sps:$4 sm:$0xff]  }
 0x191   :  { %5372 = vmatprep.subr.bf16.mxu1 %v8008_v34  ;;  %5483 = vmatprep.subr.bf16.mxu0 %v8011_v35  ;;  %v8054_v34 = vld [vmem:[#allocation7 + $0x750] ss:$24 sps:$4 sm:$0xff]  }
 0x192   :  { %v8057_v35 = vld [vmem:[#allocation7 + $0xf30] ss:$24 sps:$4 sm:$0xff]  }
 0x194   :  { %5373 = vmatpush1.bf16.msra.mxu1 %v8006_v37  ;;  %5484 = vmatpush1.bf16.msra.mxu0 %v8009_v38  ;;  %v8065_v37 = vld [vmem:[#allocation7 + $0xf64] ss:$24 sps:$4 sm:$0xff]   ;;  %v8063_v38 = vld [vmem:[#allocation7 + $0xf60] ss:$24 sps:$4 sm:$0xff]  }
 0x195   :  { %5383 = vmatprep.subr.bf16.mxu1 %v8014_v43  ;;  %5485 = vmatprep.subr.bf16.mxu0 %v8017_v48  ;;  %v8066_v43 = vld [vmem:[#allocation7 + $0x7b0] ss:$24 sps:$4 sm:$0xff]   ;;  %v8071_v48 = vld [vmem:[#allocation7 + $0xf94] ss:$24 sps:$4 sm:$0xff]  }
 0x197   :  { %5375 = vmatmul.mubr.bf16.vlgmr.msra.gmra.mrb[24].mxu1 %v9474_v52 }
 0x198   :  { %5384 = vmatpush1.bf16.msra.mxu1 %v8012_v51  ;;  %5415 = vmatprep.mubr.bf16.mxu1 %v9476_v54  ;;  %v8074_v51 = vld [vmem:[#allocation7 + $0x7e4] ss:$24 sps:$4 sm:$0xff]  }
 0x199   :  { %5486 = vmatpush1.bf16.msra.mxu0 %v8015_v53  ;;  %5385 = vmatprep.subr.bf16.mxu1 %v8020_v45  ;;  %v8072_v53 = vld [vmem:[#allocation7 + $0x7e0] ss:$24 sps:$4 sm:$0xff]   ;;  %v8077_v45 = vld [vmem:[#allocation7 + $0xfc4] ss:$24 sps:$4 sm:$0xff]  }
 0x19a   :  { %5487 = vmatprep.subr.bf16.mxu0 %v8023_v57  ;;  %v8075_v57 = vld [vmem:[#allocation7 + $0xfc0] ss:$24 sps:$4 sm:$0xff]  }
 0x19c   :  { %5386 = vmatpush1.bf16.msra.mxu1 %v8018_v2  ;;  %v8080_v2 = vld [vmem:[#allocation7 + $0x814] ss:$24 sps:$4 sm:$0xff]  }
 0x19d   :  { %5488 = vmatpush1.bf16.msra.mxu0 %v8021_v14  ;;  %5387 = vmatprep.subr.bf16.mxu1 %v8026_v58  ;;  %v8078_v14 = vld [vmem:[#allocation7 + $0x810] ss:$24 sps:$4 sm:$0xff]   ;;  %v8083_v58 = vld [vmem:[#allocation7 + $0xff4] ss:$24 sps:$4 sm:$0xff]  }
 0x19e   :  { %5489 = vmatprep.subr.bf16.mxu0 %v8029_v61  ;;  %v8086_v61 = vld [vmem:[#allocation7 + $0x844] ss:$24 sps:$4 sm:$0xff]  }
 0x1a0   :  { %5388 = vmatpush1.bf16.msra.mxu1 %v8024_v59  ;;  %v8081_v59 = vld [vmem:[#allocation7 + $0xff0] ss:$24 sps:$4 sm:$0xff]  }
 0x1a1   :  { %5490 = vmatpush1.bf16.msra.mxu0 %v8027_v63  ;;  %5389 = vmatprep.subr.bf16.mxu1 %v8032_v0  ;;  %v8084_v63 = vld [vmem:[#allocation7 + $0x840] ss:$24 sps:$4 sm:$0xff]   ;;  %v8089_v0 = vld [vmem:[#allocation7 + $0x1024] ss:$24 sps:$4 sm:$0xff]  }
 0x1a2   :  { %5491 = vmatprep.subr.bf16.mxu0 %v8035_v3  ;;  %v8092_v3 = vld [vmem:[#allocation7 + $0x874] ss:$24 sps:$4 sm:$0xff]  }
 0x1a4   :  { %5390 = vmatpush1.bf16.msra.mxu1 %v8030_v1  ;;  %v8087_v1 = vld [vmem:[#allocation7 + $0x1020] ss:$24 sps:$4 sm:$0xff]  }
 0x1a5   :  { %5492 = vmatpush1.bf16.msra.mxu0 %v8033_v5  ;;  %5391 = vmatprep.subr.bf16.mxu1 %v8038_v6  ;;  %v8090_v5 = vld [vmem:[#allocation7 + $0x870] ss:$24 sps:$4 sm:$0xff]   ;;  %v8095_v6 = vld [vmem:[#allocation7 + $0x1054] ss:$24 sps:$4 sm:$0xff]  }
 0x1a6   :  { %5493 = vmatprep.subr.bf16.mxu0 %v8041_v8  ;;  %v8093_v8 = vld [vmem:[#allocation7 + $0x1050] ss:$24 sps:$4 sm:$0xff]  }
 0x1a8   :  { %5392 = vmatpush1.bf16.msra.mxu1 %v8036_v7  ;;  %v9493_v7 = vsub.s32 4, %v9343_v4 }
 0x1a9   :  { %5494 = vmatpush1.bf16.msra.mxu0 %v8039_v11  ;;  %5393 = vmatprep.subr.bf16.mxu1 %v8044_v15  ;;  %v8096_v11 = vld [vmem:[#allocation7 + $0x8a0] ss:$24 sps:$4 sm:$0xff]   ;;  %v8101_v15 = vld [vmem:[#allocation7 + $0x1084] ss:$24 sps:$4 sm:$0xff]  }
 0x1aa   :  { %5495 = vmatprep.subr.bf16.mxu0 %v8047_v21 }
 0x1ac   :  { %5394 = vmatpush1.bf16.msra.mxu1 %v8042_v17  ;;  %v9042_v17 = vld [vmem:[#allocation5] sm:$0xff] }
 0x1ad   :  { %5496 = vmatpush1.bf16.msra.mxu0 %v8045_v24  ;;  %5395 = vmatprep.subr.bf16.mxu1 %v8050_v25  ;;  %v131_v21 = vrot.slane %v9042_v17, %v9493_v7  ;;  %v8102_v24 = vld [vmem:[#allocation7 + $0x8d0] ss:$24 sps:$4 sm:$0xff]   ;;  %v8107_v25 = vld [vmem:[#allocation7 + $0x10b4] ss:$24 sps:$4 sm:$0xff]   ;;  %v8146_v17 = vld [vmem:[#allocation7 + $0x1204] ss:$24 sps:$4 sm:$0xff]  }
 0x1ae   :  { %5506 = vmatprep.subr.bf16.mxu0 %v8053_v28  ;;  %v8105_v28 = vld [vmem:[#allocation7 + $0x10b0] ss:$24 sps:$4 sm:$0xff]  }
 0x1b0   :  { %5498 = vmatmul.mubr.bf16.vlgmr.msra.gmra.mrb[8].mxu0 %v9486_v33  ;;  %5396 = vmatpush1.bf16.msra.mxu1 %v8048_v26  ;;  %v434_v26 = vadd.f32 %v9429_v13, %v131_v21  ;;  %v8114_v13 = vld [vmem:[#allocation7 + $0x1110] ss:$24 sps:$4 sm:$0xff]  }
 0x1b1   :  { %5507 = vmatpush1.bf16.msra.mxu0 %v8051_v31  ;;  %5397 = vmatprep.subr.bf16.mxu1 %v8056_v32  ;;  %v8110_v31 = vld [vmem:[#allocation7 + $0x10e4] ss:$24 sps:$4 sm:$0xff]   ;;  %v8111_v32 = vld [vmem:[#allocation7 + $0x8] ss:$24 sps:$4 sm:$0xff]  }
 0x1b2   :  { %5508 = vmatprep.subr.bf16.mxu0 %v8059_v20  ;;  %5538 = vmatprep.mubr.bf16.mxu0 %v9488_v56  ;;  %v9497_v20 = vpack.c.bf16 %v434_v26, %v434_v26  ;;  %v8147_v21 = vld [vmem:[#allocation7 + $0x128] ss:$24 sps:$4 sm:$0xff]   ;;  %v8152_v26 = vld [vmem:[#allocation7 + $0x1234] ss:$24 sps:$4 sm:$0xff]  }
 0x1b4   :  { %5398 = vmatpush1.bf16.msra.mxu1 %v8054_v34  ;;  %v8108_v34 = vld [vmem:[#allocation7 + $0x10e0] ss:$24 sps:$4 sm:$0xff]  }
 0x1b5   :  { %5509 = vmatpush1.bf16.msra.mxu0 %v8057_v35  ;;  %5399 = vmatprep.subr.bf16.mxu1 %v8062_v36  ;;  %v8119_v35 = vld [vmem:[#allocation7 + $0x3c] ss:$24 sps:$4 sm:$0xff]  }
 0x1b6   :  { %5510 = vmatprep.subr.bf16.mxu0 %v8065_v37  ;;  %v8116_v36 = vld [vmem:[#allocation7 + $0x1114] ss:$24 sps:$4 sm:$0xff]  }
 0x1b7   :  { %v8125_v37 = vld [vmem:[#allocation7 + $0x6c] ss:$24 sps:$4 sm:$0xff]  }
 0x1b8   :  { %5400 = vmatpush1.bf16.msra.mxu1 %v8060_v50  ;;  %v8117_v50 = vld [vmem:[#allocation7 + $0x38] ss:$24 sps:$4 sm:$0xff]  }
 0x1b9   :  { %5511 = vmatpush1.bf16.msra.mxu0 %v8063_v38  ;;  %5401 = vmatprep.subr.bf16.mxu1 %v8068_v42  ;;  %v8122_v38 = vld [vmem:[#allocation7 + $0x1144] ss:$24 sps:$4 sm:$0xff]   ;;  %v8123_v42 = vld [vmem:[#allocation7 + $0x68] ss:$24 sps:$4 sm:$0xff]  }
 0x1ba   :  { %5512 = vmatprep.subr.bf16.mxu0 %v8071_v48  ;;  %v8131_v48 = vld [vmem:[#allocation7 + $0x9c] ss:$24 sps:$4 sm:$0xff]  }
 0x1bc   :  { %5402 = vmatpush1.bf16.msra.mxu1 %v8066_v43  ;;  %v8120_v43 = vld [vmem:[#allocation7 + $0x1140] ss:$24 sps:$4 sm:$0xff]  }
 0x1bd   :  { %5513 = vmatpush1.bf16.msra.mxu0 %v8069_v49  ;;  %5403 = vmatprep.subr.bf16.mxu1 %v8074_v51  ;;  %v8128_v49 = vld [vmem:[#allocation7 + $0x1174] ss:$24 sps:$4 sm:$0xff]   ;;  %v8129_v51 = vld [vmem:[#allocation7 + $0x98] ss:$24 sps:$4 sm:$0xff]  }
 0x1be   :  { %5514 = vmatprep.subr.bf16.mxu0 %v8077_v45  ;;  %v8137_v45 = vld [vmem:[#allocation7 + $0xcc] ss:$24 sps:$4 sm:$0xff]  }
 0x1c0   :  { %5404 = vmatpush1.bf16.msra.mxu1 %v8072_v53  ;;  %v8126_v53 = vld [vmem:[#allocation7 + $0x1170] ss:$24 sps:$4 sm:$0xff]  }
 0x1c1   :  { %5515 = vmatpush1.bf16.msra.mxu0 %v8075_v57  ;;  %5405 = vmatprep.subr.bf16.mxu1 %v8080_v2  ;;  %v9501_v57 = vpop.f32.mrb[20].mxu1  ;;  %v8134_v2 = vld [vmem:[#allocation7 + $0x11a4] ss:$24 sps:$4 sm:$0xff]  }
 0x1c2   :  { %5516 = vmatprep.subr.bf16.mxu0 %v8083_v58  ;;  %v9503_v58 = vpop.f32.mrb[21].mxu1 }
 0x1c4   :  { %5406 = vmatpush1.bf16.msra.mxu1 %v8078_v14  ;;  %v8135_v14 = vld [vmem:[#allocation7 + $0xc8] ss:$24 sps:$4 sm:$0xff]  }
 0x1c5   :  { %5517 = vmatpush1.bf16.msra.mxu0 %v8081_v59  ;;  %5407 = vmatprep.subr.bf16.mxu1 %v8086_v61  ;;  %v642_v59 = vpop.f32.mrb[22].mxu1  ;;  %v9505_v61 = vld [vmem:[#allocation5 + $0x8] sm:$0xff] }
 0x1c6   :  { %5518 = vmatprep.subr.bf16.mxu0 %v8089_v0  ;;  %v643_v0 = vpop.f32.mrb[23].mxu1  ;;  %v8180_v59 = vld [vmem:[#allocation7 + $0x1320] ss:$24 sps:$4 sm:$0xff]  }
 0x1c7   :  { %v8191_v0 = vld [vmem:[#allocation7 + $0x27c] ss:$24 sps:$4 sm:$0xff]  }
 0x1c8   :  { %5408 = vmatpush1.bf16.msra.mxu1 %v8084_v63  ;;  %v155_v63 = vrot.slane %v9505_v61, %v9463_v27 }
 0x1c9   :  { %5519 = vmatpush1.bf16.msra.mxu0 %v8087_v1  ;;  %5409 = vmatprep.subr.bf16.mxu1 %v8092_v3  ;;  %v8132_v1 = vld [vmem:[#allocation7 + $0x11a0] ss:$24 sps:$4 sm:$0xff]   ;;  %v8143_v3 = vld [vmem:[#allocation7 + $0xfc] ss:$24 sps:$4 sm:$0xff]  }
 0x1ca   :  { %5520 = vmatprep.subr.bf16.mxu0 %v8095_v6  ;;  %v8141_v6 = vld [vmem:[#allocation7 + $0xf8] ss:$24 sps:$4 sm:$0xff]  }
 0x1cc   :  { %5410 = vmatpush1.bf16.msra.mxu1 %v8090_v5  ;;  %v8140_v5 = vld [vmem:[#allocation7 + $0x11d4] ss:$24 sps:$4 sm:$0xff]  }
 0x1cd   :  { %5521 = vmatpush1.bf16.msra.mxu0 %v8093_v8  ;;  %5411 = vmatprep.subr.bf16.mxu1 %v8098_v9  ;;  %v167_v8 = vrot.slane %v9505_v61, %v9466_v30  ;;  %v557_v9 = vadd.f32 %v9453_v47, %v155_v63  ;;  %v8188_v63 = vld [vmem:[#allocation7 + $0x1354] ss:$24 sps:$4 sm:$0xff]  }
 0x1ce   :  { %5522 = vmatprep.subr.bf16.mxu0 %v8101_v15  ;;  %v8149_v15 = vld [vmem:[#allocation7 + $0x12c] ss:$24 sps:$4 sm:$0xff]  }
 0x1d0   :  { %5412 = vmatpush1.bf16.msra.mxu1 %v8096_v11  ;;  %v8138_v11 = vld [vmem:[#allocation7 + $0x11d0] ss:$24 sps:$4 sm:$0xff]  }
 0x1d1   :  { %5523 = vmatpush1.bf16.msra.mxu0 %v8099_v22  ;;  %5413 = vmatprep.subr.bf16.mxu1 %v8104_v23  ;;  %v600_v22 = vadd.f32 %v9460_v18, %v167_v8  ;;  %v8144_v23 = vld [vmem:[#allocation7 + $0x1200] ss:$24 sps:$4 sm:$0xff]   ;;  %v8158_v18 = vld [vmem:[#allocation7 + $0x1264] ss:$24 sps:$4 sm:$0xff]  }
 0x1d2   :  { %5524 = vmatprep.subr.bf16.mxu0 %v8107_v25  ;;  %v9513_v25 = vpack.c.bf16 %v557_v9, %v557_v9  ;;  %v8195_v8 = vld [vmem:[#allocation7 + $0x2a8] ss:$24 sps:$4 sm:$0xff]  }
 0x1d3   :  { %v9515_v47 = vpack.c.bf16 %v600_v22, %v600_v22  ;;  %v8192_v9 = vld [vmem:[#allocation7 + $0x1380] ss:$24 sps:$4 sm:$0xff]   ;;  %v8209_v22 = vld [vmem:[#allocation7 + $0x30c] ss:$24 sps:$4 sm:$0xff]  }
 0x1d4   :  { %5414 = vmatpush1.bf16.msra.mxu1 %v8102_v24  ;;  %v8155_v24 = vld [vmem:[#allocation7 + $0x15c] ss:$24 sps:$4 sm:$0xff]  }
 0x1d5   :  { %5525 = vmatpush1.bf16.msra.mxu0 %v8105_v28  ;;  %5629 = vmatprep.subr.bf16.mxu1 %v8113_v29  ;;  %v8153_v28 = vld [vmem:[#allocation7 + $0x158] ss:$24 sps:$4 sm:$0xff]  }
 0x1d6   :  { %5526 = vmatprep.subr.bf16.mxu0 %v8110_v31  ;;  %v8150_v29 = vld [vmem:[#allocation7 + $0x1230] ss:$24 sps:$4 sm:$0xff]   ;;  %v8161_v31 = vld [vmem:[#allocation7 + $0x18c] ss:$24 sps:$4 sm:$0xff]  }
 0x1d7   :  { %5416 = vmatmul.mubr.bf16.vlgmr.msra.gmra.mrb[24].mxu1 %v9497_v20 }
 0x1d8   :  { %5630 = vmatpush1.bf16.msra.mxu1 %v8111_v32  ;;  %5661 = vmatprep.mubr.bf16.mxu1 %v9416_v60  ;;  %v8159_v32 = vld [vmem:[#allocation7 + $0x188] ss:$24 sps:$4 sm:$0xff]  }
 0x1d9   :  { %5527 = vmatpush1.bf16.msra.mxu0 %v8108_v34  ;;  %5631 = vmatprep.subr.bf16.mxu1 %v8119_v35  ;;  %v8156_v34 = vld [vmem:[#allocation7 + $0x1260] ss:$24 sps:$4 sm:$0xff]   ;;  %v8164_v35 = vld [vmem:[#allocation7 + $0x1294] ss:$24 sps:$4 sm:$0xff]  }
 0x1da   :  { %5528 = vmatprep.subr.bf16.mxu0 %v8116_v36  ;;  %v8167_v36 = vld [vmem:[#allocation7 + $0x1bc] ss:$24 sps:$4 sm:$0xff]  }
 0x1dc   :  { %5632 = vmatpush1.bf16.msra.mxu1 %v8117_v50  ;;  %v8165_v50 = vld [vmem:[#allocation7 + $0x1b8] ss:$24 sps:$4 sm:$0xff]  }
 0x1dd   :  { %5529 = vmatpush1.bf16.msra.mxu0 %v8114_v13  ;;  %5633 = vmatprep.subr.bf16.mxu1 %v8125_v37  ;;  %v8162_v13 = vld [vmem:[#allocation7 + $0x1290] ss:$24 sps:$4 sm:$0xff]   ;;  %v8170_v37 = vld [vmem:[#allocation7 + $0x12c4] ss:$24 sps:$4 sm:$0xff]  }
 0x1de   :  { %5530 = vmatprep.subr.bf16.mxu0 %v8122_v38  ;;  %v8173_v38 = vld [vmem:[#allocation7 + $0x1ec] ss:$24 sps:$4 sm:$0xff]  }
 0x1e0   :  { %5634 = vmatpush1.bf16.msra.mxu1 %v8123_v42  ;;  %v8171_v42 = vld [vmem:[#allocation7 + $0x1e8] ss:$24 sps:$4 sm:$0xff]  }
 0x1e1   :  { %5531 = vmatpush1.bf16.msra.mxu0 %v8120_v43  ;;  %5635 = vmatprep.subr.bf16.mxu1 %v8131_v48  ;;  %v8168_v43 = vld [vmem:[#allocation7 + $0x12c0] ss:$24 sps:$4 sm:$0xff]   ;;  %v8176_v48 = vld [vmem:[#allocation7 + $0x12f4] ss:$24 sps:$4 sm:$0xff]  }
 0x1e2   :  { %5532 = vmatprep.subr.bf16.mxu0 %v8128_v49  ;;  %v8179_v49 = vld [vmem:[#allocation7 + $0x21c] ss:$24 sps:$4 sm:$0xff]  }
 0x1e4   :  { %5636 = vmatpush1.bf16.msra.mxu1 %v8129_v51  ;;  %v8177_v51 = vld [vmem:[#allocation7 + $0x218] ss:$24 sps:$4 sm:$0xff]  }
 0x1e5   :  { %5533 = vmatpush1.bf16.msra.mxu0 %v8126_v53  ;;  %5637 = vmatprep.subr.bf16.mxu1 %v8137_v45  ;;  %v8174_v53 = vld [vmem:[#allocation7 + $0x12f0] ss:$24 sps:$4 sm:$0xff]   ;;  %v8182_v45 = vld [vmem:[#allocation7 + $0x1324] ss:$24 sps:$4 sm:$0xff]  }
 0x1e6   :  { %5534 = vmatprep.subr.bf16.mxu0 %v8134_v2  ;;  %v8185_v2 = vld [vmem:[#allocation7 + $0x24c] ss:$24 sps:$4 sm:$0xff]  }
 0x1e8   :  { %5638 = vmatpush1.bf16.msra.mxu1 %v8135_v14  ;;  %v8183_v14 = vld [vmem:[#allocation7 + $0x248] ss:$24 sps:$4 sm:$0xff]  }
 0x1e9   :  { %5535 = vmatpush1.bf16.msra.mxu0 %v8132_v1  ;;  %5639 = vmatprep.subr.bf16.mxu1 %v8143_v3  ;;  %v8189_v1 = vld [vmem:[#allocation7 + $0x278] ss:$24 sps:$4 sm:$0xff]  }
 0x1ea   :  { %5536 = vmatprep.subr.bf16.mxu0 %v8140_v5  ;;  %v8186_v3 = vld [vmem:[#allocation7 + $0x1350] ss:$24 sps:$4 sm:$0xff]   ;;  %v8194_v5 = vld [vmem:[#allocation7 + $0x1384] ss:$24 sps:$4 sm:$0xff]  }
 0x1ec   :  { %5640 = vmatpush1.bf16.msra.mxu1 %v8141_v6  ;;  %v8197_v6 = vld [vmem:[#allocation7 + $0x2ac] ss:$24 sps:$4 sm:$0xff]  }
 0x1ed   :  { %5537 = vmatpush1.bf16.msra.mxu0 %v8138_v11  ;;  %5641 = vmatprep.subr.bf16.mxu1 %v8149_v15  ;;  %v8200_v11 = vld [vmem:[#allocation7 + $0x13b4] ss:$24 sps:$4 sm:$0xff]  }
 0x1ee   :  { %5547 = vmatprep.subr.bf16.mxu0 %v8146_v17  ;;  %v8203_v15 = vld [vmem:[#allocation7 + $0x2dc] ss:$24 sps:$4 sm:$0xff]   ;;  %v8201_v17 = vld [vmem:[#allocation7 + $0x2d8] ss:$24 sps:$4 sm:$0xff]  }
 0x1f0   :  { %5539 = vmatmul.mubr.bf16.vlgmr.msra.gmra.mrb[8].mxu0 %v9513_v25  ;;  %5642 = vmatpush1.bf16.msra.mxu1 %v8147_v21  ;;  %v8198_v21 = vld [vmem:[#allocation7 + $0x13b0] ss:$24 sps:$4 sm:$0xff]  }
 0x1f1   :  { %5548 = vmatpush1.bf16.msra.mxu0 %v8144_v23  ;;  %5643 = vmatprep.subr.bf16.mxu1 %v8155_v24  ;;  %v8206_v23 = vld [vmem:[#allocation7 + $0x13e4] ss:$24 sps:$4 sm:$0xff]   ;;  %v8207_v24 = vld [vmem:[#allocation7 + $0x308] ss:$24 sps:$4 sm:$0xff]  }
 0x1f2   :  { %5549 = vmatprep.subr.bf16.mxu0 %v8152_v26  ;;  %5579 = vmatprep.mubr.bf16.mxu0 %v9515_v47  ;;  %v8204_v26 = vld [vmem:[#allocation7 + $0x13e0] ss:$24 sps:$4 sm:$0xff]  }
 0x1f4   :  { %5644 = vmatpush1.bf16.msra.mxu1 %v8153_v28  ;;  %v8215_v28 = vld [vmem:[#allocation7 + $0x33c] ss:$24 sps:$4 sm:$0xff]  }
 0x1f5   :  { %5550 = vmatpush1.bf16.msra.mxu0 %v8150_v29  ;;  %5645 = vmatprep.subr.bf16.mxu1 %v8161_v31  ;;  %v8212_v29 = vld [vmem:[#allocation7 + $0x1414] ss:$24 sps:$4 sm:$0xff]   ;;  %v8213_v31 = vld [vmem:[#allocation7 + $0x338] ss:$24 sps:$4 sm:$0xff]  }
 0x1f6   :  { %5551 = vmatprep.subr.bf16.mxu0 %v8158_v18  ;;  %v8210_v18 = vld [vmem:[#allocation7 + $0x1410] ss:$24 sps:$4 sm:$0xff]  }
 0x1f8   :  { %5646 = vmatpush1.bf16.msra.mxu1 %v8159_v32  ;;  %v8221_v32 = vld [vmem:[#allocation7 + $0x36c] ss:$24 sps:$4 sm:$0xff]  }
 0x1f9   :  { %5552 = vmatpush1.bf16.msra.mxu0 %v8156_v34  ;;  %5647 = vmatprep.subr.bf16.mxu1 %v8167_v36  ;;  %v8218_v34 = vld [vmem:[#allocation7 + $0x1444] ss:$24 sps:$4 sm:$0xff]   ;;  %v8216_v36 = vld [vmem:[#allocation7 + $0x1440] ss:$24 sps:$4 sm:$0xff]  }
 0x1fa   :  { %5553 = vmatprep.subr.bf16.mxu0 %v8164_v35  ;;  %v8219_v35 = vld [vmem:[#allocation7 + $0x368] ss:$24 sps:$4 sm:$0xff]  }
 0x1fc   :  { %5648 = vmatpush1.bf16.msra.mxu1 %v8165_v50  ;;  %v8227_v50 = vld [vmem:[#allocation7 + $0x39c] ss:$24 sps:$4 sm:$0xff]  }
 0x1fd   :  { %5554 = vmatpush1.bf16.msra.mxu0 %v8162_v13  ;;  %5649 = vmatprep.subr.bf16.mxu1 %v8173_v38  ;;  %v8224_v13 = vld [vmem:[#allocation7 + $0x1474] ss:$24 sps:$4 sm:$0xff]   ;;  %v8222_v38 = vld [vmem:[#allocation7 + $0x1470] ss:$24 sps:$4 sm:$0xff]  }
 0x1fe   :  { %5555 = vmatprep.subr.bf16.mxu0 %v8170_v37  ;;  %v8225_v37 = vld [vmem:[#allocation7 + $0x398] ss:$24 sps:$4 sm:$0xff]  }
 0x200   :  { %5650 = vmatpush1.bf16.msra.mxu1 %v8171_v42  ;;  %v8233_v42 = vld [vmem:[#allocation7 + $0x3cc] ss:$24 sps:$4 sm:$0xff]  }
 0x201   :  { %5556 = vmatpush1.bf16.msra.mxu0 %v8168_v43  ;;  %5651 = vmatprep.subr.bf16.mxu1 %v8179_v49  ;;  %v8230_v43 = vld [vmem:[#allocation7 + $0x14a4] ss:$24 sps:$4 sm:$0xff]   ;;  %v8228_v49 = vld [vmem:[#allocation7 + $0x14a0] ss:$24 sps:$4 sm:$0xff]  }
 0x202   :  { %5557 = vmatprep.subr.bf16.mxu0 %v8176_v48  ;;  %v8231_v48 = vld [vmem:[#allocation7 + $0x3c8] ss:$24 sps:$4 sm:$0xff]  }
 0x204   :  { %5652 = vmatpush1.bf16.msra.mxu1 %v8177_v51  ;;  %v8239_v51 = vld [vmem:[#allocation7 + $0x3fc] ss:$24 sps:$4 sm:$0xff]  }
 0x205   :  { %5558 = vmatpush1.bf16.msra.mxu0 %v8174_v53  ;;  %5653 = vmatprep.subr.bf16.mxu1 %v8185_v2  ;;  %v163_v53 = vrot.slane %v9505_v61, %v9493_v7  ;;  %v175_v2 = vrot.slane %v9505_v61, %v142_v19  ;;  %v8248_v19 = vld [vmem:[#allocation7 + $0x1534] ss:$24 sps:$4 sm:$0xff]  }
 0x206   :  { %5559 = vmatprep.subr.bf16.mxu0 %v8182_v45  ;;  %v8236_v45 = vld [vmem:[#allocation7 + $0x14d4] ss:$24 sps:$4 sm:$0xff]  }
 0x208   :  { %5654 = vmatpush1.bf16.msra.mxu1 %v8183_v14  ;;  %v8237_v14 = vld [vmem:[#allocation7 + $0x3f8] ss:$24 sps:$4 sm:$0xff]  }
 0x209   :  { %5560 = vmatpush1.bf16.msra.mxu0 %v8180_v59  ;;  %5655 = vmatprep.subr.bf16.mxu1 %v8191_v0  ;;  %v8234_v59 = vld [vmem:[#allocation7 + $0x14d0] ss:$24 sps:$4 sm:$0xff]   ;;  %v598_v0 = vadd.f32 %v9458_v12, %v163_v53  ;;  %v8293_v53 = vld [vmem:[#allocation7 + $0x5ac] ss:$24 sps:$4 sm:$0xff]  }
 0x20a   :  { %5561 = vmatprep.subr.bf16.mxu0 %v8188_v63  ;;  %v8245_v63 = vld [vmem:[#allocation7 + $0x42c] ss:$24 sps:$4 sm:$0xff]   ;;  %v8249_v12 = vld [vmem:[#allocation7 + $0x458] ss:$24 sps:$4 sm:$0xff]  }
 0x20c   :  { %5656 = vmatpush1.bf16.msra.mxu1 %v8189_v1  ;;  %v8242_v1 = vld [vmem:[#allocation7 + $0x1504] ss:$24 sps:$4 sm:$0xff]  }
 0x20d   :  { %5562 = vmatpush1.bf16.msra.mxu0 %v8186_v3  ;;  %5657 = vmatprep.subr.bf16.mxu1 %v8197_v6  ;;  %v641_v3 = vadd.f32 %v9503_v58, %v175_v2  ;;  %v8240_v6 = vld [vmem:[#allocation7 + $0x1500] ss:$24 sps:$4 sm:$0xff]   ;;  %v8257_v58 = vld [vmem:[#allocation7 + $0x48c] ss:$24 sps:$4 sm:$0xff]  }
 0x20e   :  { %5563 = vmatprep.subr.bf16.mxu0 %v8194_v5  ;;  %v8243_v5 = vld [vmem:[#allocation7 + $0x428] ss:$24 sps:$4 sm:$0xff]  }
 0x20f   :  { %v8291_v2 = vld [vmem:[#allocation7 + $0x5a8] ss:$24 sps:$4 sm:$0xff]  }
 0x210   :  { %5658 = vmatpush1.bf16.msra.mxu1 %v8195_v8  ;;  %v8251_v8 = vld [vmem:[#allocation7 + $0x45c] ss:$24 sps:$4 sm:$0xff]  }
 0x211   :  { %5564 = vmatpush1.bf16.msra.mxu0 %v8192_v9  ;;  %5659 = vmatprep.subr.bf16.mxu1 %v8203_v15  ;;  %v9528_v9 = vpack.c.bf16 %v598_v0, %v598_v0  ;;  %v8246_v15 = vld [vmem:[#allocation7 + $0x1530] ss:$24 sps:$4 sm:$0xff]  }
 0x212   :  { %5565 = vmatprep.subr.bf16.mxu0 %v8200_v11  ;;  %v9530_v11 = vpack.c.bf16 %v641_v3, %v641_v3  ;;  %v8297_v0 = vld [vmem:[#allocation7 + $0x5d8] ss:$24 sps:$4 sm:$0xff]   ;;  %v8305_v3 = vld [vmem:[#allocation7 + $0x60c] ss:$24 sps:$4 sm:$0xff]  }
 0x214   :  { %5660 = vmatpush1.bf16.msra.mxu1 %v8201_v17  ;;  %v8254_v17 = vld [vmem:[#allocation7 + $0x1564] ss:$24 sps:$4 sm:$0xff]  }
 0x215   :  { %5566 = vmatpush1.bf16.msra.mxu0 %v8198_v21  ;;  %5670 = vmatprep.subr.bf16.mxu1 %v8209_v22  ;;  %v8255_v21 = vld [vmem:[#allocation7 + $0x488] ss:$24 sps:$4 sm:$0xff]  }
 0x216   :  { %5567 = vmatprep.subr.bf16.mxu0 %v8206_v23  ;;  %v8252_v22 = vld [vmem:[#allocation7 + $0x1560] ss:$24 sps:$4 sm:$0xff]   ;;  %v8263_v23 = vld [vmem:[#allocation7 + $0x4bc] ss:$24 sps:$4 sm:$0xff]  }
 0x217   :  { %5662 = vmatmul.mubr.bf16.vlgmr.msra.gmra.mrb[28].mxu1 %v9418_v62 }
 0x218   :  { %5671 = vmatpush1.bf16.msra.mxu1 %v8207_v24  ;;  %5702 = vmatprep.mubr.bf16.mxu1 %v9426_v10  ;;  %v8260_v24 = vld [vmem:[#allocation7 + $0x1594] ss:$24 sps:$4 sm:$0xff]  }
 0x219   :  { %5568 = vmatpush1.bf16.msra.mxu0 %v8204_v26  ;;  %5672 = vmatprep.subr.bf16.mxu1 %v8215_v28  ;;  %v8261_v26 = vld [vmem:[#allocation7 + $0x4b8] ss:$24 sps:$4 sm:$0xff]  }
 0x21a   :  { %5569 = vmatprep.subr.bf16.mxu0 %v8212_v29  ;;  %v8258_v28 = vld [vmem:[#allocation7 + $0x1590] ss:$24 sps:$4 sm:$0xff]   ;;  %v8269_v29 = vld [vmem:[#allocation7 + $0x4ec] ss:$24 sps:$4 sm:$0xff]  }
 0x21c   :  { %5673 = vmatpush1.bf16.msra.mxu1 %v8213_v31  ;;  %v8266_v31 = vld [vmem:[#allocation7 + $0x15c4] ss:$24 sps:$4 sm:$0xff]  }
 0x21d   :  { %5570 = vmatpush1.bf16.msra.mxu0 %v8210_v18  ;;  %5674 = vmatprep.subr.bf16.mxu1 %v8221_v32  ;;  %v8267_v18 = vld [vmem:[#allocation7 + $0x4e8] ss:$24 sps:$4 sm:$0xff]  }
 0x21e   :  { %5571 = vmatprep.subr.bf16.mxu0 %v8218_v34  ;;  %v8264_v32 = vld [vmem:[#allocation7 + $0x15c0] ss:$24 sps:$4 sm:$0xff]   ;;  %v8275_v34 = vld [vmem:[#allocation7 + $0x51c] ss:$24 sps:$4 sm:$0xff]  }
 0x220   :  { %5675 = vmatpush1.bf16.msra.mxu1 %v8219_v35  ;;  %v8272_v35 = vld [vmem:[#allocation7 + $0x15f4] ss:$24 sps:$4 sm:$0xff]  }
 0x221   :  { %5572 = vmatpush1.bf16.msra.mxu0 %v8216_v36  ;;  %5676 = vmatprep.subr.bf16.mxu1 %v8227_v50  ;;  %v8273_v36 = vld [vmem:[#allocation7 + $0x518] ss:$24 sps:$4 sm:$0xff]  }
 0x222   :  { %5573 = vmatprep.subr.bf16.mxu0 %v8224_v13  ;;  %v8270_v50 = vld [vmem:[#allocation7 + $0x15f0] ss:$24 sps:$4 sm:$0xff]   ;;  %v8281_v13 = vld [vmem:[#allocation7 + $0x54c] ss:$24 sps:$4 sm:$0xff]  }
 0x224   :  { %5677 = vmatpush1.bf16.msra.mxu1 %v8225_v37  ;;  %v8278_v37 = vld [vmem:[#allocation7 + $0x1624] ss:$24 sps:$4 sm:$0xff]  }
 0x225   :  { %5574 = vmatpush1.bf16.msra.mxu0 %v8222_v38  ;;  %5678 = vmatprep.subr.bf16.mxu1 %v8233_v42  ;;  %v8279_v38 = vld [vmem:[#allocation7 + $0x548] ss:$24 sps:$4 sm:$0xff]  }
 0x226   :  { %5575 = vmatprep.subr.bf16.mxu0 %v8230_v43  ;;  %v8276_v42 = vld [vmem:[#allocation7 + $0x1620] ss:$24 sps:$4 sm:$0xff]   ;;  %v8287_v43 = vld [vmem:[#allocation7 + $0x57c] ss:$24 sps:$4 sm:$0xff]  }
 0x228   :  { %5679 = vmatpush1.bf16.msra.mxu1 %v8231_v48  ;;  %v8284_v48 = vld [vmem:[#allocation7 + $0x1654] ss:$24 sps:$4 sm:$0xff]  }
 0x229   :  { %5576 = vmatpush1.bf16.msra.mxu0 %v8228_v49  ;;  %5680 = vmatprep.subr.bf16.mxu1 %v8239_v51  ;;  %v8285_v49 = vld [vmem:[#allocation7 + $0x578] ss:$24 sps:$4 sm:$0xff]  }
 0x22a   :  { %5577 = vmatprep.subr.bf16.mxu0 %v8236_v45  ;;  %v8282_v51 = vld [vmem:[#allocation7 + $0x1650] ss:$24 sps:$4 sm:$0xff]   ;;  %v8290_v45 = vld [vmem:[#allocation7 + $0x1684] ss:$24 sps:$4 sm:$0xff]  }
 0x22c   :  { %5681 = vmatpush1.bf16.msra.mxu1 %v8237_v14  ;;  %v8288_v14 = vld [vmem:[#allocation7 + $0x1680] ss:$24 sps:$4 sm:$0xff]  }
 0x22d   :  { %5578 = vmatpush1.bf16.msra.mxu0 %v8234_v59  ;;  %5682 = vmatprep.subr.bf16.mxu1 %v8245_v63  ;;  %v8299_v59 = vld [vmem:[#allocation7 + $0x5dc] ss:$24 sps:$4 sm:$0xff]  }
 0x22e   :  { %5588 = vmatprep.subr.bf16.mxu0 %v8242_v1  ;;  %v8296_v63 = vld [vmem:[#allocation7 + $0x16b4] ss:$24 sps:$4 sm:$0xff]   ;;  %v8294_v1 = vld [vmem:[#allocation7 + $0x16b0] ss:$24 sps:$4 sm:$0xff]  }
 0x230   :  { %5580 = vmatmul.mubr.bf16.vlgmr.msra.gmra.mrb[8].mxu0 %v9528_v9  ;;  %5683 = vmatpush1.bf16.msra.mxu1 %v8243_v5  ;;  %v8302_v5 = vld [vmem:[#allocation7 + $0x16e4] ss:$24 sps:$4 sm:$0xff]  }
 0x231   :  { %5589 = vmatpush1.bf16.msra.mxu0 %v8240_v6  ;;  %5684 = vmatprep.subr.bf16.mxu1 %v8251_v8  ;;  %v8303_v6 = vld [vmem:[#allocation7 + $0x608] ss:$24 sps:$4 sm:$0xff]  }
 0x232   :  { %5590 = vmatprep.subr.bf16.mxu0 %v8248_v19  ;;  %5620 = vmatprep.mubr.bf16.mxu0 %v9530_v11  ;;  %v8300_v8 = vld [vmem:[#allocation7 + $0x16e0] ss:$24 sps:$4 sm:$0xff]   ;;  %v8311_v19 = vld [vmem:[#allocation7 + $0x63c] ss:$24 sps:$4 sm:$0xff]  }
 0x234   :  { %5685 = vmatpush1.bf16.msra.mxu1 %v8249_v12  ;;  %v8308_v12 = vld [vmem:[#allocation7 + $0x1714] ss:$24 sps:$4 sm:$0xff]  }
 0x235   :  { %5591 = vmatpush1.bf16.msra.mxu0 %v8246_v15  ;;  %5686 = vmatprep.subr.bf16.mxu1 %v8257_v58  ;;  %v8309_v15 = vld [vmem:[#allocation7 + $0x638] ss:$24 sps:$4 sm:$0xff]  }
 0x236   :  { %5592 = vmatprep.subr.bf16.mxu0 %v8254_v17  ;;  %v8306_v58 = vld [vmem:[#allocation7 + $0x1710] ss:$24 sps:$4 sm:$0xff]   ;;  %v8317_v17 = vld [vmem:[#allocation7 + $0x66c] ss:$24 sps:$4 sm:$0xff]  }
 0x238   :  { %5687 = vmatpush1.bf16.msra.mxu1 %v8255_v21  ;;  %v8314_v21 = vld [vmem:[#allocation7 + $0x1744] ss:$24 sps:$4 sm:$0xff]  }
 0x239   :  { %5593 = vmatpush1.bf16.msra.mxu0 %v8252_v22  ;;  %5688 = vmatprep.subr.bf16.mxu1 %v8263_v23  ;;  %v8315_v22 = vld [vmem:[#allocation7 + $0x668] ss:$24 sps:$4 sm:$0xff]  }
 0x23a   :  { %5594 = vmatprep.subr.bf16.mxu0 %v8260_v24  ;;  %v8312_v23 = vld [vmem:[#allocation7 + $0x1740] ss:$24 sps:$4 sm:$0xff]   ;;  %v8323_v24 = vld [vmem:[#allocation7 + $0x69c] ss:$24 sps:$4 sm:$0xff]  }
 0x23c   :  { %5689 = vmatpush1.bf16.msra.mxu1 %v8261_v26  ;;  %v8320_v26 = vld [vmem:[#allocation7 + $0x1774] ss:$24 sps:$4 sm:$0xff]  }
 0x23d   :  { %5595 = vmatpush1.bf16.msra.mxu0 %v8258_v28  ;;  %5690 = vmatprep.subr.bf16.mxu1 %v8269_v29  ;;  %v8321_v28 = vld [vmem:[#allocation7 + $0x698] ss:$24 sps:$4 sm:$0xff]  }
 0x23e   :  { %5596 = vmatprep.subr.bf16.mxu0 %v8266_v31  ;;  %v8318_v29 = vld [vmem:[#allocation7 + $0x1770] ss:$24 sps:$4 sm:$0xff]   ;;  %v8329_v31 = vld [vmem:[#allocation7 + $0x6cc] ss:$24 sps:$4 sm:$0xff]  }
 0x240   :  { %5691 = vmatpush1.bf16.msra.mxu1 %v8267_v18  ;;  %v8326_v18 = vld [vmem:[#allocation7 + $0x17a4] ss:$24 sps:$4 sm:$0xff]  }
 0x241   :  { %5597 = vmatpush1.bf16.msra.mxu0 %v8264_v32  ;;  %5692 = vmatprep.subr.bf16.mxu1 %v8275_v34  ;;  %v8327_v32 = vld [vmem:[#allocation7 + $0x6c8] ss:$24 sps:$4 sm:$0xff]  }
 0x242   :  { %5598 = vmatprep.subr.bf16.mxu0 %v8272_v35  ;;  %v8324_v34 = vld [vmem:[#allocation7 + $0x17a0] ss:$24 sps:$4 sm:$0xff]   ;;  %v8335_v35 = vld [vmem:[#allocation7 + $0x6fc] ss:$24 sps:$4 sm:$0xff]  }
 0x244   :  { %5693 = vmatpush1.bf16.msra.mxu1 %v8273_v36  ;;  %v171_v36 = vrot.slane %v9505_v61, %v138_v16  ;;  %v8344_v16 = vld [vmem:[#allocation7 + $0x75c] ss:$24 sps:$4 sm:$0xff]  }
 0x245   :  { %5599 = vmatpush1.bf16.msra.mxu0 %v8270_v50  ;;  %5694 = vmatprep.subr.bf16.mxu1 %v8281_v13  ;;  %v8332_v50 = vld [vmem:[#allocation7 + $0x17d4] ss:$24 sps:$4 sm:$0xff]   ;;  %v8333_v13 = vld [vmem:[#allocation7 + $0x6f8] ss:$24 sps:$4 sm:$0xff]   ;;  %v8347_v61 = vld [vmem:[#allocation7 + $0x44] ss:$24 sps:$4 sm:$0xff]  }
 0x246   :  { %5600 = vmatprep.subr.bf16.mxu0 %v8278_v37  ;;  %v8330_v37 = vld [vmem:[#allocation7 + $0x17d0] ss:$24 sps:$4 sm:$0xff]  }
 0x248   :  { %5695 = vmatpush1.bf16.msra.mxu1 %v8279_v38  ;;  %v8338_v38 = vld [vmem:[#allocation7 + $0x72c] ss:$24 sps:$4 sm:$0xff]  }
 0x249   :  { %5601 = vmatpush1.bf16.msra.mxu0 %v8276_v42  ;;  %5696 = vmatprep.subr.bf16.mxu1 %v8287_v43  ;;  %v639_v42 = vadd.f32 %v9501_v57, %v171_v36  ;;  %v8341_v43 = vld [vmem:[#allocation7 + $0x14] ss:$24 sps:$4 sm:$0xff]   ;;  %v8345_v57 = vld [vmem:[#allocation7 + $0x40] ss:$24 sps:$4 sm:$0xff]  }
 0x24a   :  { %5602 = vmatprep.subr.bf16.mxu0 %v8284_v48  ;;  %v8336_v48 = vld [vmem:[#allocation7 + $0x728] ss:$24 sps:$4 sm:$0xff]   ;;  %v8390_v36 = vld [vmem:[#allocation7 + $0x8d8] ss:$24 sps:$4 sm:$0xff]  }
 0x24b   :  { %v9540_v4 = vpack.c.bf16 %v639_v42, %v639_v42  ;;  %v8399_v42 = vld [vmem:[#allocation7 + $0x1f0] ss:$24 sps:$4 sm:$0xff]  }
 0x24c   :  { %5697 = vmatpush1.bf16.msra.mxu1 %v8285_v49  ;;  %v8339_v49 = vld [vmem:[#allocation7 + $0x10] ss:$24 sps:$4 sm:$0xff]  }
 0x24d   :  { %5603 = vmatpush1.bf16.msra.mxu0 %v8282_v51  ;;  %5698 = vmatprep.subr.bf16.mxu1 %v8293_v53  ;;  %v8342_v51 = vld [vmem:[#allocation7 + $0x758] ss:$24 sps:$4 sm:$0xff]   ;;  %v8350_v53 = vld [vmem:[#allocation7 + $0x78c] ss:$24 sps:$4 sm:$0xff]  }
 0x24e   :  { %5604 = vmatprep.subr.bf16.mxu0 %v8290_v45  ;;  %v8353_v45 = vld [vmem:[#allocation7 + $0x74] ss:$24 sps:$4 sm:$0xff]  }
 0x250   :  { %5699 = vmatpush1.bf16.msra.mxu1 %v8291_v2  ;;  %v8348_v2 = vld [vmem:[#allocation7 + $0x788] ss:$24 sps:$4 sm:$0xff]  }
 0x251   :  { %5605 = vmatpush1.bf16.msra.mxu0 %v8288_v14  ;;  %5700 = vmatprep.subr.bf16.mxu1 %v8299_v59  ;;  %v8351_v14 = vld [vmem:[#allocation7 + $0x70] ss:$24 sps:$4 sm:$0xff]   ;;  %v8356_v59 = vld [vmem:[#allocation7 + $0x7bc] ss:$24 sps:$4 sm:$0xff]  }
 0x252   :  { %5606 = vmatprep.subr.bf16.mxu0 %v8296_v63  ;;  %v8359_v63 = vld [vmem:[#allocation7 + $0xa4] ss:$24 sps:$4 sm:$0xff]  }
 0x254   :  { %5701 = vmatpush1.bf16.msra.mxu1 %v8297_v0  ;;  %v8354_v0 = vld [vmem:[#allocation7 + $0x7b8] ss:$24 sps:$4 sm:$0xff]  }
 0x255   :  { %5607 = vmatpush1.bf16.msra.mxu0 %v8294_v1  ;;  %5711 = vmatprep.subr.bf16.mxu1 %v8305_v3  ;;  %v8357_v1 = vld [vmem:[#allocation7 + $0xa0] ss:$24 sps:$4 sm:$0xff]   ;;  %v8362_v3 = vld [vmem:[#allocation7 + $0x7ec] ss:$24 sps:$4 sm:$0xff]  }
 0x256   :  { %5608 = vmatprep.subr.bf16.mxu0 %v8302_v5  ;;  %v8360_v5 = vld [vmem:[#allocation7 + $0x7e8] ss:$24 sps:$4 sm:$0xff]  }
 0x257   :  { %5703 = vmatmul.mubr.bf16.vlgmr.msra.gmra.mrb[28].mxu1 %v9474_v52 }
 0x258   :  { %5712 = vmatpush1.bf16.msra.mxu1 %v8303_v6  ;;  %5743 = vmatprep.mubr.bf16.mxu1 %v9476_v54  ;;  %v8363_v6 = vld [vmem:[#allocation7 + $0xd0] ss:$24 sps:$4 sm:$0xff]  }
 0x259   :  { %5609 = vmatpush1.bf16.msra.mxu0 %v8300_v8  ;;  %5713 = vmatprep.subr.bf16.mxu1 %v8311_v19  ;;  %v8368_v8 = vld [vmem:[#allocation7 + $0x81c] ss:$24 sps:$4 sm:$0xff]  }
 0x25a   :  { %5610 = vmatprep.subr.bf16.mxu0 %v8308_v12  ;;  %v8371_v19 = vld [vmem:[#allocation7 + $0x104] ss:$24 sps:$4 sm:$0xff]   ;;  %v8366_v12 = vld [vmem:[#allocation7 + $0x818] ss:$24 sps:$4 sm:$0xff]  }
 0x25c   :  { %5714 = vmatpush1.bf16.msra.mxu1 %v8309_v15  ;;  %v8369_v15 = vld [vmem:[#allocation7 + $0x100] ss:$24 sps:$4 sm:$0xff]  }
 0x25d   :  { %5611 = vmatpush1.bf16.msra.mxu0 %v8306_v58  ;;  %5715 = vmatprep.subr.bf16.mxu1 %v8317_v17  ;;  %v8374_v58 = vld [vmem:[#allocation7 + $0x84c] ss:$24 sps:$4 sm:$0xff]  }
 0x25e   :  { %5612 = vmatprep.subr.bf16.mxu0 %v8314_v21  ;;  %v8377_v17 = vld [vmem:[#allocation7 + $0x134] ss:$24 sps:$4 sm:$0xff]   ;;  %v8372_v21 = vld [vmem:[#allocation7 + $0x848] ss:$24 sps:$4 sm:$0xff]  }
 0x260   :  { %5716 = vmatpush1.bf16.msra.mxu1 %v8315_v22  ;;  %v8375_v22 = vld [vmem:[#allocation7 + $0x130] ss:$24 sps:$4 sm:$0xff]  }
 0x261   :  { %5613 = vmatpush1.bf16.msra.mxu0 %v8312_v23  ;;  %5717 = vmatprep.subr.bf16.mxu1 %v8323_v24  ;;  %v8380_v23 = vld [vmem:[#allocation7 + $0x87c] ss:$24 sps:$4 sm:$0xff]  }
 0x262   :  { %5614 = vmatprep.subr.bf16.mxu0 %v8320_v26  ;;  %v8383_v24 = vld [vmem:[#allocation7 + $0x164] ss:$24 sps:$4 sm:$0xff]   ;;  %v8378_v26 = vld [vmem:[#allocation7 + $0x878] ss:$24 sps:$4 sm:$0xff]  }
 0x264   :  { %5718 = vmatpush1.bf16.msra.mxu1 %v8321_v28  ;;  %v8381_v28 = vld [vmem:[#allocation7 + $0x160] ss:$24 sps:$4 sm:$0xff]  }
 0x265   :  { %5615 = vmatpush1.bf16.msra.mxu0 %v8318_v29  ;;  %5719 = vmatprep.subr.bf16.mxu1 %v8329_v31  ;;  %v8386_v29 = vld [vmem:[#allocation7 + $0x8ac] ss:$24 sps:$4 sm:$0xff]  }
 0x266   :  { %5616 = vmatprep.subr.bf16.mxu0 %v8326_v18  ;;  %v8389_v31 = vld [vmem:[#allocation7 + $0x194] ss:$24 sps:$4 sm:$0xff]   ;;  %v8384_v18 = vld [vmem:[#allocation7 + $0x8a8] ss:$24 sps:$4 sm:$0xff]  }
 0x268   :  { %5720 = vmatpush1.bf16.msra.mxu1 %v8327_v32  ;;  %v8387_v32 = vld [vmem:[#allocation7 + $0x190] ss:$24 sps:$4 sm:$0xff]  }
 0x269   :  { %5617 = vmatpush1.bf16.msra.mxu0 %v8324_v34  ;;  %5721 = vmatprep.subr.bf16.mxu1 %v8335_v35  ;;  %v8392_v34 = vld [vmem:[#allocation7 + $0x8dc] ss:$24 sps:$4 sm:$0xff]  }
 0x26a   :  { %5618 = vmatprep.subr.bf16.mxu0 %v8332_v50  ;;  %v8395_v35 = vld [vmem:[#allocation7 + $0x1c4] ss:$24 sps:$4 sm:$0xff]   ;;  %v8393_v50 = vld [vmem:[#allocation7 + $0x1c0] ss:$24 sps:$4 sm:$0xff]  }
 0x26c   :  { %5722 = vmatpush1.bf16.msra.mxu1 %v8333_v13  ;;  %v8398_v13 = vld [vmem:[#allocation7 + $0x90c] ss:$24 sps:$4 sm:$0xff]  }
 0x26d   :  { %5619 = vmatpush1.bf16.msra.mxu0 %v8330_v37  ;;  %5723 = vmatprep.subr.bf16.mxu1 %v8338_v38  ;;  %v8401_v37 = vld [vmem:[#allocation7 + $0x1f4] ss:$24 sps:$4 sm:$0xff]   ;;  %v8396_v38 = vld [vmem:[#allocation7 + $0x908] ss:$24 sps:$4 sm:$0xff]  }
 0x26e   :  { %5957 = vmatprep.subr.bf16.mxu0 %v8341_v43  ;;  %v8404_v43 = vld [vmem:[#allocation7 + $0x93c] ss:$24 sps:$4 sm:$0xff]  }
 0x270   :  { %5621 = vmatmul.mubr.bf16.vlgmr.msra.gmra.mrb[8].mxu0 %v9540_v4  ;;  %5724 = vmatpush1.bf16.msra.mxu1 %v8336_v48  ;;  %v8407_v48 = vld [vmem:[#allocation7 + $0x224] ss:$24 sps:$4 sm:$0xff]  }
 0x271   :  { %5958 = vmatpush1.bf16.msra.mxu0 %v8339_v49  ;;  %5989 = vmatprep.mubr.bf16.mxu0 %v9416_v60  ;;  %v8365_v60 = vld [vmem:[#allocation7 + $0xd4] ss:$24 sps:$4 sm:$0xff]   ;;  %v8402_v49 = vld [vmem:[#allocation7 + $0x938] ss:$24 sps:$4 sm:$0xff]  }
 0x272   :  { %5725 = vmatprep.subr.bf16.mxu1 %v8344_v16  ;;  %5959 = vmatprep.subr.bf16.mxu0 %v8347_v61  ;;  %v8405_v16 = vld [vmem:[#allocation7 + $0x220] ss:$24 sps:$4 sm:$0xff]   ;;  %v8410_v61 = vld [vmem:[#allocation7 + $0x96c] ss:$24 sps:$4 sm:$0xff]  }
 0x274   :  { %5726 = vmatpush1.bf16.msra.mxu1 %v8342_v51  ;;  %v8413_v51 = vld [vmem:[#allocation7 + $0x254] ss:$24 sps:$4 sm:$0xff]  }
 0x275   :  { %5960 = vmatpush1.bf16.msra.mxu0 %v8345_v57  ;;  %5727 = vmatprep.subr.bf16.mxu1 %v8350_v53  ;;  %v8408_v57 = vld [vmem:[#allocation7 + $0x968] ss:$24 sps:$4 sm:$0xff]  }
 0x276   :  { %5961 = vmatprep.subr.bf16.mxu0 %v8353_v45  ;;  %v8411_v53 = vld [vmem:[#allocation7 + $0x250] ss:$24 sps:$4 sm:$0xff]   ;;  %v8416_v45 = vld [vmem:[#allocation7 + $0x99c] ss:$24 sps:$4 sm:$0xff]  }
 0x278   :  { %5728 = vmatpush1.bf16.msra.mxu1 %v8348_v2  ;;  %v8419_v2 = vld [vmem:[#allocation7 + $0x284] ss:$24 sps:$4 sm:$0xff]  }
 0x279   :  { %5962 = vmatpush1.bf16.msra.mxu0 %v8351_v14  ;;  %5729 = vmatprep.subr.bf16.mxu1 %v8356_v59  ;;  %v8414_v14 = vld [vmem:[#allocation7 + $0x998] ss:$24 sps:$4 sm:$0xff]  }
 0x27a   :  { %5963 = vmatprep.subr.bf16.mxu0 %v8359_v63  ;;  %v8417_v59 = vld [vmem:[#allocation7 + $0x280] ss:$24 sps:$4 sm:$0xff]   ;;  %v8422_v63 = vld [vmem:[#allocation7 + $0x9cc] ss:$24 sps:$4 sm:$0xff]  }
 0x27c   :  { %5730 = vmatpush1.bf16.msra.mxu1 %v8354_v0  ;;  %v8425_v0 = vld [vmem:[#allocation7 + $0x2b4] ss:$24 sps:$4 sm:$0xff]  }
 0x27d   :  { %5964 = vmatpush1.bf16.msra.mxu0 %v8357_v1  ;;  %5731 = vmatprep.subr.bf16.mxu1 %v8362_v3  ;;  %v8420_v1 = vld [vmem:[#allocation7 + $0x9c8] ss:$24 sps:$4 sm:$0xff]  }
 0x27e   :  { %5965 = vmatprep.subr.bf16.mxu0 %v8365_v60  ;;  %v8423_v3 = vld [vmem:[#allocation7 + $0x2b0] ss:$24 sps:$4 sm:$0xff]   ;;  %v8428_v60 = vld [vmem:[#allocation7 + $0x9fc] ss:$24 sps:$4 sm:$0xff]  }
 0x280   :  { %5732 = vmatpush1.bf16.msra.mxu1 %v8360_v5  ;;  %v8431_v5 = vld [vmem:[#allocation7 + $0x2e4] ss:$24 sps:$4 sm:$0xff]  }
 0x281   :  { %5966 = vmatpush1.bf16.msra.mxu0 %v8363_v6  ;;  %5733 = vmatprep.subr.bf16.mxu1 %v8368_v8  ;;  %v8426_v6 = vld [vmem:[#allocation7 + $0x9f8] ss:$24 sps:$4 sm:$0xff]  }
 0x282   :  { %5967 = vmatprep.subr.bf16.mxu0 %v8371_v19  ;;  %v8429_v8 = vld [vmem:[#allocation7 + $0x2e0] ss:$24 sps:$4 sm:$0xff]   ;;  %v8434_v19 = vld [vmem:[#allocation7 + $0xa2c] ss:$24 sps:$4 sm:$0xff]  }
 0x284   :  { %5734 = vmatpush1.bf16.msra.mxu1 %v8366_v12 }
 0x285   :  { %5968 = vmatpush1.bf16.msra.mxu0 %v8369_v15  ;;  %5735 = vmatprep.subr.bf16.mxu1 %v8374_v58  ;;  %v8437_v15 = vld [vmem:[#allocation7 + $0x314] ss:$24 sps:$4 sm:$0xff]  }
 0x286   :  { %5969 = vmatprep.subr.bf16.mxu0 %v8377_v17 }
 0x288   :  { %5736 = vmatpush1.bf16.msra.mxu1 %v8372_v21  ;;  %v8432_v21 = vld [vmem:[#allocation7 + $0xa28] ss:$24 sps:$4 sm:$0xff]  }
 0x289   :  { %5970 = vmatpush1.bf16.msra.mxu0 %v8375_v22  ;;  %5737 = vmatprep.subr.bf16.mxu1 %v8380_v23  ;;  %v8435_v23 = vld [vmem:[#allocation7 + $0x310] ss:$24 sps:$4 sm:$0xff]  }
 0x28a   :  { %5971 = vmatprep.subr.bf16.mxu0 %v8383_v24  ;;  %v8440_v24 = vld [vmem:[#allocation7 + $0xa5c] ss:$24 sps:$4 sm:$0xff]  }
 0x28c   :  { %5738 = vmatpush1.bf16.msra.mxu1 %v8378_v26  ;;  %v8443_v26 = vld [vmem:[#allocation7 + $0x344] ss:$24 sps:$4 sm:$0xff]  }
 0x28d   :  { %5972 = vmatpush1.bf16.msra.mxu0 %v8381_v28  ;;  %5739 = vmatprep.subr.bf16.mxu1 %v8386_v29  ;;  %v8438_v28 = vld [vmem:[#allocation7 + $0xa58] ss:$24 sps:$4 sm:$0xff]  }
 0x28e   :  { %5973 = vmatprep.subr.bf16.mxu0 %v8389_v31  ;;  %v8441_v29 = vld [vmem:[#allocation7 + $0x340] ss:$24 sps:$4 sm:$0xff]   ;;  %v8446_v31 = vld [vmem:[#allocation7 + $0xa8c] ss:$24 sps:$4 sm:$0xff]  }
 0x290   :  { %5740 = vmatpush1.bf16.msra.mxu1 %v8384_v18  ;;  %v8449_v18 = vld [vmem:[#allocation7 + $0x374] ss:$24 sps:$4 sm:$0xff]  }
 0x291   :  { %5974 = vmatpush1.bf16.msra.mxu0 %v8387_v32  ;;  %5741 = vmatprep.subr.bf16.mxu1 %v8392_v34  ;;  %v8444_v32 = vld [vmem:[#allocation7 + $0xa88] ss:$24 sps:$4 sm:$0xff]  }
 0x292   :  { %5975 = vmatprep.subr.bf16.mxu0 %v8395_v35  ;;  %v8447_v34 = vld [vmem:[#allocation7 + $0x370] ss:$24 sps:$4 sm:$0xff]   ;;  %v8452_v35 = vld [vmem:[#allocation7 + $0xabc] ss:$24 sps:$4 sm:$0xff]  }
 0x294   :  { %5742 = vmatpush1.bf16.msra.mxu1 %v8390_v36  ;;  %v8455_v36 = vld [vmem:[#allocation7 + $0x3a4] ss:$24 sps:$4 sm:$0xff]  }
 0x295   :  { %5976 = vmatpush1.bf16.msra.mxu0 %v8393_v50  ;;  %5752 = vmatprep.subr.bf16.mxu1 %v8398_v13  ;;  %v8453_v50 = vld [vmem:[#allocation7 + $0x3a0] ss:$24 sps:$4 sm:$0xff]   ;;  %v8458_v13 = vld [vmem:[#allocation7 + $0xaec] ss:$24 sps:$4 sm:$0xff]  }
 0x296   :  { %5977 = vmatprep.subr.bf16.mxu0 %v8401_v37  ;;  %v8456_v37 = vld [vmem:[#allocation7 + $0xae8] ss:$24 sps:$4 sm:$0xff]  }
 0x297   :  { %5744 = vmatmul.mubr.bf16.vlgmr.msra.gmra.mrb[28].mxu1 %v9497_v20 }
 0x298   :  { %5753 = vmatpush1.bf16.msra.mxu1 %v8396_v38  ;;  %5784 = vmatprep.mubr.bf16.mxu1 %v9445_v39  ;;  %v8459_v38 = vld [vmem:[#allocation7 + $0x3d0] ss:$24 sps:$4 sm:$0xff]  }
 0x299   :  { %5978 = vmatpush1.bf16.msra.mxu0 %v8399_v42  ;;  %5754 = vmatprep.subr.bf16.mxu1 %v8404_v43  ;;  %v8464_v42 = vld [vmem:[#allocation7 + $0xb1c] ss:$24 sps:$4 sm:$0xff]  }
 0x29a   :  { %5979 = vmatprep.subr.bf16.mxu0 %v8407_v48  ;;  %v8467_v43 = vld [vmem:[#allocation7 + $0x404] ss:$24 sps:$4 sm:$0xff]   ;;  %v8462_v48 = vld [vmem:[#allocation7 + $0xb18] ss:$24 sps:$4 sm:$0xff]  }
 0x29c   :  { %5755 = vmatpush1.bf16.msra.mxu1 %v8402_v49  ;;  %v8465_v49 = vld [vmem:[#allocation7 + $0x400] ss:$24 sps:$4 sm:$0xff]  }
 0x29d   :  { %5980 = vmatpush1.bf16.msra.mxu0 %v8405_v16  ;;  %5756 = vmatprep.subr.bf16.mxu1 %v8410_v61  ;;  %v8470_v16 = vld [vmem:[#allocation7 + $0xb4c] ss:$24 sps:$4 sm:$0xff]  }
 0x29e   :  { %5981 = vmatprep.subr.bf16.mxu0 %v8413_v51  ;;  %v8473_v61 = vld [vmem:[#allocation7 + $0x434] ss:$24 sps:$4 sm:$0xff]   ;;  %v8468_v51 = vld [vmem:[#allocation7 + $0xb48] ss:$24 sps:$4 sm:$0xff]  }
 0x2a0   :  { %5757 = vmatpush1.bf16.msra.mxu1 %v8408_v57  ;;  %v8471_v57 = vld [vmem:[#allocation7 + $0x430] ss:$24 sps:$4 sm:$0xff]  }
 0x2a1   :  { %5982 = vmatpush1.bf16.msra.mxu0 %v8411_v53  ;;  %5758 = vmatprep.subr.bf16.mxu1 %v8416_v45  ;;  %v8476_v53 = vld [vmem:[#allocation7 + $0xb7c] ss:$24 sps:$4 sm:$0xff]  }
 0x2a2   :  { %5983 = vmatprep.subr.bf16.mxu0 %v8419_v2  ;;  %v8479_v45 = vld [vmem:[#allocation7 + $0x464] ss:$24 sps:$4 sm:$0xff]   ;;  %v8474_v2 = vld [vmem:[#allocation7 + $0xb78] ss:$24 sps:$4 sm:$0xff]  }
 0x2a4   :  { %5759 = vmatpush1.bf16.msra.mxu1 %v8414_v14  ;;  %v8477_v14 = vld [vmem:[#allocation7 + $0x460] ss:$24 sps:$4 sm:$0xff]  }
 0x2a5   :  { %5984 = vmatpush1.bf16.msra.mxu0 %v8417_v59  ;;  %5760 = vmatprep.subr.bf16.mxu1 %v8422_v63  ;;  %v8482_v59 = vld [vmem:[#allocation7 + $0xbac] ss:$24 sps:$4 sm:$0xff]  }
 0x2a6   :  { %5985 = vmatprep.subr.bf16.mxu0 %v8425_v0  ;;  %v8485_v63 = vld [vmem:[#allocation7 + $0x494] ss:$24 sps:$4 sm:$0xff]   ;;  %v8480_v0 = vld [vmem:[#allocation7 + $0xba8] ss:$24 sps:$4 sm:$0xff]  }
 0x2a8   :  { %5761 = vmatpush1.bf16.msra.mxu1 %v8420_v1  ;;  %v8483_v1 = vld [vmem:[#allocation7 + $0x490] ss:$24 sps:$4 sm:$0xff]  }
 0x2a9   :  { %5986 = vmatpush1.bf16.msra.mxu0 %v8423_v3  ;;  %5762 = vmatprep.subr.bf16.mxu1 %v8428_v60  ;;  %v8488_v3 = vld [vmem:[#allocation7 + $0xbdc] ss:$24 sps:$4 sm:$0xff]  }
 0x2aa   :  { %v9546_v12 = vpop.f32.mrb[24].mxu1  ;;  %5987 = vmatprep.subr.bf16.mxu0 %v8431_v5  ;;  %v8491_v60 = vld [vmem:[#allocation7 + $0x4c4] ss:$24 sps:$4 sm:$0xff]   ;;  %v8486_v5 = vld [vmem:[#allocation7 + $0xbd8] ss:$24 sps:$4 sm:$0xff]  }
 0x2ab   :  { %v9548_v58 = vpop.f32.mrb[25].mxu1 }
 0x2ac   :  { %v5421_v17 = vpop.f32.mrb[26].mxu1  ;;  %5763 = vmatpush1.bf16.msra.mxu1 %v8426_v6  ;;  %v8489_v6 = vld [vmem:[#allocation7 + $0x4c0] ss:$24 sps:$4 sm:$0xff]  }
 0x2ad   :  { %5988 = vmatpush1.bf16.msra.mxu0 %v8429_v8  ;;  %v5422_v22 = vpop.f32.mrb[27].mxu1  ;;  %5764 = vmatprep.subr.bf16.mxu1 %v8434_v19  ;;  %v8494_v8 = vld [vmem:[#allocation7 + $0xc0c] ss:$24 sps:$4 sm:$0xff]   ;;  %v8495_v17 = vld [vmem:[#allocation7 + $0x4f0] ss:$24 sps:$4 sm:$0xff]  }
 0x2ae   :  { %5998 = vmatprep.subr.bf16.mxu0 %v8437_v15  ;;  %v8497_v19 = vld [vmem:[#allocation7 + $0x4f4] ss:$24 sps:$4 sm:$0xff]   ;;  %v8492_v15 = vld [vmem:[#allocation7 + $0xc08] ss:$24 sps:$4 sm:$0xff]   ;;  %v8503_v22 = vld [vmem:[#allocation7 + $0x524] ss:$24 sps:$4 sm:$0xff]  }
 0x2b0   :  { %5990 = vmatmul.mubr.bf16.vlgmr.msra.gmra.mrb[12].mxu0 %v9418_v62  ;;  %5765 = vmatpush1.bf16.msra.mxu1 %v8432_v21  ;;  %v8450_v62 = vld [vmem:[#allocation7 + $0xab8] ss:$24 sps:$4 sm:$0xff]   ;;  %v8500_v21 = vld [vmem:[#allocation7 + $0xc3c] ss:$24 sps:$4 sm:$0xff]  }
 0x2b1   :  { %5999 = vmatpush1.bf16.msra.mxu0 %v8435_v23  ;;  %6030 = vmatprep.mubr.bf16.mxu0 %v9426_v10  ;;  %v8461_v10 = vld [vmem:[#allocation7 + $0x3d4] ss:$24 sps:$4 sm:$0xff]   ;;  %v8498_v23 = vld [vmem:[#allocation7 + $0xc38] ss:$24 sps:$4 sm:$0xff]  }
 0x2b2   :  { %5766 = vmatprep.subr.bf16.mxu1 %v8440_v24  ;;  %6000 = vmatprep.subr.bf16.mxu0 %v8443_v26  ;;  %v8501_v24 = vld [vmem:[#allocation7 + $0x520] ss:$24 sps:$4 sm:$0xff]   ;;  %v8506_v26 = vld [vmem:[#allocation7 + $0xc6c] ss:$24 sps:$4 sm:$0xff]  }
 0x2b4   :  { %5767 = vmatpush1.bf16.msra.mxu1 %v8438_v28  ;;  %v8509_v28 = vld [vmem:[#allocation7 + $0x554] ss:$24 sps:$4 sm:$0xff]  }
 0x2b5   :  { %6001 = vmatpush1.bf16.msra.mxu0 %v8441_v29  ;;  %5768 = vmatprep.subr.bf16.mxu1 %v8446_v31  ;;  %v8504_v29 = vld [vmem:[#allocation7 + $0xc68] ss:$24 sps:$4 sm:$0xff]  }
 0x2b6   :  { %6002 = vmatprep.subr.bf16.mxu0 %v8449_v18  ;;  %v8507_v31 = vld [vmem:[#allocation7 + $0x550] ss:$24 sps:$4 sm:$0xff]   ;;  %v8512_v18 = vld [vmem:[#allocation7 + $0xc9c] ss:$24 sps:$4 sm:$0xff]  }
 0x2b8   :  { %5769 = vmatpush1.bf16.msra.mxu1 %v8444_v32  ;;  %v8515_v32 = vld [vmem:[#allocation7 + $0x584] ss:$24 sps:$4 sm:$0xff]  }
 0x2b9   :  { %6003 = vmatpush1.bf16.msra.mxu0 %v8447_v34  ;;  %5770 = vmatprep.subr.bf16.mxu1 %v8452_v35  ;;  %v8510_v34 = vld [vmem:[#allocation7 + $0xc98] ss:$24 sps:$4 sm:$0xff]  }
 0x2ba   :  { %6004 = vmatprep.subr.bf16.mxu0 %v8455_v36  ;;  %v8513_v35 = vld [vmem:[#allocation7 + $0x580] ss:$24 sps:$4 sm:$0xff]   ;;  %v8518_v36 = vld [vmem:[#allocation7 + $0xccc] ss:$24 sps:$4 sm:$0xff]  }
 0x2bc   :  { %5771 = vmatpush1.bf16.msra.mxu1 %v8450_v62  ;;  %v8521_v62 = vld [vmem:[#allocation7 + $0x5b4] ss:$24 sps:$4 sm:$0xff]  }
 0x2bd   :  { %6005 = vmatpush1.bf16.msra.mxu0 %v8453_v50  ;;  %5772 = vmatprep.subr.bf16.mxu1 %v8458_v13  ;;  %v8516_v50 = vld [vmem:[#allocation7 + $0xcc8] ss:$24 sps:$4 sm:$0xff]  }
 0x2be   :  { %6006 = vmatprep.subr.bf16.mxu0 %v8461_v10  ;;  %v8519_v13 = vld [vmem:[#allocation7 + $0x5b0] ss:$24 sps:$4 sm:$0xff]   ;;  %v8524_v10 = vld [vmem:[#allocation7 + $0xcfc] ss:$24 sps:$4 sm:$0xff]  }
 0x2c0   :  { %5773 = vmatpush1.bf16.msra.mxu1 %v8456_v37  ;;  %v8527_v37 = vld [vmem:[#allocation7 + $0x5e4] ss:$24 sps:$4 sm:$0xff]  }
 0x2c1   :  { %6007 = vmatpush1.bf16.msra.mxu0 %v8459_v38  ;;  %5774 = vmatprep.subr.bf16.mxu1 %v8464_v42  ;;  %v8522_v38 = vld [vmem:[#allocation7 + $0xcf8] ss:$24 sps:$4 sm:$0xff]  }
 0x2c2   :  { %6008 = vmatprep.subr.bf16.mxu0 %v8467_v43  ;;  %v8525_v42 = vld [vmem:[#allocation7 + $0x5e0] ss:$24 sps:$4 sm:$0xff]   ;;  %v8530_v43 = vld [vmem:[#allocation7 + $0xd2c] ss:$24 sps:$4 sm:$0xff]  }
 0x2c4   :  { %5775 = vmatpush1.bf16.msra.mxu1 %v8462_v48  ;;  %v8533_v48 = vld [vmem:[#allocation7 + $0x614] ss:$24 sps:$4 sm:$0xff]  }
 0x2c5   :  { %6009 = vmatpush1.bf16.msra.mxu0 %v8465_v49  ;;  %5776 = vmatprep.subr.bf16.mxu1 %v8470_v16  ;;  %v8528_v49 = vld [vmem:[#allocation7 + $0xd28] ss:$24 sps:$4 sm:$0xff]  }
 0x2c6   :  { %6010 = vmatprep.subr.bf16.mxu0 %v8473_v61  ;;  %v8531_v16 = vld [vmem:[#allocation7 + $0x610] ss:$24 sps:$4 sm:$0xff]   ;;  %v8536_v61 = vld [vmem:[#allocation7 + $0xd5c] ss:$24 sps:$4 sm:$0xff]  }
 0x2c8   :  { %5777 = vmatpush1.bf16.msra.mxu1 %v8468_v51  ;;  %v8539_v51 = vld [vmem:[#allocation7 + $0x644] ss:$24 sps:$4 sm:$0xff]  }
 0x2c9   :  { %6011 = vmatpush1.bf16.msra.mxu0 %v8471_v57  ;;  %5778 = vmatprep.subr.bf16.mxu1 %v8476_v53  ;;  %v8534_v57 = vld [vmem:[#allocation7 + $0xd58] ss:$24 sps:$4 sm:$0xff]  }
 0x2ca   :  { %6012 = vmatprep.subr.bf16.mxu0 %v8479_v45  ;;  %v8537_v53 = vld [vmem:[#allocation7 + $0x640] ss:$24 sps:$4 sm:$0xff]   ;;  %v8542_v45 = vld [vmem:[#allocation7 + $0xd8c] ss:$24 sps:$4 sm:$0xff]  }
 0x2cc   :  { %5779 = vmatpush1.bf16.msra.mxu1 %v8474_v2  ;;  %v8545_v2 = vld [vmem:[#allocation7 + $0x674] ss:$24 sps:$4 sm:$0xff]  }
 0x2cd   :  { %6013 = vmatpush1.bf16.msra.mxu0 %v8477_v14  ;;  %5780 = vmatprep.subr.bf16.mxu1 %v8482_v59  ;;  %v8540_v14 = vld [vmem:[#allocation7 + $0xd88] ss:$24 sps:$4 sm:$0xff]  }
 0x2ce   :  { %6014 = vmatprep.subr.bf16.mxu0 %v8485_v63  ;;  %v8543_v59 = vld [vmem:[#allocation7 + $0x670] ss:$24 sps:$4 sm:$0xff]   ;;  %v8548_v63 = vld [vmem:[#allocation7 + $0xdbc] ss:$24 sps:$4 sm:$0xff]  }
 0x2d0   :  { %5781 = vmatpush1.bf16.msra.mxu1 %v8480_v0  ;;  %v8551_v0 = vld [vmem:[#allocation7 + $0x6a4] ss:$24 sps:$4 sm:$0xff]  }
 0x2d1   :  { %6015 = vmatpush1.bf16.msra.mxu0 %v8483_v1  ;;  %5782 = vmatprep.subr.bf16.mxu1 %v8488_v3  ;;  %v8549_v1 = vld [vmem:[#allocation7 + $0x6a0] ss:$24 sps:$4 sm:$0xff]   ;;  %v8554_v3 = vld [vmem:[#allocation7 + $0xdec] ss:$24 sps:$4 sm:$0xff]  }
 0x2d2   :  { %6016 = vmatprep.subr.bf16.mxu0 %v8491_v60  ;;  %v8552_v60 = vld [vmem:[#allocation7 + $0xde8] ss:$24 sps:$4 sm:$0xff]  }
 0x2d4   :  { %5783 = vmatpush1.bf16.msra.mxu1 %v8486_v5  ;;  %v8555_v5 = vld [vmem:[#allocation7 + $0x6d0] ss:$24 sps:$4 sm:$0xff]  }
 0x2d5   :  { %6017 = vmatpush1.bf16.msra.mxu0 %v8489_v6  ;;  %5793 = vmatprep.subr.bf16.mxu1 %v8494_v8  ;;  %v8560_v6 = vld [vmem:[#allocation7 + $0xe1c] ss:$24 sps:$4 sm:$0xff]  }
 0x2d6   :  { %6018 = vmatprep.subr.bf16.mxu0 %v8497_v19  ;;  %v8563_v8 = vld [vmem:[#allocation7 + $0x704] ss:$24 sps:$4 sm:$0xff]   ;;  %v8558_v19 = vld [vmem:[#allocation7 + $0xe18] ss:$24 sps:$4 sm:$0xff]  }
 0x2d7   :  { %5785 = vmatmul.mubr.bf16.vlgmr.msra.gmra.mrb[28].mxu1 %v9447_v40 }
 0x2d8   :  { %5794 = vmatpush1.bf16.msra.mxu1 %v8492_v15  ;;  %5825 = vmatprep.mubr.bf16.mxu1 %v9450_v41  ;;  %v8561_v15 = vld [vmem:[#allocation7 + $0x700] ss:$24 sps:$4 sm:$0xff]  }
 0x2d9   :  { %6019 = vmatpush1.bf16.msra.mxu0 %v8495_v17  ;;  %5795 = vmatprep.subr.bf16.mxu1 %v8500_v21  ;;  %v8566_v17 = vld [vmem:[#allocation7 + $0xe4c] ss:$24 sps:$4 sm:$0xff]  }
 0x2da   :  { %6020 = vmatprep.subr.bf16.mxu0 %v8503_v22  ;;  %v8569_v21 = vld [vmem:[#allocation7 + $0x734] ss:$24 sps:$4 sm:$0xff]   ;;  %v8564_v22 = vld [vmem:[#allocation7 + $0xe48] ss:$24 sps:$4 sm:$0xff]  }
 0x2dc   :  { %5796 = vmatpush1.bf16.msra.mxu1 %v8498_v23  ;;  %v8567_v23 = vld [vmem:[#allocation7 + $0x730] ss:$24 sps:$4 sm:$0xff]  }
 0x2dd   :  { %6021 = vmatpush1.bf16.msra.mxu0 %v8501_v24  ;;  %5797 = vmatprep.subr.bf16.mxu1 %v8506_v26  ;;  %v8572_v24 = vld [vmem:[#allocation7 + $0xe7c] ss:$24 sps:$4 sm:$0xff]  }
 0x2de   :  { %6022 = vmatprep.subr.bf16.mxu0 %v8509_v28  ;;  %v8575_v26 = vld [vmem:[#allocation7 + $0x764] ss:$24 sps:$4 sm:$0xff]   ;;  %v8570_v28 = vld [vmem:[#allocation7 + $0xe78] ss:$24 sps:$4 sm:$0xff]  }
 0x2e0   :  { %5798 = vmatpush1.bf16.msra.mxu1 %v8504_v29  ;;  %v8573_v29 = vld [vmem:[#allocation7 + $0x760] ss:$24 sps:$4 sm:$0xff]  }
 0x2e1   :  { %6023 = vmatpush1.bf16.msra.mxu0 %v8507_v31  ;;  %5799 = vmatprep.subr.bf16.mxu1 %v8512_v18  ;;  %v8578_v31 = vld [vmem:[#allocation7 + $0xeac] ss:$24 sps:$4 sm:$0xff]  }
 0x2e2   :  { %6024 = vmatprep.subr.bf16.mxu0 %v8515_v32  ;;  %v8581_v18 = vld [vmem:[#allocation7 + $0x794] ss:$24 sps:$4 sm:$0xff]   ;;  %v8576_v32 = vld [vmem:[#allocation7 + $0xea8] ss:$24 sps:$4 sm:$0xff]  }
 0x2e4   :  { %5800 = vmatpush1.bf16.msra.mxu1 %v8510_v34  ;;  %v8579_v34 = vld [vmem:[#allocation7 + $0x790] ss:$24 sps:$4 sm:$0xff]  }
 0x2e5   :  { %6025 = vmatpush1.bf16.msra.mxu0 %v8513_v35  ;;  %5801 = vmatprep.subr.bf16.mxu1 %v8518_v36  ;;  %v8584_v35 = vld [vmem:[#allocation7 + $0xedc] ss:$24 sps:$4 sm:$0xff]  }
 0x2e6   :  { %6026 = vmatprep.subr.bf16.mxu0 %v8521_v62  ;;  %v8587_v36 = vld [vmem:[#allocation7 + $0x7c4] ss:$24 sps:$4 sm:$0xff]   ;;  %v8582_v62 = vld [vmem:[#allocation7 + $0xed8] ss:$24 sps:$4 sm:$0xff]  }
 0x2e8   :  { %5802 = vmatpush1.bf16.msra.mxu1 %v8516_v50  ;;  %v8585_v50 = vld [vmem:[#allocation7 + $0x7c0] ss:$24 sps:$4 sm:$0xff]  }
 0x2e9   :  { %6027 = vmatpush1.bf16.msra.mxu0 %v8519_v13  ;;  %5803 = vmatprep.subr.bf16.mxu1 %v8524_v10  ;;  %v8590_v13 = vld [vmem:[#allocation7 + $0xf0c] ss:$24 sps:$4 sm:$0xff]  }
 0x2ea   :  { %6028 = vmatprep.subr.bf16.mxu0 %v8527_v37  ;;  %v8593_v10 = vld [vmem:[#allocation7 + $0x7f4] ss:$24 sps:$4 sm:$0xff]   ;;  %v8588_v37 = vld [vmem:[#allocation7 + $0xf08] ss:$24 sps:$4 sm:$0xff]  }
 0x2ec   :  { %5804 = vmatpush1.bf16.msra.mxu1 %v8522_v38  ;;  %v8591_v38 = vld [vmem:[#allocation7 + $0x7f0] ss:$24 sps:$4 sm:$0xff]  }
 0x2ed   :  { %6029 = vmatpush1.bf16.msra.mxu0 %v8525_v42  ;;  %5805 = vmatprep.subr.bf16.mxu1 %v8530_v43  ;;  %v8596_v42 = vld [vmem:[#allocation7 + $0xf3c] ss:$24 sps:$4 sm:$0xff]  }
 0x2ee   :  { %6039 = vmatprep.subr.bf16.mxu0 %v8533_v48  ;;  %v8599_v43 = vld [vmem:[#allocation7 + $0x824] ss:$24 sps:$4 sm:$0xff]   ;;  %v8594_v48 = vld [vmem:[#allocation7 + $0xf38] ss:$24 sps:$4 sm:$0xff]  }
 0x2f0   :  { %6031 = vmatmul.mubr.bf16.vlgmr.msra.gmra.mrb[12].mxu0 %v9474_v52  ;;  %5806 = vmatpush1.bf16.msra.mxu1 %v8528_v49  ;;  %v8546_v52 = vld [vmem:[#allocation7 + $0xdb8] ss:$24 sps:$4 sm:$0xff]  }
 0x2f1   :  { %6040 = vmatpush1.bf16.msra.mxu0 %v8531_v16  ;;  %6071 = vmatprep.mubr.bf16.mxu0 %v9476_v54  ;;  %v8557_v54 = vld [vmem:[#allocation7 + $0x6d4] ss:$24 sps:$4 sm:$0xff]   ;;  %v8597_v49 = vld [vmem:[#allocation7 + $0x820] ss:$24 sps:$4 sm:$0xff]  }
 0x2f2   :  { %5807 = vmatprep.subr.bf16.mxu1 %v8536_v61  ;;  %6041 = vmatprep.subr.bf16.mxu0 %v8539_v51  ;;  %v8602_v16 = vld [vmem:[#allocation7 + $0xf6c] ss:$24 sps:$4 sm:$0xff]   ;;  %v8600_v51 = vld [vmem:[#allocation7 + $0xf68] ss:$24 sps:$4 sm:$0xff]  }
 0x2f3   :  { %v8605_v61 = vld [vmem:[#allocation7 + $0x854] ss:$24 sps:$4 sm:$0xff]  }
 0x2f4   :  { %5808 = vmatpush1.bf16.msra.mxu1 %v8534_v57  ;;  %v8603_v57 = vld [vmem:[#allocation7 + $0x850] ss:$24 sps:$4 sm:$0xff]  }
 0x2f5   :  { %6042 = vmatpush1.bf16.msra.mxu0 %v8537_v53  ;;  %5809 = vmatprep.subr.bf16.mxu1 %v8542_v45  ;;  %v8608_v53 = vld [vmem:[#allocation7 + $0xf9c] ss:$24 sps:$4 sm:$0xff]  }
 0x2f6   :  { %6043 = vmatprep.subr.bf16.mxu0 %v8545_v2  ;;  %v8611_v45 = vld [vmem:[#allocation7 + $0x884] ss:$24 sps:$4 sm:$0xff]   ;;  %v8606_v2 = vld [vmem:[#allocation7 + $0xf98] ss:$24 sps:$4 sm:$0xff]  }
 0x2f8   :  { %5810 = vmatpush1.bf16.msra.mxu1 %v8540_v14  ;;  %v8609_v14 = vld [vmem:[#allocation7 + $0x880] ss:$24 sps:$4 sm:$0xff]  }
 0x2f9   :  { %6044 = vmatpush1.bf16.msra.mxu0 %v8543_v59  ;;  %5811 = vmatprep.subr.bf16.mxu1 %v8548_v63  ;;  %v8614_v59 = vld [vmem:[#allocation7 + $0xfcc] ss:$24 sps:$4 sm:$0xff]  }
 0x2fa   :  { %6045 = vmatprep.subr.bf16.mxu0 %v8551_v0  ;;  %v8617_v63 = vld [vmem:[#allocation7 + $0x8b4] ss:$24 sps:$4 sm:$0xff]   ;;  %v8612_v0 = vld [vmem:[#allocation7 + $0xfc8] ss:$24 sps:$4 sm:$0xff]  }
 0x2fc   :  { %5812 = vmatpush1.bf16.msra.mxu1 %v8546_v52  ;;  %v8615_v52 = vld [vmem:[#allocation7 + $0x8b0] ss:$24 sps:$4 sm:$0xff]  }
 0x2fd   :  { %6046 = vmatpush1.bf16.msra.mxu0 %v8549_v1  ;;  %5813 = vmatprep.subr.bf16.mxu1 %v8554_v3  ;;  %v8620_v1 = vld [vmem:[#allocation7 + $0xffc] ss:$24 sps:$4 sm:$0xff]  }
 0x2fe   :  { %6047 = vmatprep.subr.bf16.mxu0 %v8557_v54  ;;  %v8623_v3 = vld [vmem:[#allocation7 + $0x8e4] ss:$24 sps:$4 sm:$0xff]   ;;  %v8618_v54 = vld [vmem:[#allocation7 + $0xff8] ss:$24 sps:$4 sm:$0xff]  }
 0x300   :  { %5814 = vmatpush1.bf16.msra.mxu1 %v8552_v60  ;;  %v8621_v60 = vld [vmem:[#allocation7 + $0x8e0] ss:$24 sps:$4 sm:$0xff]  }
 0x301   :  { %6048 = vmatpush1.bf16.msra.mxu0 %v8555_v5  ;;  %5815 = vmatprep.subr.bf16.mxu1 %v8560_v6  ;;  %v8626_v5 = vld [vmem:[#allocation7 + $0x102c] ss:$24 sps:$4 sm:$0xff]  }
 0x302   :  { %6049 = vmatprep.subr.bf16.mxu0 %v8563_v8  ;;  %v8629_v6 = vld [vmem:[#allocation7 + $0x914] ss:$24 sps:$4 sm:$0xff]   ;;  %v8624_v8 = vld [vmem:[#allocation7 + $0x1028] ss:$24 sps:$4 sm:$0xff]  }
 0x304   :  { %5816 = vmatpush1.bf16.msra.mxu1 %v8558_v19  ;;  %v8627_v19 = vld [vmem:[#allocation7 + $0x910] ss:$24 sps:$4 sm:$0xff]  }
 0x305   :  { %6050 = vmatpush1.bf16.msra.mxu0 %v8561_v15  ;;  %5817 = vmatprep.subr.bf16.mxu1 %v8566_v17  ;;  %v8632_v15 = vld [vmem:[#allocation7 + $0x105c] ss:$24 sps:$4 sm:$0xff]  }
 0x306   :  { %6051 = vmatprep.subr.bf16.mxu0 %v8569_v21  ;;  %v8635_v17 = vld [vmem:[#allocation7 + $0x944] ss:$24 sps:$4 sm:$0xff]   ;;  %v8630_v21 = vld [vmem:[#allocation7 + $0x1058] ss:$24 sps:$4 sm:$0xff]  }
 0x308   :  { %5818 = vmatpush1.bf16.msra.mxu1 %v8564_v22  ;;  %v8633_v22 = vld [vmem:[#allocation7 + $0x940] ss:$24 sps:$4 sm:$0xff]  }
 0x309   :  { %6052 = vmatpush1.bf16.msra.mxu0 %v8567_v23  ;;  %5819 = vmatprep.subr.bf16.mxu1 %v8572_v24  ;;  %v8638_v23 = vld [vmem:[#allocation7 + $0x108c] ss:$24 sps:$4 sm:$0xff]  }
 0x30a   :  { %6053 = vmatprep.subr.bf16.mxu0 %v8575_v26  ;;  %v8641_v24 = vld [vmem:[#allocation7 + $0x974] ss:$24 sps:$4 sm:$0xff]   ;;  %v8636_v26 = vld [vmem:[#allocation7 + $0x1088] ss:$24 sps:$4 sm:$0xff]  }
 0x30c   :  { %5820 = vmatpush1.bf16.msra.mxu1 %v8570_v28  ;;  %v8639_v28 = vld [vmem:[#allocation7 + $0x970] ss:$24 sps:$4 sm:$0xff]  }
 0x30d   :  { %6054 = vmatpush1.bf16.msra.mxu0 %v8573_v29  ;;  %5821 = vmatprep.subr.bf16.mxu1 %v8578_v31  ;;  %v8644_v29 = vld [vmem:[#allocation7 + $0x10bc] ss:$24 sps:$4 sm:$0xff]  }
 0x30e   :  { %6055 = vmatprep.subr.bf16.mxu0 %v8581_v18  ;;  %v8647_v31 = vld [vmem:[#allocation7 + $0x9a4] ss:$24 sps:$4 sm:$0xff]   ;;  %v8645_v18 = vld [vmem:[#allocation7 + $0x9a0] ss:$24 sps:$4 sm:$0xff]  }
 0x310   :  { %5822 = vmatpush1.bf16.msra.mxu1 %v8576_v32  ;;  %v8650_v32 = vld [vmem:[#allocation7 + $0x10ec] ss:$24 sps:$4 sm:$0xff]  }
 0x311   :  { %6056 = vmatpush1.bf16.msra.mxu0 %v8579_v34  ;;  %5823 = vmatprep.subr.bf16.mxu1 %v8584_v35  ;;  %v1429_v34 = vld [vmem:[#allocation8] sm:$0x3f] }
 0x312   :  { %6057 = vmatprep.subr.bf16.mxu0 %v8587_v36  ;;  %v8648_v35 = vld [vmem:[#allocation7 + $0x10e8] ss:$24 sps:$4 sm:$0xff]  }
 0x313   :  { %v8651_v36 = vld [vmem:[#allocation7 + $0x9d0] ss:$24 sps:$4 sm:$0xff]  }
 0x314   :  { %5824 = vmatpush1.bf16.msra.mxu1 %v8582_v62  ;;  %v8656_v62 = vld [vmem:[#allocation7 + $0x111c] ss:$24 sps:$4 sm:$0xff]  }
 0x315   :  { %6058 = vmatpush1.bf16.msra.mxu0 %v8585_v50  ;;  %5834 = vmatprep.subr.bf16.mxu1 %v8590_v13  ;;  %v1434_v50 = vrot.slane %v1429_v34, %v9400_v44  ;;  %v8659_v13 = vld [vmem:[#allocation7 + $0xa04] ss:$24 sps:$4 sm:$0xff]  }
 0x316   :  { %6059 = vmatprep.subr.bf16.mxu0 %v8593_v10  ;;  %v1438_v10 = vrot.slane %v1429_v34, %v9405_v46  ;;  %v8708_v34 = vld [vmem:[#allocation7 + $0x12c8] ss:$24 sps:$4 sm:$0xff]  }
 0x317   :  { %5826 = vmatmul.mubr.bf16.vlgmr.msra.gmra.mrb[28].mxu1 %v9486_v33 }
 0x318   :  { %5835 = vmatpush1.bf16.msra.mxu1 %v8588_v37  ;;  %5866 = vmatprep.mubr.bf16.mxu1 %v9488_v56  ;;  %v8654_v37 = vld [vmem:[#allocation7 + $0x1118] ss:$24 sps:$4 sm:$0xff]  }
 0x319   :  { %6060 = vmatpush1.bf16.msra.mxu0 %v8591_v38  ;;  %5836 = vmatprep.subr.bf16.mxu1 %v8596_v42  ;;  %v8657_v38 = vld [vmem:[#allocation7 + $0xa00] ss:$24 sps:$4 sm:$0xff]   ;;  %v8662_v42 = vld [vmem:[#allocation7 + $0x114c] ss:$24 sps:$4 sm:$0xff]  }
 0x31a   :  { %6061 = vmatprep.subr.bf16.mxu0 %v8599_v43  ;;  %v7733_v43 = vadd.f32 %v9546_v12, %v1434_v50  ;;  %v8671_v12 = vld [vmem:[#allocation7 + $0xa64] ss:$24 sps:$4 sm:$0xff]   ;;  %v8714_v50 = vld [vmem:[#allocation7 + $0x12f8] ss:$24 sps:$4 sm:$0xff]  }
 0x31c   :  { %5837 = vmatpush1.bf16.msra.mxu1 %v8594_v48  ;;  %v8665_v48 = vld [vmem:[#allocation7 + $0xa34] ss:$24 sps:$4 sm:$0xff]  }
 0x31d   :  { %6062 = vmatpush1.bf16.msra.mxu0 %v8597_v49  ;;  %5838 = vmatprep.subr.bf16.mxu1 %v8602_v16  ;;  %v7735_v49 = vadd.f32 %v9548_v58, %v1438_v10  ;;  %v8669_v58 = vld [vmem:[#allocation7 + $0xa60] ss:$24 sps:$4 sm:$0xff]   ;;  %v8722_v10 = vld [vmem:[#allocation7 + $0x132c] ss:$24 sps:$4 sm:$0xff]  }
 0x31e   :  { %6063 = vmatprep.subr.bf16.mxu0 %v8605_v61 }
 0x320   :  { %5839 = vmatpush1.bf16.msra.mxu1 %v8600_v51  ;;  %v8660_v51 = vld [vmem:[#allocation7 + $0x1148] ss:$24 sps:$4 sm:$0xff]  }
 0x321   :  { %6064 = vmatpush1.bf16.msra.mxu0 %v8603_v57  ;;  %5840 = vmatprep.subr.bf16.mxu1 %v8608_v53  ;;  %v8663_v53 = vld [vmem:[#allocation7 + $0xa30] ss:$24 sps:$4 sm:$0xff]  }
 0x322   :  { %6065 = vmatprep.subr.bf16.mxu0 %v8611_v45  ;;  %v8668_v45 = vld [vmem:[#allocation7 + $0x117c] ss:$24 sps:$4 sm:$0xff]  }
 0x324   :  { %5841 = vmatpush1.bf16.msra.mxu1 %v8606_v2 }
 0x325   :  { %6066 = vmatpush1.bf16.msra.mxu0 %v8609_v14  ;;  %5842 = vmatprep.subr.bf16.mxu1 %v8614_v59  ;;  %v8666_v14 = vld [vmem:[#allocation7 + $0x1178] ss:$24 sps:$4 sm:$0xff]   ;;  %v8674_v59 = vld [vmem:[#allocation7 + $0x11ac] ss:$24 sps:$4 sm:$0xff]  }
 0x326   :  { %6067 = vmatprep.subr.bf16.mxu0 %v8617_v63  ;;  %v8677_v63 = vld [vmem:[#allocation7 + $0xa94] ss:$24 sps:$4 sm:$0xff]  }
 0x328   :  { %5843 = vmatpush1.bf16.msra.mxu1 %v8612_v0  ;;  %v8672_v0 = vld [vmem:[#allocation7 + $0x11a8] ss:$24 sps:$4 sm:$0xff]  }
 0x329   :  { %6068 = vmatpush1.bf16.msra.mxu0 %v8615_v52  ;;  %5844 = vmatprep.subr.bf16.mxu1 %v8620_v1  ;;  %v8675_v52 = vld [vmem:[#allocation7 + $0xa90] ss:$24 sps:$4 sm:$0xff]   ;;  %v8680_v1 = vld [vmem:[#allocation7 + $0x11dc] ss:$24 sps:$4 sm:$0xff]  }
 0x32a   :  { %6069 = vmatprep.subr.bf16.mxu0 %v8623_v3  ;;  %v8683_v3 = vld [vmem:[#allocation7 + $0xac4] ss:$24 sps:$4 sm:$0xff]  }
 0x32c   :  { %5845 = vmatpush1.bf16.msra.mxu1 %v8618_v54  ;;  %v8678_v54 = vld [vmem:[#allocation7 + $0x11d8] ss:$24 sps:$4 sm:$0xff]  }
 0x32d   :  { %6070 = vmatpush1.bf16.msra.mxu0 %v8621_v60  ;;  %5846 = vmatprep.subr.bf16.mxu1 %v8626_v5  ;;  %v8681_v60 = vld [vmem:[#allocation7 + $0xac0] ss:$24 sps:$4 sm:$0xff]   ;;  %v8686_v5 = vld [vmem:[#allocation7 + $0x120c] ss:$24 sps:$4 sm:$0xff]  }
 0x32e   :  { %6080 = vmatprep.subr.bf16.mxu0 %v8629_v6  ;;  %v8689_v6 = vld [vmem:[#allocation7 + $0xaf4] ss:$24 sps:$4 sm:$0xff]  }
 0x330   :  { %6072 = vmatmul.mubr.bf16.vlgmr.msra.gmra.mrb[12].mxu0 %v9497_v20  ;;  %5847 = vmatpush1.bf16.msra.mxu1 %v8624_v8  ;;  %v8642_v20 = vld [vmem:[#allocation7 + $0x10b8] ss:$24 sps:$4 sm:$0xff]   ;;  %v8684_v8 = vld [vmem:[#allocation7 + $0x1208] ss:$24 sps:$4 sm:$0xff]  }
 0x331   :  { %6081 = vmatpush1.bf16.msra.mxu0 %v8627_v19  ;;  %6112 = vmatprep.mubr.bf16.mxu0 %v9445_v39  ;;  %v8653_v39 = vld [vmem:[#allocation7 + $0x9d4] ss:$24 sps:$4 sm:$0xff]   ;;  %v8687_v19 = vld [vmem:[#allocation7 + $0xaf0] ss:$24 sps:$4 sm:$0xff]  }
 0x332   :  { %5848 = vmatprep.subr.bf16.mxu1 %v8632_v15  ;;  %6082 = vmatprep.subr.bf16.mxu0 %v8635_v17  ;;  %v8692_v15 = vld [vmem:[#allocation7 + $0x123c] ss:$24 sps:$4 sm:$0xff]  }
 0x333   :  { %v8695_v17 = vld [vmem:[#allocation7 + $0xb24] ss:$24 sps:$4 sm:$0xff]  }
 0x334   :  { %5849 = vmatpush1.bf16.msra.mxu1 %v8630_v21  ;;  %v8690_v21 = vld [vmem:[#allocation7 + $0x1238] ss:$24 sps:$4 sm:$0xff]  }
 0x335   :  { %6083 = vmatpush1.bf16.msra.mxu0 %v8633_v22  ;;  %5850 = vmatprep.subr.bf16.mxu1 %v8638_v23  ;;  %v8693_v22 = vld [vmem:[#allocation7 + $0xb20] ss:$24 sps:$4 sm:$0xff]   ;;  %v8698_v23 = vld [vmem:[#allocation7 + $0x126c] ss:$24 sps:$4 sm:$0xff]  }
 0x336   :  { %6084 = vmatprep.subr.bf16.mxu0 %v8641_v24  ;;  %v8701_v24 = vld [vmem:[#allocation7 + $0xb54] ss:$24 sps:$4 sm:$0xff]  }
 0x338   :  { %5851 = vmatpush1.bf16.msra.mxu1 %v8636_v26  ;;  %v8696_v26 = vld [vmem:[#allocation7 + $0x1268] ss:$24 sps:$4 sm:$0xff]  }
 0x339   :  { %6085 = vmatpush1.bf16.msra.mxu0 %v8639_v28  ;;  %5852 = vmatprep.subr.bf16.mxu1 %v8644_v29  ;;  %v8699_v28 = vld [vmem:[#allocation7 + $0xb50] ss:$24 sps:$4 sm:$0xff]   ;;  %v8704_v29 = vld [vmem:[#allocation7 + $0x129c] ss:$24 sps:$4 sm:$0xff]  }
 0x33a   :  { %6086 = vmatprep.subr.bf16.mxu0 %v8647_v31  ;;  %v8707_v31 = vld [vmem:[#allocation7 + $0xb84] ss:$24 sps:$4 sm:$0xff]  }
 0x33c   :  { %5853 = vmatpush1.bf16.msra.mxu1 %v8642_v20  ;;  %v8702_v20 = vld [vmem:[#allocation7 + $0x1298] ss:$24 sps:$4 sm:$0xff]  }
 0x33d   :  { %6087 = vmatpush1.bf16.msra.mxu0 %v8645_v18  ;;  %5854 = vmatprep.subr.bf16.mxu1 %v8650_v32  ;;  %v8705_v18 = vld [vmem:[#allocation7 + $0xb80] ss:$24 sps:$4 sm:$0xff]   ;;  %v8710_v32 = vld [vmem:[#allocation7 + $0x12cc] ss:$24 sps:$4 sm:$0xff]  }
 0x33e   :  { %6088 = vmatprep.subr.bf16.mxu0 %v8653_v39  ;;  %v8713_v39 = vld [vmem:[#allocation7 + $0xbb4] ss:$24 sps:$4 sm:$0xff]  }
 0x340   :  { %5855 = vmatpush1.bf16.msra.mxu1 %v8648_v35  ;;  %v8711_v35 = vld [vmem:[#allocation7 + $0xbb0] ss:$24 sps:$4 sm:$0xff]  }
 0x341   :  { %6089 = vmatpush1.bf16.msra.mxu0 %v8651_v36  ;;  %5856 = vmatprep.subr.bf16.mxu1 %v8656_v62  ;;  %v8716_v36 = vld [vmem:[#allocation7 + $0x12fc] ss:$24 sps:$4 sm:$0xff]  }
 0x342   :  { %6090 = vmatprep.subr.bf16.mxu0 %v8659_v13  ;;  %v8719_v62 = vld [vmem:[#allocation7 + $0xbe4] ss:$24 sps:$4 sm:$0xff]   ;;  %v8717_v13 = vld [vmem:[#allocation7 + $0xbe0] ss:$24 sps:$4 sm:$0xff]  }
 0x343   :  { %v5622_v16 = vpop.f32.mrb[8].mxu0 }
 0x344   :  { %v9564_v61 = vadd.f32 %v7733_v43, %v5622_v16  ;;  %v5624_v44 = vpop.f32.mrb[9].mxu0  ;;  %5857 = vmatpush1.bf16.msra.mxu1 %v8654_v37  ;;  %v8725_v37 = vld [vmem:[#allocation7 + $0xc14] ss:$24 sps:$4 sm:$0xff]   ;;  %v8729_v16 = vld [vmem:[#allocation7 + $0xc40] ss:$24 sps:$4 sm:$0xff]  }
 0x345   :  { %v9566_v57 = vadd.f32 %v7735_v49, %v5624_v44  ;;  %v5626_v46 = vpop.f32.mrb[10].mxu0  ;;  %6091 = vmatpush1.bf16.msra.mxu0 %v8657_v38  ;;  %5858 = vmatprep.subr.bf16.mxu1 %v8662_v42  ;;  %v8720_v38 = vld [vmem:[#allocation7 + $0x1328] ss:$24 sps:$4 sm:$0xff]   ;;  %v8728_v43 = vld [vmem:[#allocation7 + $0x135c] ss:$24 sps:$4 sm:$0xff]  }
 0x346   :  { %v5627_v2 = vpop.f32.mrb[11].mxu0  ;;  %6092 = vmatprep.subr.bf16.mxu0 %v8665_v48  ;;  %v8723_v42 = vld [vmem:[#allocation7 + $0xc10] ss:$24 sps:$4 sm:$0xff]   ;;  %v8731_v48 = vld [vmem:[#allocation7 + $0xc44] ss:$24 sps:$4 sm:$0xff]  }
 0x347   :  { %v8726_v49 = vld [vmem:[#allocation7 + $0x1358] ss:$24 sps:$4 sm:$0xff]   ;;  %v8734_v44 = vld [vmem:[#allocation7 + $0x138c] ss:$24 sps:$4 sm:$0xff]   ;;  %v8732_v46 = vld [vmem:[#allocation7 + $0x1388] ss:$24 sps:$4 sm:$0xff]  }
 0x348   :  { %5859 = vmatpush1.bf16.msra.mxu1 %v8660_v51  ;;  %v8737_v51 = vld [vmem:[#allocation7 + $0xc74] ss:$24 sps:$4 sm:$0xff]   ;;  %v8743_v2 = vld [vmem:[#allocation7 + $0xca4] ss:$24 sps:$4 sm:$0xff]  }
 0x349   :  { %6093 = vmatpush1.bf16.msra.mxu0 %v8663_v53  ;;  %5860 = vmatprep.subr.bf16.mxu1 %v8668_v45  ;;  %v8735_v53 = vld [vmem:[#allocation7 + $0xc70] ss:$24 sps:$4 sm:$0xff]   ;;  %v8740_v45 = vld [vmem:[#allocation7 + $0x13bc] ss:$24 sps:$4 sm:$0xff]  }
 0x34a   :  { %6094 = vmatprep.subr.bf16.mxu0 %v8671_v12  ;;  %v8741_v12 = vld [vmem:[#allocation7 + $0xca0] ss:$24 sps:$4 sm:$0xff]  }
 0x34c   :  { %5861 = vmatpush1.bf16.msra.mxu1 %v8666_v14  ;;  %v8746_v14 = vld [vmem:[#allocation7 + $0x13ec] ss:$24 sps:$4 sm:$0xff]  }
 0x34d   :  { %6095 = vmatpush1.bf16.msra.mxu0 %v8669_v58  ;;  %5862 = vmatprep.subr.bf16.mxu1 %v8674_v59  ;;  %v8744_v58 = vld [vmem:[#allocation7 + $0x13e8] ss:$24 sps:$4 sm:$0xff]  }
 0x34e   :  { %6096 = vmatprep.subr.bf16.mxu0 %v8677_v63  ;;  %v8747_v59 = vld [vmem:[#allocation7 + $0xcd0] ss:$24 sps:$4 sm:$0xff]   ;;  %v8752_v63 = vld [vmem:[#allocation7 + $0x141c] ss:$24 sps:$4 sm:$0xff]  }
 0x350   :  { %5863 = vmatpush1.bf16.msra.mxu1 %v8672_v0  ;;  %v8755_v0 = vld [vmem:[#allocation7 + $0xd04] ss:$24 sps:$4 sm:$0xff]  }
 0x351   :  { %6097 = vmatpush1.bf16.msra.mxu0 %v8675_v52  ;;  %5864 = vmatprep.subr.bf16.mxu1 %v8680_v1  ;;  %v8750_v52 = vld [vmem:[#allocation7 + $0x1418] ss:$24 sps:$4 sm:$0xff]  }
 0x352   :  { %6098 = vmatprep.subr.bf16.mxu0 %v8683_v3  ;;  %v8753_v1 = vld [vmem:[#allocation7 + $0xd00] ss:$24 sps:$4 sm:$0xff]   ;;  %v8758_v3 = vld [vmem:[#allocation7 + $0x144c] ss:$24 sps:$4 sm:$0xff]  }
 0x354   :  { %5865 = vmatpush1.bf16.msra.mxu1 %v8678_v54  ;;  %v8761_v54 = vld [vmem:[#allocation7 + $0xd34] ss:$24 sps:$4 sm:$0xff]  }
 0x355   :  { %6099 = vmatpush1.bf16.msra.mxu0 %v8681_v60  ;;  %5875 = vmatprep.subr.bf16.mxu1 %v8686_v5  ;;  %v8756_v60 = vld [vmem:[#allocation7 + $0x1448] ss:$24 sps:$4 sm:$0xff]  }
 0x356   :  { %6100 = vmatprep.subr.bf16.mxu0 %v8689_v6  ;;  %v8759_v5 = vld [vmem:[#allocation7 + $0xd30] ss:$24 sps:$4 sm:$0xff]   ;;  %v8764_v6 = vld [vmem:[#allocation7 + $0x147c] ss:$24 sps:$4 sm:$0xff]  }
 0x357   :  { %5867 = vmatmul.mubr.bf16.vlgmr.msra.gmra.mrb[28].mxu1 %v9513_v25 }
 0x358   :  { %5876 = vmatpush1.bf16.msra.mxu1 %v8684_v8  ;;  %5907 = vmatprep.mubr.bf16.mxu1 %v9515_v47  ;;  %v8767_v8 = vld [vmem:[#allocation7 + $0xd64] ss:$24 sps:$4 sm:$0xff]  }
 0x359   :  { %6101 = vmatpush1.bf16.msra.mxu0 %v8687_v19  ;;  %5877 = vmatprep.subr.bf16.mxu1 %v8692_v15  ;;  %v8762_v19 = vld [vmem:[#allocation7 + $0x1478] ss:$24 sps:$4 sm:$0xff]  }
 0x35a   :  { %6102 = vmatprep.subr.bf16.mxu0 %v8695_v17  ;;  %v8765_v15 = vld [vmem:[#allocation7 + $0xd60] ss:$24 sps:$4 sm:$0xff]   ;;  %v8770_v17 = vld [vmem:[#allocation7 + $0x14ac] ss:$24 sps:$4 sm:$0xff]  }
 0x35c   :  { %5878 = vmatpush1.bf16.msra.mxu1 %v8690_v21  ;;  %v8773_v21 = vld [vmem:[#allocation7 + $0xd94] ss:$24 sps:$4 sm:$0xff]  }
 0x35d   :  { %6103 = vmatpush1.bf16.msra.mxu0 %v8693_v22  ;;  %5879 = vmatprep.subr.bf16.mxu1 %v8698_v23  ;;  %v8768_v22 = vld [vmem:[#allocation7 + $0x14a8] ss:$24 sps:$4 sm:$0xff]  }
 0x35e   :  { %6104 = vmatprep.subr.bf16.mxu0 %v8701_v24  ;;  %v8771_v23 = vld [vmem:[#allocation7 + $0xd90] ss:$24 sps:$4 sm:$0xff]   ;;  %v8776_v24 = vld [vmem:[#allocation7 + $0x14dc] ss:$24 sps:$4 sm:$0xff]  }
 0x360   :  { %5880 = vmatpush1.bf16.msra.mxu1 %v8696_v26  ;;  %v8779_v26 = vld [vmem:[#allocation7 + $0xdc4] ss:$24 sps:$4 sm:$0xff]  }
 0x361   :  { %6105 = vmatpush1.bf16.msra.mxu0 %v8699_v28  ;;  %5881 = vmatprep.subr.bf16.mxu1 %v8704_v29  ;;  %v8774_v28 = vld [vmem:[#allocation7 + $0x14d8] ss:$24 sps:$4 sm:$0xff]  }
 0x362   :  { %6106 = vmatprep.subr.bf16.mxu0 %v8707_v31  ;;  %v8777_v29 = vld [vmem:[#allocation7 + $0xdc0] ss:$24 sps:$4 sm:$0xff]   ;;  %v8782_v31 = vld [vmem:[#allocation7 + $0x150c] ss:$24 sps:$4 sm:$0xff]  }
 0x364   :  { %5882 = vmatpush1.bf16.msra.mxu1 %v8702_v20  ;;  %v8785_v20 = vld [vmem:[#allocation7 + $0xdf4] ss:$24 sps:$4 sm:$0xff]  }
 0x365   :  { %6107 = vmatpush1.bf16.msra.mxu0 %v8705_v18  ;;  %5883 = vmatprep.subr.bf16.mxu1 %v8710_v32  ;;  %v8780_v18 = vld [vmem:[#allocation7 + $0x1508] ss:$24 sps:$4 sm:$0xff]  }
 0x366   :  { %6108 = vmatprep.subr.bf16.mxu0 %v8713_v39  ;;  %v8783_v32 = vld [vmem:[#allocation7 + $0xdf0] ss:$24 sps:$4 sm:$0xff]   ;;  %v8788_v39 = vld [vmem:[#allocation7 + $0x153c] ss:$24 sps:$4 sm:$0xff]  }
 0x368   :  { %5884 = vmatpush1.bf16.msra.mxu1 %v8708_v34  ;;  %v8791_v34 = vld [vmem:[#allocation7 + $0xe24] ss:$24 sps:$4 sm:$0xff]  }
 0x369   :  { %6109 = vmatpush1.bf16.msra.mxu0 %v8711_v35  ;;  %5885 = vmatprep.subr.bf16.mxu1 %v8716_v36  ;;  %v8786_v35 = vld [vmem:[#allocation7 + $0x1538] ss:$24 sps:$4 sm:$0xff]  }
 0x36a   :  { %6110 = vmatprep.subr.bf16.mxu0 %v8719_v62  ;;  %v8789_v36 = vld [vmem:[#allocation7 + $0xe20] ss:$24 sps:$4 sm:$0xff]   ;;  %v8794_v62 = vld [vmem:[#allocation7 + $0x156c] ss:$24 sps:$4 sm:$0xff]  }
 0x36c   :  { %5886 = vmatpush1.bf16.msra.mxu1 %v8714_v50  ;;  %v8797_v50 = vld [vmem:[#allocation7 + $0xe54] ss:$24 sps:$4 sm:$0xff]  }
 0x36d   :  { %6111 = vmatpush1.bf16.msra.mxu0 %v8717_v13  ;;  %5887 = vmatprep.subr.bf16.mxu1 %v8722_v10  ;;  %v8792_v13 = vld [vmem:[#allocation7 + $0x1568] ss:$24 sps:$4 sm:$0xff]  }
 0x36e   :  { %6121 = vmatprep.subr.bf16.mxu0 %v8725_v37  ;;  %v8795_v10 = vld [vmem:[#allocation7 + $0xe50] ss:$24 sps:$4 sm:$0xff]   ;;  %v8800_v37 = vld [vmem:[#allocation7 + $0x159c] ss:$24 sps:$4 sm:$0xff]  }
 0x370   :  { %6113 = vmatmul.mubr.bf16.vlgmr.msra.gmra.mrb[12].mxu0 %v9447_v40  ;;  %5888 = vmatpush1.bf16.msra.mxu1 %v8720_v38  ;;  %v8738_v40 = vld [vmem:[#allocation7 + $0x13b8] ss:$24 sps:$4 sm:$0xff]   ;;  %v8803_v38 = vld [vmem:[#allocation7 + $0xe84] ss:$24 sps:$4 sm:$0xff]  }
 0x371   :  { %6122 = vmatpush1.bf16.msra.mxu0 %v8723_v42  ;;  %6153 = vmatprep.mubr.bf16.mxu0 %v9450_v41  ;;  %v8749_v41 = vld [vmem:[#allocation7 + $0xcd4] ss:$24 sps:$4 sm:$0xff]   ;;  %v8798_v42 = vld [vmem:[#allocation7 + $0x1598] ss:$24 sps:$4 sm:$0xff]  }
 0x372   :  { %5889 = vmatprep.subr.bf16.mxu1 %v8728_v43  ;;  %6123 = vmatprep.subr.bf16.mxu0 %v8731_v48  ;;  %v8801_v43 = vld [vmem:[#allocation7 + $0xe80] ss:$24 sps:$4 sm:$0xff]   ;;  %v8806_v48 = vld [vmem:[#allocation7 + $0x15cc] ss:$24 sps:$4 sm:$0xff]  }
 0x374   :  { %5890 = vmatpush1.bf16.msra.mxu1 %v8726_v49  ;;  %v8809_v49 = vld [vmem:[#allocation7 + $0xeb4] ss:$24 sps:$4 sm:$0xff]  }
 0x375   :  { %6124 = vmatpush1.bf16.msra.mxu0 %v8729_v16  ;;  %5891 = vmatprep.subr.bf16.mxu1 %v8734_v44  ;;  %v8804_v16 = vld [vmem:[#allocation7 + $0x15c8] ss:$24 sps:$4 sm:$0xff]  }
 0x376   :  { %6125 = vmatprep.subr.bf16.mxu0 %v8737_v51  ;;  %v8807_v44 = vld [vmem:[#allocation7 + $0xeb0] ss:$24 sps:$4 sm:$0xff]   ;;  %v8812_v51 = vld [vmem:[#allocation7 + $0x15fc] ss:$24 sps:$4 sm:$0xff]  }
 0x378   :  { %5892 = vmatpush1.bf16.msra.mxu1 %v8732_v46  ;;  %v8815_v46 = vld [vmem:[#allocation7 + $0xee4] ss:$24 sps:$4 sm:$0xff]  }
 0x379   :  { %6126 = vmatpush1.bf16.msra.mxu0 %v8735_v53  ;;  %5893 = vmatprep.subr.bf16.mxu1 %v8740_v45  ;;  %v8810_v53 = vld [vmem:[#allocation7 + $0x15f8] ss:$24 sps:$4 sm:$0xff]  }
 0x37a   :  { %6127 = vmatprep.subr.bf16.mxu0 %v8743_v2  ;;  %v8813_v45 = vld [vmem:[#allocation7 + $0xee0] ss:$24 sps:$4 sm:$0xff]   ;;  %v8818_v2 = vld [vmem:[#allocation7 + $0x162c] ss:$24 sps:$4 sm:$0xff]  }
 0x37c   :  { %5894 = vmatpush1.bf16.msra.mxu1 %v8738_v40  ;;  %v8821_v40 = vld [vmem:[#allocation7 + $0xf14] ss:$24 sps:$4 sm:$0xff]  }
 0x37d   :  { %6128 = vmatpush1.bf16.msra.mxu0 %v8741_v12  ;;  %5895 = vmatprep.subr.bf16.mxu1 %v8746_v14  ;;  %v8816_v12 = vld [vmem:[#allocation7 + $0x1628] ss:$24 sps:$4 sm:$0xff]  }
 0x37e   :  { %6129 = vmatprep.subr.bf16.mxu0 %v8749_v41  ;;  %v8819_v14 = vld [vmem:[#allocation7 + $0xf10] ss:$24 sps:$4 sm:$0xff]   ;;  %v8824_v41 = vld [vmem:[#allocation7 + $0x165c] ss:$24 sps:$4 sm:$0xff]  }
 0x380   :  { %5896 = vmatpush1.bf16.msra.mxu1 %v8744_v58  ;;  %v8827_v58 = vld [vmem:[#allocation7 + $0xf44] ss:$24 sps:$4 sm:$0xff]  }
 0x381   :  { %6130 = vmatpush1.bf16.msra.mxu0 %v8747_v59  ;;  %5897 = vmatprep.subr.bf16.mxu1 %v8752_v63  ;;  %v8822_v59 = vld [vmem:[#allocation7 + $0x1658] ss:$24 sps:$4 sm:$0xff]  }
 0x382   :  { %6131 = vmatprep.subr.bf16.mxu0 %v8755_v0  ;;  %v8825_v63 = vld [vmem:[#allocation7 + $0xf40] ss:$24 sps:$4 sm:$0xff]   ;;  %v8830_v0 = vld [vmem:[#allocation7 + $0x168c] ss:$24 sps:$4 sm:$0xff]  }
 0x384   :  { %5898 = vmatpush1.bf16.msra.mxu1 %v8750_v52  ;;  %v8833_v52 = vld [vmem:[#allocation7 + $0xf74] ss:$24 sps:$4 sm:$0xff]  }
 0x385   :  { %6132 = vmatpush1.bf16.msra.mxu0 %v8753_v1  ;;  %5899 = vmatprep.subr.bf16.mxu1 %v8758_v3  ;;  %v8828_v1 = vld [vmem:[#allocation7 + $0x1688] ss:$24 sps:$4 sm:$0xff]  }
 0x386   :  { %6133 = vmatprep.subr.bf16.mxu0 %v8761_v54  ;;  %v8831_v3 = vld [vmem:[#allocation7 + $0xf70] ss:$24 sps:$4 sm:$0xff]   ;;  %v8836_v54 = vld [vmem:[#allocation7 + $0x16bc] ss:$24 sps:$4 sm:$0xff]  }
 0x388   :  { %5900 = vmatpush1.bf16.msra.mxu1 %v8756_v60  ;;  %v8839_v60 = vld [vmem:[#allocation7 + $0xfa4] ss:$24 sps:$4 sm:$0xff]  }
 0x389   :  { %6134 = vmatpush1.bf16.msra.mxu0 %v8759_v5  ;;  %5901 = vmatprep.subr.bf16.mxu1 %v8764_v6  ;;  %v8837_v5 = vld [vmem:[#allocation7 + $0xfa0] ss:$24 sps:$4 sm:$0xff]   ;;  %v8842_v6 = vld [vmem:[#allocation7 + $0x16ec] ss:$24 sps:$4 sm:$0xff]  }
 0x38a   :  { %6135 = vmatprep.subr.bf16.mxu0 %v8767_v8  ;;  %v8840_v8 = vld [vmem:[#allocation7 + $0x16e8] ss:$24 sps:$4 sm:$0xff]  }
 0x38c   :  { %5902 = vmatpush1.bf16.msra.mxu1 %v8762_v19  ;;  %v8843_v19 = vld [vmem:[#allocation7 + $0xfd0] ss:$24 sps:$4 sm:$0xff]  }
 0x38d   :  { %6136 = vmatpush1.bf16.msra.mxu0 %v8765_v15  ;;  %5903 = vmatprep.subr.bf16.mxu1 %v8770_v17  ;;  %v8848_v15 = vld [vmem:[#allocation7 + $0x171c] ss:$24 sps:$4 sm:$0xff]  }
 0x38e   :  { %6137 = vmatprep.subr.bf16.mxu0 %v8773_v21  ;;  %v8851_v17 = vld [vmem:[#allocation7 + $0x1004] ss:$24 sps:$4 sm:$0xff]   ;;  %v8846_v21 = vld [vmem:[#allocation7 + $0x1718] ss:$24 sps:$4 sm:$0xff]  }
 0x390   :  { %5904 = vmatpush1.bf16.msra.mxu1 %v8768_v22  ;;  %v8849_v22 = vld [vmem:[#allocation7 + $0x1000] ss:$24 sps:$4 sm:$0xff]  }
 0x391   :  { %6138 = vmatpush1.bf16.msra.mxu0 %v8771_v23  ;;  %5905 = vmatprep.subr.bf16.mxu1 %v8776_v24  ;;  %v8854_v23 = vld [vmem:[#allocation7 + $0x174c] ss:$24 sps:$4 sm:$0xff]  }
 0x392   :  { %6139 = vmatprep.subr.bf16.mxu0 %v8779_v26  ;;  %v8857_v24 = vld [vmem:[#allocation7 + $0x1034] ss:$24 sps:$4 sm:$0xff]   ;;  %v8852_v26 = vld [vmem:[#allocation7 + $0x1748] ss:$24 sps:$4 sm:$0xff]  }
 0x394   :  { %5906 = vmatpush1.bf16.msra.mxu1 %v8774_v28  ;;  %v8855_v28 = vld [vmem:[#allocation7 + $0x1030] ss:$24 sps:$4 sm:$0xff]  }
 0x395   :  { %6140 = vmatpush1.bf16.msra.mxu0 %v8777_v29  ;;  %5916 = vmatprep.subr.bf16.mxu1 %v8782_v31  ;;  %v8860_v29 = vld [vmem:[#allocation7 + $0x177c] ss:$24 sps:$4 sm:$0xff]  }
 0x396   :  { %6141 = vmatprep.subr.bf16.mxu0 %v8785_v20  ;;  %v8863_v31 = vld [vmem:[#allocation7 + $0x1064] ss:$24 sps:$4 sm:$0xff]   ;;  %v8858_v20 = vld [vmem:[#allocation7 + $0x1778] ss:$24 sps:$4 sm:$0xff]  }
 0x397   :  { %5908 = vmatmul.mubr.bf16.vlgmr.msra.gmra.mrb[28].mxu1 %v9528_v9 }
 0x398   :  { %5917 = vmatpush1.bf16.msra.mxu1 %v8780_v18  ;;  %5948 = vmatprep.mubr.bf16.mxu1 %v9530_v11  ;;  %v8861_v18 = vld [vmem:[#allocation7 + $0x1060] ss:$24 sps:$4 sm:$0xff]  }
 0x399   :  { %6142 = vmatpush1.bf16.msra.mxu0 %v8783_v32  ;;  %5918 = vmatprep.subr.bf16.mxu1 %v8788_v39  ;;  %v8866_v32 = vld [vmem:[#allocation7 + $0x17ac] ss:$24 sps:$4 sm:$0xff]  }
 0x39a   :  { %6143 = vmatprep.subr.bf16.mxu0 %v8791_v34  ;;  %v8869_v39 = vld [vmem:[#allocation7 + $0x1094] ss:$24 sps:$4 sm:$0xff]   ;;  %v8864_v34 = vld [vmem:[#allocation7 + $0x17a8] ss:$24 sps:$4 sm:$0xff]  }
 0x39c   :  { %5919 = vmatpush1.bf16.msra.mxu1 %v8786_v35  ;;  %v8867_v35 = vld [vmem:[#allocation7 + $0x1090] ss:$24 sps:$4 sm:$0xff]  }
 0x39d   :  { %6144 = vmatpush1.bf16.msra.mxu0 %v8789_v36  ;;  %5920 = vmatprep.subr.bf16.mxu1 %v8794_v62  ;;  %v8872_v36 = vld [vmem:[#allocation7 + $0x17dc] ss:$24 sps:$4 sm:$0xff]  }
 0x39e   :  { %6145 = vmatprep.subr.bf16.mxu0 %v8797_v50  ;;  %v8875_v62 = vld [vmem:[#allocation7 + $0x10c4] ss:$24 sps:$4 sm:$0xff]   ;;  %v8870_v50 = vld [vmem:[#allocation7 + $0x17d8] ss:$24 sps:$4 sm:$0xff]  }
 0x3a0   :  { %5921 = vmatpush1.bf16.msra.mxu1 %v8792_v13  ;;  %v8873_v13 = vld [vmem:[#allocation7 + $0x10c0] ss:$24 sps:$4 sm:$0xff]  }
 0x3a1   :  { %6146 = vmatpush1.bf16.msra.mxu0 %v8795_v10  ;;  %5922 = vmatprep.subr.bf16.mxu1 %v8800_v37  ;;  %v8879_v10 = vld [vmem:[#allocation10 + $0x40] sm:$0xff]   ;;  %v6286_v37 = vmax.f32 %v9566_v57, 0.0  ;;  %v8889_v57 = vld [vmem:[#allocation10 + $0x50] sm:$0xff]  }
 0x3a2   :  { %6147 = vmatprep.subr.bf16.mxu0 %v8803_v38  ;;  %v8878_v38 = vld [vmem:[#allocation7 + $0x10f4] ss:$24 sps:$4 sm:$0xff]  }
 0x3a4   :  { %5923 = vmatpush1.bf16.msra.mxu1 %v8798_v42  ;;  %v8880_v42 = vld [vmem:[#allocation10] sm:$0xff]  }
 0x3a5   :  { %6148 = vmatpush1.bf16.msra.mxu0 %v8801_v43  ;;  %5924 = vmatprep.subr.bf16.mxu1 %v8806_v48  ;;  %v8876_v43 = vld [vmem:[#allocation7 + $0x10f0] ss:$24 sps:$4 sm:$0xff]  }
 0x3a6   :  { %6149 = vmatprep.subr.bf16.mxu0 %v8809_v49  ;;  %v8884_v48 = vld [vmem:[#allocation10 + $0x48] sm:$0xff]   ;;  %v6292_v49 = vpack.c.bf16 %v6286_v37, %v6286_v37 }
 0x3a7   :  { %v9017_v37 = vld [vmem:[#allocation10 + $0xa8] sm:$0xff]  }
 0x3a8   :  { %5925 = vmatpush1.bf16.msra.mxu1 %v8804_v16  ;;  %v8883_v16 = vld [vmem:[#allocation7 + $0x1124] ss:$24 sps:$4 sm:$0xff]  }
 0x3a9   :  { %6150 = vmatpush1.bf16.msra.mxu0 %v8807_v44  ;;  %5926 = vmatprep.subr.bf16.mxu1 %v8812_v51  ;;  %v8885_v44 = vld [vmem:[#allocation10 + $0x8] sm:$0xff]   ;;  %v8881_v51 = vld [vmem:[#allocation7 + $0x1120] ss:$24 sps:$4 sm:$0xff]  }
 0x3aa   :  { %6151 = vmatprep.subr.bf16.mxu0 %v8815_v46  ;;  %v8888_v46 = vld [vmem:[#allocation7 + $0x1154] ss:$24 sps:$4 sm:$0xff]  }
 0x3ac   :  { %5927 = vmatpush1.bf16.msra.mxu1 %v8810_v53  ;;  %v8890_v53 = vld [vmem:[#allocation10 + $0x10] sm:$0xff]  }
 0x3ad   :  { %6152 = vmatpush1.bf16.msra.mxu0 %v8813_v45  ;;  %5928 = vmatprep.subr.bf16.mxu1 %v8818_v2  ;;  %v8886_v45 = vld [vmem:[#allocation7 + $0x1150] ss:$24 sps:$4 sm:$0xff]   ;;  %v8894_v2 = vld [vmem:[#allocation10 + $0x58] sm:$0xff]  }
 0x3ae   :  { %6162 = vmatprep.subr.bf16.mxu0 %v8821_v40  ;;  %v8893_v40 = vld [vmem:[#allocation7 + $0x1184] ss:$24 sps:$4 sm:$0xff]  }
 0x3b0   :  { %6154 = vmatmul.mubr.bf16.vlgmr.msra.gmra.mrb[12].mxu0 %v9486_v33  ;;  %5929 = vmatpush1.bf16.msra.mxu1 %v8816_v12  ;;  %v8834_v33 = vld [vmem:[#allocation7 + $0x16b8] ss:$24 sps:$4 sm:$0xff]   ;;  %v8895_v12 = vld [vmem:[#allocation10 + $0x18] sm:$0xff]  }
 0x3b1   :  { %6163 = vmatpush1.bf16.msra.mxu0 %v8819_v14  ;;  %6194 = vmatprep.mubr.bf16.mxu0 %v9488_v56  ;;  %v8845_v56 = vld [vmem:[#allocation7 + $0xfd4] ss:$24 sps:$4 sm:$0xff]   ;;  %v8891_v14 = vld [vmem:[#allocation7 + $0x1180] ss:$24 sps:$4 sm:$0xff]  }
 0x3b2   :  { %5930 = vmatprep.subr.bf16.mxu1 %v8824_v41  ;;  %6164 = vmatprep.subr.bf16.mxu0 %v8827_v58  ;;  %v8899_v41 = vld [vmem:[#allocation10 + $0x60] sm:$0xff]  }
 0x3b3   :  { %v8898_v58 = vld [vmem:[#allocation7 + $0x11b4] ss:$24 sps:$4 sm:$0xff]  }
 0x3b4   :  { %5931 = vmatpush1.bf16.msra.mxu1 %v8822_v59  ;;  %v8900_v59 = vld [vmem:[#allocation10 + $0x20] sm:$0xff]  }
 0x3b5   :  { %6165 = vmatpush1.bf16.msra.mxu0 %v8825_v63  ;;  %5932 = vmatprep.subr.bf16.mxu1 %v8830_v0  ;;  %v8896_v63 = vld [vmem:[#allocation7 + $0x11b0] ss:$24 sps:$4 sm:$0xff]  }
 0x3b6   :  { %6166 = vmatprep.subr.bf16.mxu0 %v8833_v52  ;;  %v8904_v0 = vld [vmem:[#allocation10 + $0x68] sm:$0xff]   ;;  %v8903_v52 = vld [vmem:[#allocation7 + $0x11e4] ss:$24 sps:$4 sm:$0xff]  }
 0x3b8   :  { %5933 = vmatpush1.bf16.msra.mxu1 %v8828_v1  ;;  %v8905_v1 = vld [vmem:[#allocation10 + $0x28] sm:$0xff]  }
 0x3b9   :  { %6167 = vmatpush1.bf16.msra.mxu0 %v8831_v3  ;;  %5934 = vmatprep.subr.bf16.mxu1 %v8836_v54  ;;  %v8901_v3 = vld [vmem:[#allocation7 + $0x11e0] ss:$24 sps:$4 sm:$0xff]  }
 0x3ba   :  { %6168 = vmatprep.subr.bf16.mxu0 %v8839_v60  ;;  %v8909_v54 = vld [vmem:[#allocation10 + $0x70] sm:$0xff]  }
 0x3bb   :  { %v8908_v60 = vld [vmem:[#allocation7 + $0x1214] ss:$24 sps:$4 sm:$0xff]  }
 0x3bc   :  { %5935 = vmatpush1.bf16.msra.mxu1 %v8834_v33  ;;  %v8910_v33 = vld [vmem:[#allocation10 + $0x30] sm:$0xff]  }
 0x3bd   :  { %6169 = vmatpush1.bf16.msra.mxu0 %v8837_v5  ;;  %5936 = vmatprep.subr.bf16.mxu1 %v8842_v6  ;;  %v8906_v5 = vld [vmem:[#allocation7 + $0x1210] ss:$24 sps:$4 sm:$0xff]   ;;  %v8913_v6 = vld [vmem:[#allocation7 + $0x1244] ss:$24 sps:$4 sm:$0xff]  }
 0x3be   :  { %6170 = vmatprep.subr.bf16.mxu0 %v8845_v56  ;;  %v8914_v56 = vld [vmem:[#allocation10 + $0x78] sm:$0xff]  }
 0x3c0   :  { %5937 = vmatpush1.bf16.msra.mxu1 %v8840_v8  ;;  %v8915_v8 = vld [vmem:[#allocation10 + $0x38] sm:$0xff]  }
 0x3c1   :  { %6171 = vmatpush1.bf16.msra.mxu0 %v8843_v19  ;;  %5938 = vmatprep.subr.bf16.mxu1 %v8848_v15  ;;  %v6285_v19 = vmax.f32 %v9564_v61, 0.0  ;;  %v8911_v15 = vld [vmem:[#allocation7 + $0x1240] ss:$24 sps:$4 sm:$0xff]   ;;  %v9009_v61 = vld [vmem:[#allocation10 + $0x88] sm:$0xff]  }
 0x3c2   :  { %6172 = vmatprep.subr.bf16.mxu0 %v8851_v17  ;;  %v9006_v17 = vld [vmem:[#allocation10 + $0xc0] sm:$0xff]  }
 0x3c4   :  { %5939 = vmatpush1.bf16.msra.mxu1 %v8846_v21  ;;  %v8918_v21 = vld [vmem:[#allocation7 + $0x1274] ss:$24 sps:$4 sm:$0xff]  }
 0x3c5   :  { %6173 = vmatpush1.bf16.msra.mxu0 %v8849_v22  ;;  %5940 = vmatprep.subr.bf16.mxu1 %v8854_v23  ;;  %v9007_v22 = vld [vmem:[#allocation10 + $0x80] sm:$0xff]   ;;  %v6291_v23 = vpack.c.bf16 %v6285_v19, %v6285_v19  ;;  %v8973_v19 = vld [vmem:[#allocation7 + $0x1600] ss:$24 sps:$4 sm:$0xff]  }
 0x3c6   :  { %6174 = vmatprep.subr.bf16.mxu0 %v8857_v24  ;;  %v8916_v24 = vld [vmem:[#allocation7 + $0x1270] ss:$24 sps:$4 sm:$0xff]  }
 0x3c8   :  { %5941 = vmatpush1.bf16.msra.mxu1 %v8852_v26  ;;  %v9008_v26 = vld [vmem:[#allocation10 + $0xc8] sm:$0xff]  }
 0x3c9   :  { %6175 = vmatpush1.bf16.msra.mxu0 %v8855_v28  ;;  %5942 = vmatprep.subr.bf16.mxu1 %v8860_v29  ;;  %v8919_v28 = vld [vmem:[#allocation7 + $0x12a0] ss:$24 sps:$4 sm:$0xff]   ;;  %v8924_v29 = vld [vmem:[#allocation7 + $0x12d4] ss:$24 sps:$4 sm:$0xff]  }
 0x3ca   :  { %6176 = vmatprep.subr.bf16.mxu0 %v8863_v31  ;;  %v9011_v31 = vld [vmem:[#allocation10 + $0x90] sm:$0xff]  }
 0x3cc   :  { %5943 = vmatpush1.bf16.msra.mxu1 %v8858_v20  ;;  %v8922_v20 = vld [vmem:[#allocation7 + $0x12d0] ss:$24 sps:$4 sm:$0xff]  }
 0x3cd   :  { %6177 = vmatpush1.bf16.msra.mxu0 %v8861_v18  ;;  %5944 = vmatprep.subr.bf16.mxu1 %v8866_v32  ;;  %v9012_v18 = vld [vmem:[#allocation10 + $0xd8] sm:$0xff]  }
 0x3ce   :  { %6178 = vmatprep.subr.bf16.mxu0 %v8869_v39  ;;  %v8927_v32 = vld [vmem:[#allocation7 + $0x1304] ss:$24 sps:$4 sm:$0xff]  }
 0x3cf   :  { %v9013_v39 = vld [vmem:[#allocation10 + $0x98] sm:$0xff]  }
 0x3d0   :  { %5945 = vmatpush1.bf16.msra.mxu1 %v8864_v34  ;;  %v8925_v34 = vld [vmem:[#allocation7 + $0x1300] ss:$24 sps:$4 sm:$0xff]  }
 0x3d1   :  { %6179 = vmatpush1.bf16.msra.mxu0 %v8867_v35  ;;  %5946 = vmatprep.subr.bf16.mxu1 %v8872_v36  ;;  %v9014_v35 = vld [vmem:[#allocation10 + $0xe0] sm:$0xff]  }
 0x3d2   :  { %6180 = vmatprep.subr.bf16.mxu0 %v8875_v62  ;;  %v8930_v36 = vld [vmem:[#allocation7 + $0x1334] ss:$24 sps:$4 sm:$0xff]  }
 0x3d3   :  { %v9015_v62 = vld [vmem:[#allocation10 + $0xa0] sm:$0xff]  }
 0x3d4   :  { %5947 = vmatpush1.bf16.msra.mxu1 %v8870_v50  ;;  %v8928_v50 = vld [vmem:[#allocation7 + $0x1330] ss:$24 sps:$4 sm:$0xff]  }
 0x3d5   :  { %6181 = vmatpush1.bf16.msra.mxu0 %v8873_v13  ;;  %7667 = vmatprep.subr.bf16.mxu1 %v8879_v10  ;;  %v9016_v13 = vld [vmem:[#allocation10 + $0xe8] sm:$0xff]   ;;  %v8933_v10 = vld [vmem:[#allocation7 + $0x1364] ss:$24 sps:$4 sm:$0xff]  }
 0x3d6   :  { %6182 = vmatprep.subr.bf16.mxu0 %v8878_v38  ;;  %v8931_v38 = vld [vmem:[#allocation7 + $0x1360] ss:$24 sps:$4 sm:$0xff]  }
 0x3d7   :  { %5949 = vmatmul.mubr.bf16.vlgmr.msra.gmra.mrb[28].mxu1 %v9540_v4 }
 0x3d8   :  { %7668 = vmatpush3.bf16.msra.mxu1 %v8880_v42  ;;  %6720 = vmatprep.mubr.bf16.mxu1 %v6292_v49  ;;  %v8936_v42 = vld [vmem:[#allocation7 + $0x1394] ss:$24 sps:$4 sm:$0xff]   ;;  %v8937_v49 = vld [vmem:[#allocation7 + $0x13c0] ss:$24 sps:$4 sm:$0xff]  }
 0x3d9   :  { %6183 = vmatpush1.bf16.msra.mxu0 %v8876_v43  ;;  %7669 = vmatprep.subr.bf16.mxu1 %v8884_v48  ;;  %v8934_v43 = vld [vmem:[#allocation7 + $0x1390] ss:$24 sps:$4 sm:$0xff]   ;;  %v8939_v48 = vld [vmem:[#allocation7 + $0x13c4] ss:$24 sps:$4 sm:$0xff]  }
 0x3da   :  { %6184 = vmatprep.subr.bf16.mxu0 %v8883_v16  ;;  %v8942_v16 = vld [vmem:[#allocation7 + $0x13f4] ss:$24 sps:$4 sm:$0xff]  }
 0x3dc   :  { %7670 = vmatpush3.bf16.msra.mxu1 %v8885_v44  ;;  %v8940_v44 = vld [vmem:[#allocation7 + $0x13f0] ss:$24 sps:$4 sm:$0xff]  }
 0x3dd   :  { %6185 = vmatpush1.bf16.msra.mxu0 %v8881_v51  ;;  %7671 = vmatprep.subr.bf16.mxu1 %v8889_v57  ;;  %v8945_v51 = vld [vmem:[#allocation7 + $0x1424] ss:$24 sps:$4 sm:$0xff]   ;;  %v8943_v57 = vld [vmem:[#allocation7 + $0x1420] ss:$24 sps:$4 sm:$0xff]  }
 0x3de   :  { %6186 = vmatprep.subr.bf16.mxu0 %v8888_v46  ;;  %v8948_v46 = vld [vmem:[#allocation7 + $0x1454] ss:$24 sps:$4 sm:$0xff]  }
 0x3e0   :  { %7672 = vmatpush3.bf16.msra.mxu1 %v8890_v53  ;;  %v8946_v53 = vld [vmem:[#allocation7 + $0x1450] ss:$24 sps:$4 sm:$0xff]  }
 0x3e1   :  { %6187 = vmatpush1.bf16.msra.mxu0 %v8886_v45  ;;  %7673 = vmatprep.subr.bf16.mxu1 %v8894_v2  ;;  %v8951_v45 = vld [vmem:[#allocation7 + $0x1484] ss:$24 sps:$4 sm:$0xff]   ;;  %v8949_v2 = vld [vmem:[#allocation7 + $0x1480] ss:$24 sps:$4 sm:$0xff]  }
 0x3e2   :  { %6188 = vmatprep.subr.bf16.mxu0 %v8893_v40  ;;  %v8954_v40 = vld [vmem:[#allocation7 + $0x14b4] ss:$24 sps:$4 sm:$0xff]  }
 0x3e4   :  { %7674 = vmatpush3.bf16.msra.mxu1 %v8895_v12  ;;  %v8952_v12 = vld [vmem:[#allocation7 + $0x14b0] ss:$24 sps:$4 sm:$0xff]  }
 0x3e5   :  { %6189 = vmatpush1.bf16.msra.mxu0 %v8891_v14  ;;  %7675 = vmatprep.subr.bf16.mxu1 %v8899_v41  ;;  %v8957_v14 = vld [vmem:[#allocation7 + $0x14e4] ss:$24 sps:$4 sm:$0xff]   ;;  %v8955_v41 = vld [vmem:[#allocation7 + $0x14e0] ss:$24 sps:$4 sm:$0xff]  }
 0x3e6   :  { %6190 = vmatprep.subr.bf16.mxu0 %v8898_v58  ;;  %v8960_v58 = vld [vmem:[#allocation7 + $0x1514] ss:$24 sps:$4 sm:$0xff]  }
 0x3e8   :  { %7676 = vmatpush3.bf16.msra.mxu1 %v8900_v59  ;;  %v9018_v59 = vld [vmem:[#allocation10 + $0xf0] sm:$0xff]  }
 0x3e9   :  { %6191 = vmatpush1.bf16.msra.mxu0 %v8896_v63  ;;  %7677 = vmatprep.subr.bf16.mxu1 %v8904_v0  ;;  %v9019_v63 = vld [vmem:[#allocation10 + $0xb0] sm:$0xff]   ;;  %v8958_v0 = vld [vmem:[#allocation7 + $0x1510] ss:$24 sps:$4 sm:$0xff]  }
 0x3ea   :  { %6192 = vmatprep.subr.bf16.mxu0 %v8903_v52  ;;  %v8963_v52 = vld [vmem:[#allocation7 + $0x1544] ss:$24 sps:$4 sm:$0xff]  }
 0x3ec   :  { %7678 = vmatpush3.bf16.msra.mxu1 %v8905_v1  ;;  %v9020_v1 = vld [vmem:[#allocation10 + $0xf8] sm:$0xff]  }
 0x3ed   :  { %6193 = vmatpush1.bf16.msra.mxu0 %v8901_v3  ;;  %7679 = vmatprep.subr.bf16.mxu1 %v8909_v54  ;;  %v9021_v3 = vld [vmem:[#allocation10 + $0xb8] sm:$0xff]  }
 0x3ee   :  { %6203 = vmatprep.subr.bf16.mxu0 %v8908_v60  ;;  %v8961_v54 = vld [vmem:[#allocation7 + $0x1540] ss:$24 sps:$4 sm:$0xff]   ;;  %v8966_v60 = vld [vmem:[#allocation7 + $0x1574] ss:$24 sps:$4 sm:$0xff]  }
 0x3f0   :  { %6195 = vmatmul.mubr.bf16.vlgmr.msra.gmra.mrb[12].mxu0 %v9513_v25  ;;  %7680 = vmatpush3.bf16.msra.mxu1 %v8910_v33  ;;  %v8921_v25 = vld [vmem:[#allocation7 + $0x12a4] ss:$24 sps:$4 sm:$0xff]   ;;  %v8964_v33 = vld [vmem:[#allocation7 + $0x1570] ss:$24 sps:$4 sm:$0xff]  }
 0x3f1   :  { %6204 = vmatpush1.bf16.msra.mxu0 %v8906_v5  ;;  %6235 = vmatprep.mubr.bf16.mxu0 %v9515_v47  ;;  %v9010_v47 = vld [vmem:[#allocation10 + $0xd0] sm:$0xff]  }
 0x3f2   :  { %6205 = vmatprep.subr.bf16.mxu0 %v8913_v6  ;;  %7681 = vmatprep.subr.bf16.mxu1 %v8914_v56  ;;  %v8969_v5 = vld [vmem:[#allocation7 + $0x15a4] ss:$24 sps:$4 sm:$0xff]   ;;  %v8967_v6 = vld [vmem:[#allocation7 + $0x15a0] ss:$24 sps:$4 sm:$0xff]   ;;  %v8972_v56 = vld [vmem:[#allocation7 + $0x15d4] ss:$24 sps:$4 sm:$0xff]  }
 0x3f4   :  { %7682 = vmatpush3.bf16.msra.mxu1 %v8915_v8  ;;  %v8970_v8 = vld [vmem:[#allocation7 + $0x15d0] ss:$24 sps:$4 sm:$0xff]  }
 0x3f5   :  { %6206 = vmatpush1.bf16.msra.mxu0 %v8911_v15  ;;  %7689 = vmatprep.subr.bf16.mxu1 %v9006_v17  ;;  %v8976_v15 = vld [vmem:[#allocation7 + $0x1630] ss:$24 sps:$4 sm:$0xff]   ;;  %v8981_v17 = vld [vmem:[#allocation7 + $0x1664] ss:$24 sps:$4 sm:$0xff]  }
 0x3f6   :  { %6207 = vmatprep.subr.bf16.mxu0 %v8918_v21  ;;  %v8979_v21 = vld [vmem:[#allocation7 + $0x1660] ss:$24 sps:$4 sm:$0xff]  }
 0x3f7   :  { %6721 = vmatmul.mubr.bf16.vlgmr.msra.gmra.mrb[32].mxu1 %v6291_v23  ;;  %v8982_v23 = vld [vmem:[#allocation7 + $0x1690] ss:$24 sps:$4 sm:$0xff]  }
 0x3f8   :  { %7690 = vmatpush3.bf16.msra.mxu1 %v9007_v22  ;;  %v8984_v22 = vld [vmem:[#allocation7 + $0x1694] ss:$24 sps:$4 sm:$0xff]  }
 0x3f9   :  { %6208 = vmatpush1.bf16.msra.mxu0 %v8916_v24  ;;  %7691 = vmatprep.subr.bf16.mxu1 %v9008_v26  ;;  %v8987_v24 = vld [vmem:[#allocation7 + $0x16c4] ss:$24 sps:$4 sm:$0xff]  }
 0x3fa   :  { %6209 = vmatprep.subr.bf16.mxu0 %v8921_v25  ;;  %v9022_v26 = vld [vmem:[#allocation10 + $0x140] sm:$0xff]   ;;  %v8985_v25 = vld [vmem:[#allocation7 + $0x16c0] ss:$24 sps:$4 sm:$0xff]  }
 0x3fc   :  { %7692 = vmatpush3.bf16.msra.mxu1 %v9009_v61  ;;  %v8990_v61 = vld [vmem:[#allocation7 + $0x16f4] ss:$24 sps:$4 sm:$0xff]  }
 0x3fd   :  { %6210 = vmatpush1.bf16.msra.mxu0 %v8919_v28  ;;  %7693 = vmatprep.subr.bf16.mxu1 %v9010_v47  ;;  %v8988_v28 = vld [vmem:[#allocation7 + $0x16f0] ss:$24 sps:$4 sm:$0xff]   ;;  %v8993_v47 = vld [vmem:[#allocation7 + $0x1724] ss:$24 sps:$4 sm:$0xff]  }
 0x3fe   :  { %6211 = vmatprep.subr.bf16.mxu0 %v8924_v29  ;;  %v8991_v29 = vld [vmem:[#allocation7 + $0x1720] ss:$24 sps:$4 sm:$0xff]  }
 0x400   :  { %7694 = vmatpush3.bf16.msra.mxu1 %v9011_v31  ;;  %v8996_v31 = vld [vmem:[#allocation7 + $0x1754] ss:$24 sps:$4 sm:$0xff]  }
 0x401   :  { %6212 = vmatpush1.bf16.msra.mxu0 %v8922_v20  ;;  %7695 = vmatprep.subr.bf16.mxu1 %v9012_v18  ;;  %v8994_v20 = vld [vmem:[#allocation7 + $0x1750] ss:$24 sps:$4 sm:$0xff]   ;;  %v8999_v18 = vld [vmem:[#allocation7 + $0x1784] ss:$24 sps:$4 sm:$0xff]  }
 0x402   :  { %6213 = vmatprep.subr.bf16.mxu0 %v8927_v32  ;;  %v8997_v32 = vld [vmem:[#allocation7 + $0x1780] ss:$24 sps:$4 sm:$0xff]  }
 0x404   :  { %7696 = vmatpush3.bf16.msra.mxu1 %v9013_v39  ;;  %v9002_v39 = vld [vmem:[#allocation7 + $0x17b4] ss:$24 sps:$4 sm:$0xff]  }
 0x405   :  { %6214 = vmatpush1.bf16.msra.mxu0 %v8925_v34  ;;  %7697 = vmatprep.subr.bf16.mxu1 %v9014_v35  ;;  %v9000_v34 = vld [vmem:[#allocation7 + $0x17b0] ss:$24 sps:$4 sm:$0xff]   ;;  %v9005_v35 = vld [vmem:[#allocation7 + $0x17e4] ss:$24 sps:$4 sm:$0xff]  }
 0x406   :  { %6215 = vmatprep.subr.bf16.mxu0 %v8930_v36  ;;  %v9003_v36 = vld [vmem:[#allocation7 + $0x17e0] ss:$24 sps:$4 sm:$0xff]  }
 0x408   :  { %7698 = vmatpush3.bf16.msra.mxu1 %v9015_v62  ;;  %v9044_v62 = vld [vmem:[#allocation8] sm:$0x3f] }
 0x409   :  { %6216 = vmatpush1.bf16.msra.mxu0 %v8928_v50  ;;  %7699 = vmatprep.subr.bf16.mxu1 %v9016_v13  ;;  %v1442_v50 = vrot.slane %v9044_v62, %v9463_v27  ;;  %v1446_v13 = vrot.slane %v9044_v62, %v9412_v55  ;;  %v9026_v27 = vld [vmem:[#allocation10 + $0x150] sm:$0xff]  }
 0x40a   :  { %6217 = vmatprep.subr.bf16.mxu0 %v8933_v10  ;;  %v9027_v55 = vld [vmem:[#allocation10 + $0x110] sm:$0xff]  }
 0x40c   :  { %7700 = vmatpush3.bf16.msra.mxu1 %v9017_v37 }
 0x40d   :  { %6218 = vmatpush1.bf16.msra.mxu0 %v8931_v38  ;;  %7701 = vmatprep.subr.bf16.mxu1 %v9018_v59  ;;  %v9036_v59 = vld [vmem:[#allocation10 + $0x178] sm:$0xff]  }
 0x40e   :  { %6219 = vmatprep.subr.bf16.mxu0 %v8936_v42 }
 0x410   :  { %7702 = vmatpush3.bf16.msra.mxu1 %v9019_v63 }
 0x411   :  { %6220 = vmatpush1.bf16.msra.mxu0 %v8934_v43  ;;  %7703 = vmatprep.subr.bf16.mxu1 %v9020_v1 }
 0x412   :  { %6221 = vmatprep.subr.bf16.mxu0 %v8939_v48 }
 0x414   :  { %7704 = vmatpush3.bf16.msra.mxu1 %v9021_v3  ;;  %v9037_v3 = vld [vmem:[#allocation10 + $0x138] sm:$0xff]  }
 0x415   :  { %6222 = vmatpush1.bf16.msra.mxu0 %v8937_v49  ;;  %7711 = vmatprep.subr.bf16.mxu1 %v9022_v26 }
 0x416   :  { %6223 = vmatprep.subr.bf16.mxu0 %v8942_v16 }
 0x419   :  { %6224 = vmatpush1.bf16.msra.mxu0 %v8940_v44 }
 0x41a   :  { %6225 = vmatprep.subr.bf16.mxu0 %v8945_v51  ;;  %v9023_v51 = vld [vmem:[#allocation10 + $0x100] sm:$0xff]  }
 0x41d   :  { %6226 = vmatpush1.bf16.msra.mxu0 %v8943_v57 }
 0x41e   :  { %6227 = vmatprep.subr.bf16.mxu0 %v8948_v46  ;;  %v9024_v46 = vld [vmem:[#allocation10 + $0x148] sm:$0xff]  }
 0x421   :  { %6228 = vmatpush1.bf16.msra.mxu0 %v8946_v53  ;;  %v9028_v53 = vld [vmem:[#allocation10 + $0x158] sm:$0xff]  }
 0x422   :  { %6229 = vmatprep.subr.bf16.mxu0 %v8951_v45  ;;  %v9029_v45 = vld [vmem:[#allocation10 + $0x118] sm:$0xff]  }
 0x425   :  { %6230 = vmatpush1.bf16.msra.mxu0 %v8949_v2  ;;  %v9030_v2 = vld [vmem:[#allocation10 + $0x160] sm:$0xff]  }
 0x426   :  { %6231 = vmatprep.subr.bf16.mxu0 %v8954_v40  ;;  %v9031_v40 = vld [vmem:[#allocation10 + $0x120] sm:$0xff]  }
 0x429   :  { %6232 = vmatpush1.bf16.msra.mxu0 %v8952_v12  ;;  %v9032_v12 = vld [vmem:[#allocation10 + $0x168] sm:$0xff]  }
 0x42a   :  { %6233 = vmatprep.subr.bf16.mxu0 %v8957_v14  ;;  %v9033_v14 = vld [vmem:[#allocation10 + $0x128] sm:$0xff]  }
 0x42d   :  { %6234 = vmatpush1.bf16.msra.mxu0 %v8955_v41  ;;  %v9034_v41 = vld [vmem:[#allocation10 + $0x170] sm:$0xff]  }
 0x42e   :  { %6244 = vmatprep.subr.bf16.mxu0 %v8960_v58  ;;  %v9035_v58 = vld [vmem:[#allocation10 + $0x130] sm:$0xff]  }
 0x430   :  { %6236 = vmatmul.mubr.bf16.vlgmr.msra.gmra.mrb[12].mxu0 %v9528_v9  ;;  %v8975_v9 = vld [vmem:[#allocation7 + $0x1604] ss:$24 sps:$4 sm:$0xff]  }
 0x431   :  { %6245 = vmatpush1.bf16.msra.mxu0 %v8958_v0  ;;  %6276 = vmatprep.mubr.bf16.mxu0 %v9530_v11  ;;  %v8978_v11 = vld [vmem:[#allocation7 + $0x1634] ss:$24 sps:$4 sm:$0xff]  }
 0x432   :  { %6246 = vmatprep.subr.bf16.mxu0 %v8963_v52 }
 0x435   :  { %6247 = vmatpush1.bf16.msra.mxu0 %v8961_v54 }
 0x436   :  { %6248 = vmatprep.subr.bf16.mxu0 %v8966_v60  ;;  %v1450_v60 = vrot.slane %v9044_v62, %v9493_v7 }
 0x439   :  { %6249 = vmatpush1.bf16.msra.mxu0 %v8964_v33  ;;  %v1454_v33 = vrot.slane %v9044_v62, %v9466_v30 }
 0x43a   :  { %6250 = vmatprep.subr.bf16.mxu0 %v8969_v5 }
 0x43d   :  { %6251 = vmatpush1.bf16.msra.mxu0 %v8967_v6 }
 0x43e   :  { %6252 = vmatprep.subr.bf16.mxu0 %v8972_v56 }
 0x441   :  { %6253 = vmatpush1.bf16.msra.mxu0 %v8970_v8 }
 0x442   :  { %6254 = vmatprep.subr.bf16.mxu0 %v8975_v9 }
 0x445   :  { %6255 = vmatpush1.bf16.msra.mxu0 %v8973_v19 }
 0x446   :  { %6256 = vmatprep.subr.bf16.mxu0 %v8978_v11 }
 0x449   :  { %6257 = vmatpush1.bf16.msra.mxu0 %v8976_v15 }
 0x44a   :  { %6258 = vmatprep.subr.bf16.mxu0 %v8981_v17 }
 0x44d   :  { %6259 = vmatpush1.bf16.msra.mxu0 %v8979_v21 }
 0x44e   :  { %6260 = vmatprep.subr.bf16.mxu0 %v8984_v22  ;;  %v7617_v22 = vld [vmem:[#allocation11] ss:$0 sm:$0xff] }
 0x451   :  { %6261 = vmatpush1.bf16.msra.mxu0 %v8982_v23 }
 0x452   :  { %6262 = vmatprep.subr.bf16.mxu0 %v8987_v24 }
 0x455   :  { %6263 = vmatpush1.bf16.msra.mxu0 %v8985_v25 }
 0x456   :  { %6264 = vmatprep.subr.bf16.mxu0 %v8990_v61 }
 0x459   :  { %6265 = vmatpush1.bf16.msra.mxu0 %v8988_v28 }
 0x45a   :  { %6266 = vmatprep.subr.bf16.mxu0 %v8993_v47 }
 0x45d   :  { %6267 = vmatpush1.bf16.msra.mxu0 %v8991_v29 }
 0x45e   :  { %6268 = vmatprep.subr.bf16.mxu0 %v8996_v31 }
 0x461   :  { %6269 = vmatpush1.bf16.msra.mxu0 %v8994_v20 }
 0x462   :  { %6270 = vmatprep.subr.bf16.mxu0 %v8999_v18 }
 0x465   :  { %6271 = vmatpush1.bf16.msra.mxu0 %v8997_v32 }
 0x466   :  { %6272 = vmatprep.subr.bf16.mxu0 %v9002_v39 }
 0x469   :  { %6273 = vmatpush1.bf16.msra.mxu0 %v9000_v34 }
 0x46a   :  { %6274 = vmatprep.subr.bf16.mxu0 %v9005_v35 }
 0x46d   :  { %6275 = vmatpush1.bf16.msra.mxu0 %v9003_v36 }
 0x470   :  { %6277 = vmatmul.mubr.bf16.vlgmr.msra.gmra.mrb[12].mxu0 %v9540_v4  ;;  %v9025_v4 = vld [vmem:[#allocation10 + $0x108] sm:$0xff]  }
 0x4aa   :  { %v5950_v10 = vpop.f32.mrb[28].mxu1 }
 0x4ab   :  { %v7737_v37 = vadd.f32 %v5950_v10, %v1442_v50  ;;  %v5952_v38 = vpop.f32.mrb[29].mxu1 }
 0x4ac   :  { %v7738_v42 = vadd.f32 %v5952_v38, %v1446_v13  ;;  %v5954_v43 = vpop.f32.mrb[30].mxu1 }
 0x4ad   :  { %v6287_v48 = vmax.f32 %v7737_v37, 0.0  ;;  %v5955_v49 = vpop.f32.mrb[31].mxu1 }
 0x4ae   :  { %v6288_v16 = vmax.f32 %v7738_v42, 0.0 }
 0x4af   :  { %v6293_v57 = vpack.c.bf16 %v6287_v48, %v6287_v48 }
 0x4b0   :  { %v6294_v44 = vpack.c.bf16 %v6288_v16, %v6288_v16 }
 0x4b2   :  { %6760 = vmatprep.mubr.bf16.mxu1 %v6294_v44 }
 0x4b3   :  { %6761 = vmatmul.mubr.bf16.vlgmr.msra.gmra.mrb[36].mxu1 %v6293_v57 }
 0x4b4   :  { %7712 = vmatpush3.bf16.msra.mxu1 %v9023_v51 }
 0x4b5   :  { %7713 = vmatprep.subr.bf16.mxu1 %v9024_v46 }
 0x4b8   :  { %7714 = vmatpush3.bf16.msra.mxu1 %v9025_v4 }
 0x4b9   :  { %7715 = vmatprep.subr.bf16.mxu1 %v9026_v27 }
 0x4bc   :  { %7716 = vmatpush3.bf16.msra.mxu1 %v9027_v55 }
 0x4bd   :  { %7717 = vmatprep.subr.bf16.mxu1 %v9028_v53 }
 0x4c0   :  { %7718 = vmatpush3.bf16.msra.mxu1 %v9029_v45 }
 0x4c1   :  { %7719 = vmatprep.subr.bf16.mxu1 %v9030_v2 }
 0x4c4   :  { %7720 = vmatpush3.bf16.msra.mxu1 %v9031_v40 }
 0x4c5   :  { %7721 = vmatprep.subr.bf16.mxu1 %v9032_v12 }
 0x4c8   :  { %7722 = vmatpush3.bf16.msra.mxu1 %v9033_v14 }
 0x4c9   :  { %7723 = vmatprep.subr.bf16.mxu1 %v9034_v41 }
 0x4ca   :  { %v7683_v63 = vpop.f32.mrb[32].mxu1 }
 0x4cb   :  { %v7684_v0 = vpop.f32.mrb[33].mxu1 }
 0x4cc   :  { %v7685_v52 = vadd.f32 %v7684_v0, %v7683_v63  ;;  %v7686_v1 = vpop.f32.mrb[34].mxu1  ;;  %7724 = vmatpush3.bf16.msra.mxu1 %v9035_v58 }
 0x4cd   :  { %v7687_v54 = vpop.f32.mrb[35].mxu1  ;;  %7725 = vmatprep.subr.bf16.mxu1 %v9036_v59 }
 0x4ce   :  { %v6723_v26 = vadd.f32 %v7685_v52, %v7617_v22 }
 0x4d0   :  { %7726 = vmatpush3.bf16.msra.mxu1 %v9037_v3 }
 0x543   :  { %v6278_v5 = vpop.f32.mrb[12].mxu0 }
 0x544   :  { %v7739_v6 = vadd.f32 %v6278_v5, %v1450_v60  ;;  %v6280_v56 = vpop.f32.mrb[13].mxu0 }
 0x545   :  { %v7740_v8 = vadd.f32 %v6280_v56, %v1454_v33  ;;  %v6282_v9 = vpop.f32.mrb[14].mxu0 }
 0x546   :  { %v6289_v19 = vmax.f32 %v7739_v6, 0.0  ;;  %v6283_v11 = vpop.f32.mrb[15].mxu0 }
 0x547   :  { %v6290_v15 = vmax.f32 %v7740_v8, 0.0 }
 0x548   :  { %v6295_v21 = vpack.c.bf16 %v6289_v19, %v6289_v19 }
 0x549   :  { %v6296_v17 = vpack.c.bf16 %v6290_v15, %v6290_v15 }
 0x54b   :  { %6800 = vmatprep.mubr.bf16.mxu1 %v6296_v17 }
 0x54c   :  { %6801 = vmatmul.mubr.bf16.vlgmr.msra.gmra.mrb[40].mxu1 %v6295_v21 }
 0x586   :  { %v7705_v23 = vpop.f32.mrb[36].mxu1 }
 0x587   :  { %v7706_v24 = vpop.f32.mrb[37].mxu1 }
 0x588   :  { %v7707_v25 = vadd.f32 %v7706_v24, %v7705_v23  ;;  %v7708_v7 = vpop.f32.mrb[38].mxu1 }
 0x589   :  { %v7709_v61 = vpop.f32.mrb[39].mxu1 }
 0x58a   :  { %v6763_v30 = vadd.f32 %v7707_v25, %v6723_v26 }
 0x61f   :  { %v7727_v28 = vpop.f32.mrb[40].mxu1 }
 0x620   :  { %v7728_v47 = vpop.f32.mrb[41].mxu1 }
 0x621   :  { %v7729_v29 = vadd.f32 %v7728_v47, %v7727_v28  ;;  %v7730_v31 = vpop.f32.mrb[42].mxu1 }
 0x622   :  { %v7731_v20 = vpop.f32.mrb[43].mxu1 }
 0x623   :  { %v6803_v18 = vadd.f32 %v7729_v29, %v6763_v30 }
 0x625   :  { %v7666_v32 = vmul.f32 -1.442695, %v6803_v18 }
 0x627   :  { %9038 = vpow2.f32 %v7666_v32 }
 0x631   :  { %v9039_v39 = vpop.eup %9038 }
 0x632   :  { %v6811_v34 = vadd.f32 1.0, %v9039_v39 }
 0x634   :  { %9040 = vrcp.f32 %v6811_v34 }
 0x63e   :  { %v9041_v35 = vpop.eup %9040 }
 0x63f   :  { %6814 = vst [vmem:[#allocation13] sm:$0x3] %v9041_v35 }
 0x640   :  { %9188 = shalt.err (!%p9185_p10)
}
 0x641   :  { %s9189_s30 = scalar_lea.hbm %s9607_s7, 32 }
 0x642   :  { %p9190_p11 = scmp.ne.s32.totalorder %s9607_s7, %s9189_s30  ;;  %p9193_p12 = scmp.lt.u32.totalorder %s9189_s30, %s9607_s7 }
 0x644   :  { %p9195_p13 = pnand %p9193_p12, %p9190_p11 }
 0x646   :  { %9198 = shalt.err (!%p9195_p13)
}
 0x647   :  { %6824 = dma.vmem_to_hbm [thread:$0]  %s6822_s24, 32, %s9607_s7, [#allocation4]  }
 0x648   :  { %9207 = dma.done.wait [#allocation4], 32  }
 0x649   :  { %9208 = vsyncadd [#allocation4], 4294967264 }
 0x64a   :  { %6828 = vsyncpa [#allocation3], 1 }
 0x64b   :  { %6829 = vsyncpa [#allocation6], 1 }
 0x64c   :  { %6830 = vsyncpa [#allocation9], 1 }
 0x64d   :  { %6831 = vsyncpa [#allocation12], 1 }
 0x64e   :  { %6832 = vsyncpa [#allocation4], 1 }

</bundles_post_ra>
